<compile_context>
chip_gen: v7x
topology: tpu7x:2x2x1
jax: 0.10.0
libtpu: 0.0.40
codegen_flags: <defaults>
</compile_context>

<pallas_src>
import jax
import jax.numpy as jnp
from jax.experimental import pallas as pl
from jax.experimental.pallas import tpu as pltpu


# ----------------------------------------------------------------------------
# Fused Pallas kernel: both RGCN branches + mean pooling + 3-layer MLP head
# ----------------------------------------------------------------------------
def fused_rgnn_kernel(x_ref, a_ref, wcat_ref, bias_ref, p_ref,
                      head_hbm, hout_hbm, out_ref,
                      head_vmem, hout_vmem, sems):
    """Entire RGNN_classifier forward (eval mode).

    x_ref:    [2, Np, D]          node features per branch (zero padded to Np)
    a_ref:    [2*R, Np, Np]       per-branch/relation row-normalized adjacency
    wcat_ref: [2*L, D, (R+1)*D]   concat([W_root, W_rel_0..W_rel_{R-1}], axis=1)
    bias_ref: [2*L, 1, D]         per-layer conv bias
    p_ref:    [2, G, Np]          global_mean_pool matrices (zero cols on padding)
    head_hbm: [80+H, H] bf16      packed [w1(2D) | b1 | b2 | pad | w2(H)]  (pl.ANY)
    hout_hbm: [H+8, 128] f32      packed [w3 lane-padded | b3 lane-padded | pad]
    out_ref:  [G, 128] f32        lane-dense logits (slice [:, :C] outside)
    """
    n_rows, hid = head_vmem.shape            # 848, 768
    w2_row0 = n_rows - hid                   # 80 (bf16 sublane-tile aligned)
    half = hid // 2                          # 384
    d = x_ref.shape[2]                       # 32
    in2 = 2 * d                              # 64
    num_branches = x_ref.shape[0]            # 2
    num_layers = wcat_ref.shape[0] // num_branches
    num_rel = a_ref.shape[0] // num_branches

    # Start ALL MLP-head DMAs immediately; they overlap the GNN compute and are
    # waited on progressively: w1+biases -> w2 first half -> w2 second half -> w3.
    cp_w1 = pltpu.make_async_copy(head_hbm.at[0:w2_row0],
                                  head_vmem.at[0:w2_row0], sems.at[0])
    cp_w2a = pltpu.make_async_copy(head_hbm.at[w2_row0:w2_row0 + half],
                                   head_vmem.at[w2_row0:w2_row0 + half], sems.at[1])
    cp_w2b = pltpu.make_async_copy(head_hbm.at[w2_row0 + half:n_rows],
                                   head_vmem.at[w2_row0 + half:n_rows], sems.at[2])
    cp_w3 = pltpu.make_async_copy(hout_hbm, hout_vmem, sems.at[3])
    cp_w1.start()
    cp_w2a.start()
    cp_w2b.start()
    cp_w3.start()

    # ---- two independent RGCN branches (residual=True, no layer norm, eval) ----
    pooled = []
    for br in range(num_branches):                        # static unroll (2)
        h = x_ref[br]                                     # [Np, D]
        for l in range(num_layers):                       # static unroll (2)
            # One lane-128 matmul = root transform + all relation messages.
            msg = jnp.dot(h, wcat_ref[br * num_layers + l],
                          preferred_element_type=jnp.float32)          # [Np, (R+1)*D]
            agg = msg[:, :d]                                            # root/self term
            for r in range(num_rel):                      # static unroll (3)
                # NOTE: 32-lane offset slices cost a tiny relayout; negligible here.
                agg = agg + jnp.dot(a_ref[br * num_rel + r],
                                    msg[:, (r + 1) * d:(r + 2) * d],
                                    preferred_element_type=jnp.float32)
            # h = relu(conv(h) + h); dropout is a no-op in eval mode.
            h = jnp.maximum(agg + bias_ref[br * num_layers + l] + h, 0.0)
        # global_mean_pool as a matmul with the precomputed [G, Np] pooling matrix.
        pooled.append(jnp.dot(p_ref[br], h, preferred_element_type=jnp.float32))
    g1, g2 = pooled                                       # [G, D] each (f32)

    # ---- MLP head: Linear(2D,H) ReLU Linear(H,H) ReLU Linear(H,C) ----
    # concat([g1, g2]) @ W1 computed as g1 @ W1[:D] + g2 @ W1[D:] (no lane concat).
    g1b = g1.astype(jnp.bfloat16)
    g2b = g2.astype(jnp.bfloat16)

    cp_w1.wait()                                          # tiny chunk, needed first
    h = (jnp.dot(g1b, head_vmem[0:d, :], preferred_element_type=jnp.float32)
         + jnp.dot(g2b, head_vmem[d:in2, :], preferred_element_type=jnp.float32)
         + head_vmem[in2:in2 + 1, :].astype(jnp.float32))
    h = jnp.maximum(h, 0.0)                               # [G, H] f32
    hb = h.astype(jnp.bfloat16)

    cp_w2a.wait()                                         # first half of w2 rows
    acc = jnp.dot(hb[:, 0:half], head_vmem[w2_row0:w2_row0 + half, :],
                  preferred_element_type=jnp.float32)
    cp_w2b.wait()                                         # second half of w2 rows
    acc = acc + jnp.dot(hb[:, half:hid], head_vmem[w2_row0 + half:n_rows, :],
                        preferred_element_type=jnp.float32)
    h = jnp.maximum(acc + head_vmem[in2 + 1:in2 + 2, :].astype(jnp.float32), 0.0)

    cp_w3.wait()                                          # lane-padded f32 w3 + b3
    out_ref[...] = (jnp.dot(h, hout_vmem[0:hid, :], preferred_element_type=jnp.float32)
                    + hout_vmem[hid:hid + 1, :])


# ----------------------------------------------------------------------------
# pallas_call wrapper (no grid: single invocation, single-buffered VMEM inputs)
# ----------------------------------------------------------------------------
def fused_forward(x_all, a_all, wcat_all, bias_all, p_all, head_big, head_out,
                  num_graphs):
    vmem = pltpu.MemorySpace.VMEM
    return pl.pallas_call(
        fused_rgnn_kernel,
        out_shape=jax.ShapeDtypeStruct((num_graphs, head_out.shape[1]), jnp.float32),
        in_specs=[pl.BlockSpec(memory_space=vmem)] * 5
                 + [pl.BlockSpec(memory_space=pl.ANY)] * 2,
        out_specs=pl.BlockSpec(memory_space=vmem),
        scratch_shapes=[pltpu.VMEM(head_big.shape, jnp.bfloat16),
                        pltpu.VMEM(head_out.shape, jnp.float32),
                        pltpu.SemaphoreType.DMA((4,))],
    )(x_all, a_all, wcat_all, bias_all, p_all, head_big, head_out)


# ----------------------------------------------------------------------------
# Graph preprocessing (plain-JAX glue, hoisted out of the kernel hot path)
# ----------------------------------------------------------------------------
def build_rel_adj(edge_index, edge_type, num_relations, n_pad):
    """Dense A[r, i, j] = 1/|N_r(i)| if edge j->i of type r (PyG RGCNConv mean aggr)."""
    src, dst = edge_index[0], edge_index[1]
    a = jnp.zeros((num_relations, n_pad, n_pad), jnp.float32)
    a = a.at[edge_type, dst, src].add(1.0)
    deg = a.sum(axis=2, keepdims=True)
    return jnp.where(deg > 0, a / jnp.maximum(deg, 1.0), 0.0)


def mean_pool_matrix(batch, num_graphs, num_nodes, n_pad):
    batch = jnp.pad(batch, (0, n_pad - num_nodes), constant_values=-1)
    onehot = (jnp.arange(num_graphs)[:, None] == batch[None, :]).astype(jnp.float32)
    counts = onehot.sum(axis=1, keepdims=True)
    return onehot / jnp.maximum(counts, 1.0)


def pad_rows(x, n_pad):
    return jnp.pad(x, ((0, n_pad - x.shape[0]), (0, 0)))


# ----------------------------------------------------------------------------
# Parameters (concatenated / stacked layout for the fused kernel)
# ----------------------------------------------------------------------------
def init_params(key, size, num_layers, num_relations, hidden_size=768, num_classes=4):
    def lin(k, fan_in, shape):
        return jax.random.normal(k, shape, jnp.float32) * (1.0 / jnp.sqrt(fan_in))

    keys = jax.random.split(key, 4 * num_layers + 3)
    idx = 0
    params = {}
    for branch in ("1", "2"):
        wcats, biases = [], []
        for _ in range(num_layers):
            w_root = lin(keys[idx], size, (size, size))
            w_rel = lin(keys[idx + 1], size, (num_relations, size, size))
            # W_cat = [W_root | W_rel_0 | ... | W_rel_{R-1}]  -> [D, (R+1)*D]
            wcat = jnp.concatenate(
                [w_root] + [w_rel[r] for r in range(num_relations)], axis=1)
            wcats.append(wcat)
            biases.append(jnp.zeros((1, size), jnp.float32))
            idx += 2
        params["wcat" + branch] = jnp.stack(wcats)       # [L, D, (R+1)*D]
        params["b" + branch] = jnp.stack(biases)         # [L, 1, D]

    in_dim = size * 2
    params["mlp"] = {
        "w1": lin(keys[idx], in_dim, (in_dim, hidden_size)),
        "b1": jnp.zeros((1, hidden_size), jnp.float32),
        "w2": lin(keys[idx + 1], hidden_size, (hidden_size, hidden_size)),
        "b2": jnp.zeros((1, hidden_size), jnp.float32),
        "w3": lin(keys[idx + 2], hidden_size, (hidden_size, num_classes)),
        "b3": jnp.zeros((1, num_classes), jnp.float32),
    }
    return params


def pack_head_params(mlp):
    """Pack the MLP head into two contiguous HBM buffers for manual prefetch."""
    w1, b1, w2, b2, w3, b3 = (mlp["w1"], mlp["b1"], mlp["w2"],
                              mlp["b2"], mlp["w3"], mlp["b3"])
    in2, hid = w1.shape
    ncls = w3.shape[1]
    # bf16 sublane-tile (16-row) aligned start for w2 so chunked DMAs stay aligned.
    w2_row0 = ((in2 + 2 + 15) // 16) * 16
    pad = jnp.zeros((w2_row0 - (in2 + 2), hid), jnp.float32)
    head_big = jnp.concatenate([w1, b1, b2, pad, w2], axis=0).astype(jnp.bfloat16)

    lanes = 128                                            # lane-dense output projection
    w3p = jnp.zeros((hid, lanes), jnp.float32).at[:, :ncls].set(w3)
    b3p = jnp.zeros((1, lanes), jnp.float32).at[:, :ncls].set(b3)
    tail = jnp.zeros((7, lanes), jnp.float32)              # pad rows to a multiple of 8
    head_out = jnp.concatenate([w3p, b3p, tail], axis=0)   # [hid + 8, 128]
    return head_big, head_out


# ----------------------------------------------------------------------------
# Full forward: preprocessing/packing (XLA) + one fused Pallas kernel
# ----------------------------------------------------------------------------
def rgnn_classifier_forward(params, x1, edge_index1, edge_type1,
                            x2, edge_index2, edge_type2,
                            batch1, batch2, num_relations, num_graphs, num_classes):
    n1, n2 = x1.shape[0], x2.shape[0]
    n_pad = max(n1, n2)

    # Graph preprocessing (cache if the graph structure is reused across calls).
    a1 = build_rel_adj(edge_index1, edge_type1, num_relations, n_pad)
    a2 = build_rel_adj(edge_index2, edge_type2, num_relations, n_pad)
    p1 = mean_pool_matrix(batch1, num_graphs, n1, n_pad)
    p2 = mean_pool_matrix(batch2, num_graphs, n2, n_pad)

    # Pack the many tiny inputs into a few lane-dense arrays (fewer prologue DMAs).
    x_all = jnp.stack([pad_rows(x1, n_pad), pad_rows(x2, n_pad)])            # [2,Np,D]
    a_all = jnp.concatenate([a1, a2], axis=0)                                # [2R,Np,Np]
    p_all = jnp.stack([p1, p2])                                              # [2,G,Np]
    wcat_all = jnp.concatenate([params["wcat1"], params["wcat2"]], axis=0)   # [2L,D,128]
    bias_all = jnp.concatenate([params["b1"], params["b2"]], axis=0)         # [2L,1,D]

    head_big, head_out = pack_head_params(params["mlp"])

    out = fused_forward(x_all, a_all, wcat_all, bias_all, p_all,
                        head_big, head_out, num_graphs)
    return out[:, :num_classes]


# ----------------------------------------------------------------------------
# Pure-JAX f32 reference (for a numerical sanity check)
# ----------------------------------------------------------------------------
def reference_forward(params, x1, a1, x2, a2, p1, p2):
    def branch(x, a, wcat, bias):
        d = x.shape[1]
        h = x
        for l in range(wcat.shape[0]):
            msg = h @ wcat[l]
            agg = msg[:, :d]
            for r in range(a.shape[0]):
                agg = agg + a[r] @ msg[:, (r + 1) * d:(r + 2) * d]
            h = jax.nn.relu(agg + bias[l] + h)
        return h

    h1 = branch(x1, a1, params["wcat1"], params["b1"])
    h2 = branch(x2, a2, params["wcat2"], params["b2"])
    g = jnp.concatenate([p1 @ h1, p2 @ h2], axis=1)
    mlp = params["mlp"]
    h = jax.nn.relu(g @ mlp["w1"] + mlp["b1"])
    h = jax.nn.relu(h @ mlp["w2"] + mlp["b2"])
    return h @ mlp["w3"] + mlp["b3"]


# ----------------------------------------------------------------------------
if __name__ == "__main__":
    SIZE = 32            # node feature dim
    NUM_LAYERS = 2
    NUM_RELATIONS = 3
    NUM_GRAPHS = 2
    NUM_CLASSES = 4
    N1, E1 = 12, 30
    N2, E2 = 10, 24

    key = jax.random.PRNGKey(0)
    (k_param, k_x1, k_x2,
     k_e1s, k_e1d, k_e1t, k_e2s, k_e2d, k_e2t) = jax.random.split(key, 9)

    params = init_params(k_param, SIZE, NUM_LAYERS, NUM_RELATIONS,
                         hidden_size=768, num_classes=NUM_CLASSES)

    x1 = jax.random.normal(k_x1, (N1, SIZE), jnp.float32)
    x2 = jax.random.normal(k_x2, (N2, SIZE), jnp.float32)
    edge_index1 = jnp.stack([jax.random.randint(k_e1s, (E1,), 0, N1),
                             jax.random.randint(k_e1d, (E1,), 0, N1)])
    edge_type1 = jax.random.randint(k_e1t, (E1,), 0, NUM_RELATIONS)
    edge_index2 = jnp.stack([jax.random.randint(k_e2s, (E2,), 0, N2),
                             jax.random.randint(k_e2d, (E2,), 0, N2)])
    edge_type2 = jax.random.randint(k_e2t, (E2,), 0, NUM_RELATIONS)
    batch1 = jnp.concatenate([jnp.zeros((6,), jnp.int32), jnp.ones((6,), jnp.int32)])
    batch2 = jnp.concatenate([jnp.zeros((5,), jnp.int32), jnp.ones((5,), jnp.int32)])

    logits = rgnn_classifier_forward(params, x1, edge_index1, edge_type1,
                                     x2, edge_index2, edge_type2,
                                     batch1, batch2, NUM_RELATIONS, NUM_GRAPHS,
                                     NUM_CLASSES)
    logits = jax.block_until_ready(logits)
    assert logits.shape == (NUM_GRAPHS, NUM_CLASSES)

    # Numerical sanity check against a full-f32 pure-JAX reference.
    # (Kernel uses bf16 for the big MLP weights/activations with f32 accumulation,
    #  so allow a slightly looser tolerance.)
    a1 = build_rel_adj(edge_index1, edge_type1, NUM_RELATIONS, N1)
    a2 = build_rel_adj(edge_index2, edge_type2, NUM_RELATIONS, N2)
    p1 = mean_pool_matrix(batch1, NUM_GRAPHS, N1, N1)
    p2 = mean_pool_matrix(batch2, NUM_GRAPHS, N2, N2)
    ref = jax.block_until_ready(reference_forward(params, x1, a1, x2, a2, p1, p2))
    assert jnp.allclose(logits, ref, atol=5e-2, rtol=5e-2), (logits, ref)

    print("KERNEL_OK")
</pallas_src>

<mosaic_0001>
module attributes {stable_mosaic.version = 11 : i64} {
  func.func @fused_rgnn_kernel(%arg0: memref<2x12x32xf32, #tpu.memory_space<vmem>>, %arg1: memref<6x12x12xf32, #tpu.memory_space<vmem>>, %arg2: memref<4x32x128xf32, #tpu.memory_space<vmem>>, %arg3: memref<4x1x32xf32, #tpu.memory_space<vmem>>, %arg4: memref<2x2x12xf32, #tpu.memory_space<vmem>>, %arg5: memref<848x768xbf16, #tpu.memory_space<any>>, %arg6: memref<776x128xf32, #tpu.memory_space<any>>, %arg7: memref<2x128xf32, #tpu.memory_space<vmem>>, %arg8: memref<848x768xbf16, #tpu.memory_space<vmem>>, %arg9: memref<776x128xf32, #tpu.memory_space<vmem>>, %arg10: memref<4x!tpu.dma_semaphore, #tpu.memory_space<semaphore_mem>>) attributes {dimension_semantics = [], scalar_prefetch = 0 : i64, scratch_operands = 3 : i64, tpu.core_type = #tpu.core_type<tc>} {
    %c0_i32 = arith.constant 0 : i32
    %c0_i32_0 = arith.constant 0 : i32
    %c0_i32_1 = arith.constant 0 : i32
    %0 = tpu.memref_slice %arg5[%c0_i32_0, %c0_i32_1] : memref<848x768xbf16, #tpu.memory_space<any>> -> memref<80x768xbf16, #tpu.memory_space<any>>
    %c0_i32_2 = arith.constant 0 : i32
    %c0_i32_3 = arith.constant 0 : i32
    %1 = tpu.memref_slice %arg8[%c0_i32_2, %c0_i32_3] : memref<848x768xbf16, #tpu.memory_space<vmem>> -> memref<80x768xbf16, #tpu.memory_space<vmem>>
    %2 = tpu.memref_slice %arg10[%c0_i32] : memref<4x!tpu.dma_semaphore, #tpu.memory_space<semaphore_mem>> -> memref<1x!tpu.dma_semaphore, #tpu.memory_space<semaphore_mem>>
    %3 = tpu.memref_squeeze %2 : memref<1x!tpu.dma_semaphore, #tpu.memory_space<semaphore_mem>> -> memref<!tpu.dma_semaphore, #tpu.memory_space<semaphore_mem>>
    tpu.enqueue_dma source(%0 : memref<80x768xbf16, #tpu.memory_space<any>>) target(%1 : memref<80x768xbf16, #tpu.memory_space<vmem>>) target_semaphore(%3 : memref<!tpu.dma_semaphore, #tpu.memory_space<semaphore_mem>>)
    %c1_i32 = arith.constant 1 : i32
    %c80_i32 = arith.constant 80 : i32
    %c0_i32_4 = arith.constant 0 : i32
    %4 = tpu.memref_slice %arg5[%c80_i32, %c0_i32_4] : memref<848x768xbf16, #tpu.memory_space<any>> -> memref<384x768xbf16, #tpu.memory_space<any>>
    %c80_i32_5 = arith.constant 80 : i32
    %c0_i32_6 = arith.constant 0 : i32
    %5 = tpu.memref_slice %arg8[%c80_i32_5, %c0_i32_6] : memref<848x768xbf16, #tpu.memory_space<vmem>> -> memref<384x768xbf16, #tpu.memory_space<vmem>>
    %6 = tpu.memref_slice %arg10[%c1_i32] : memref<4x!tpu.dma_semaphore, #tpu.memory_space<semaphore_mem>> -> memref<1x!tpu.dma_semaphore, #tpu.memory_space<semaphore_mem>>
    %7 = tpu.memref_squeeze %6 : memref<1x!tpu.dma_semaphore, #tpu.memory_space<semaphore_mem>> -> memref<!tpu.dma_semaphore, #tpu.memory_space<semaphore_mem>>
    tpu.enqueue_dma source(%4 : memref<384x768xbf16, #tpu.memory_space<any>>) target(%5 : memref<384x768xbf16, #tpu.memory_space<vmem>>) target_semaphore(%7 : memref<!tpu.dma_semaphore, #tpu.memory_space<semaphore_mem>>)
    %c2_i32 = arith.constant 2 : i32
    %c464_i32 = arith.constant 464 : i32
    %c0_i32_7 = arith.constant 0 : i32
    %8 = tpu.memref_slice %arg5[%c464_i32, %c0_i32_7] : memref<848x768xbf16, #tpu.memory_space<any>> -> memref<384x768xbf16, #tpu.memory_space<any>>
    %c464_i32_8 = arith.constant 464 : i32
    %c0_i32_9 = arith.constant 0 : i32
    %9 = tpu.memref_slice %arg8[%c464_i32_8, %c0_i32_9] : memref<848x768xbf16, #tpu.memory_space<vmem>> -> memref<384x768xbf16, #tpu.memory_space<vmem>>
    %10 = tpu.memref_slice %arg10[%c2_i32] : memref<4x!tpu.dma_semaphore, #tpu.memory_space<semaphore_mem>> -> memref<1x!tpu.dma_semaphore, #tpu.memory_space<semaphore_mem>>
    %11 = tpu.memref_squeeze %10 : memref<1x!tpu.dma_semaphore, #tpu.memory_space<semaphore_mem>> -> memref<!tpu.dma_semaphore, #tpu.memory_space<semaphore_mem>>
    tpu.enqueue_dma source(%8 : memref<384x768xbf16, #tpu.memory_space<any>>) target(%9 : memref<384x768xbf16, #tpu.memory_space<vmem>>) target_semaphore(%11 : memref<!tpu.dma_semaphore, #tpu.memory_space<semaphore_mem>>)
    %c3_i32 = arith.constant 3 : i32
    %12 = tpu.memref_slice %arg10[%c3_i32] : memref<4x!tpu.dma_semaphore, #tpu.memory_space<semaphore_mem>> -> memref<1x!tpu.dma_semaphore, #tpu.memory_space<semaphore_mem>>
    %13 = tpu.memref_squeeze %12 : memref<1x!tpu.dma_semaphore, #tpu.memory_space<semaphore_mem>> -> memref<!tpu.dma_semaphore, #tpu.memory_space<semaphore_mem>>
    tpu.enqueue_dma source(%arg6 : memref<776x128xf32, #tpu.memory_space<any>>) target(%arg9 : memref<776x128xf32, #tpu.memory_space<vmem>>) target_semaphore(%13 : memref<!tpu.dma_semaphore, #tpu.memory_space<semaphore_mem>>)
    %c0 = arith.constant 0 : index
    %c0_10 = arith.constant 0 : index
    %c0_11 = arith.constant 0 : index
    %14 = vector.load %arg0[%c0, %c0_10, %c0_11] : memref<2x12x32xf32, #tpu.memory_space<vmem>>, vector<1x12x32xf32>
    %15 = vector.shape_cast %14 : vector<1x12x32xf32> to vector<12x32xf32>
    %c0_12 = arith.constant 0 : index
    %c0_13 = arith.constant 0 : index
    %c0_14 = arith.constant 0 : index
    %16 = vector.load %arg2[%c0_12, %c0_13, %c0_14] : memref<4x32x128xf32, #tpu.memory_space<vmem>>, vector<1x32x128xf32>
    %17 = vector.shape_cast %16 : vector<1x32x128xf32> to vector<32x128xf32>
    %cst = arith.constant dense<0.000000e+00> : vector<12x128xf32>
    %18 = tpu.matmul %15, %17, %cst {dimension_numbers = #tpu.dot_dimension_numbers<[1], [0], [0], [1], [0, 0, 1, 1], [], []>} : vector<12x32xf32>, vector<32x128xf32>, vector<12x128xf32> -> vector<12x128xf32>
    %19 = vector.extract_strided_slice %18 {offsets = [0, 0], sizes = [12, 32], strides = [1, 1]} : vector<12x128xf32> to vector<12x32xf32>
    %c0_15 = arith.constant 0 : index
    %c0_16 = arith.constant 0 : index
    %c0_17 = arith.constant 0 : index
    %20 = vector.load %arg1[%c0_15, %c0_16, %c0_17] : memref<6x12x12xf32, #tpu.memory_space<vmem>>, vector<1x12x12xf32>
    %21 = vector.shape_cast %20 : vector<1x12x12xf32> to vector<12x12xf32>
    %22 = vector.extract_strided_slice %18 {offsets = [0, 32], sizes = [12, 32], strides = [1, 1]} : vector<12x128xf32> to vector<12x32xf32>
    %cst_18 = arith.constant dense<0.000000e+00> : vector<12x32xf32>
    %23 = tpu.matmul %21, %22, %cst_18 {dimension_numbers = #tpu.dot_dimension_numbers<[1], [0], [0], [1], [0, 0, 1, 1], [], []>} : vector<12x12xf32>, vector<12x32xf32>, vector<12x32xf32> -> vector<12x32xf32>
    %24 = arith.addf %19, %23 : vector<12x32xf32>
    %c1 = arith.constant 1 : index
    %c0_19 = arith.constant 0 : index
    %c0_20 = arith.constant 0 : index
    %25 = vector.load %arg1[%c1, %c0_19, %c0_20] : memref<6x12x12xf32, #tpu.memory_space<vmem>>, vector<1x12x12xf32>
    %26 = vector.shape_cast %25 : vector<1x12x12xf32> to vector<12x12xf32>
    %27 = vector.extract_strided_slice %18 {offsets = [0, 64], sizes = [12, 32], strides = [1, 1]} : vector<12x128xf32> to vector<12x32xf32>
    %cst_21 = arith.constant dense<0.000000e+00> : vector<12x32xf32>
    %28 = tpu.matmul %26, %27, %cst_21 {dimension_numbers = #tpu.dot_dimension_numbers<[1], [0], [0], [1], [0, 0, 1, 1], [], []>} : vector<12x12xf32>, vector<12x32xf32>, vector<12x32xf32> -> vector<12x32xf32>
    %29 = arith.addf %24, %28 : vector<12x32xf32>
    %c2 = arith.constant 2 : index
    %c0_22 = arith.constant 0 : index
    %c0_23 = arith.constant 0 : index
    %30 = vector.load %arg1[%c2, %c0_22, %c0_23] : memref<6x12x12xf32, #tpu.memory_space<vmem>>, vector<1x12x12xf32>
    %31 = vector.shape_cast %30 : vector<1x12x12xf32> to vector<12x12xf32>
    %32 = vector.extract_strided_slice %18 {offsets = [0, 96], sizes = [12, 32], strides = [1, 1]} : vector<12x128xf32> to vector<12x32xf32>
    %cst_24 = arith.constant dense<0.000000e+00> : vector<12x32xf32>
    %33 = tpu.matmul %31, %32, %cst_24 {dimension_numbers = #tpu.dot_dimension_numbers<[1], [0], [0], [1], [0, 0, 1, 1], [], []>} : vector<12x12xf32>, vector<12x32xf32>, vector<12x32xf32> -> vector<12x32xf32>
    %34 = arith.addf %29, %33 : vector<12x32xf32>
    %c0_25 = arith.constant 0 : index
    %c0_26 = arith.constant 0 : index
    %c0_27 = arith.constant 0 : index
    %35 = vector.load %arg3[%c0_25, %c0_26, %c0_27] : memref<4x1x32xf32, #tpu.memory_space<vmem>>, vector<1x1x32xf32>
    %36 = vector.shape_cast %35 : vector<1x1x32xf32> to vector<1x32xf32>
    %37 = vector.broadcast %36 : vector<1x32xf32> to vector<12x32xf32>
    %38 = arith.addf %34, %37 : vector<12x32xf32>
    %39 = arith.addf %38, %15 : vector<12x32xf32>
    %cst_28 = arith.constant 0.000000e+00 : f32
    %40 = vector.broadcast %cst_28 : f32 to vector<12x32xf32>
    %41 = arith.maximumf %39, %40 : vector<12x32xf32>
    %c1_29 = arith.constant 1 : index
    %c0_30 = arith.constant 0 : index
    %c0_31 = arith.constant 0 : index
    %42 = vector.load %arg2[%c1_29, %c0_30, %c0_31] : memref<4x32x128xf32, #tpu.memory_space<vmem>>, vector<1x32x128xf32>
    %43 = vector.shape_cast %42 : vector<1x32x128xf32> to vector<32x128xf32>
    %cst_32 = arith.constant dense<0.000000e+00> : vector<12x128xf32>
    %44 = tpu.matmul %41, %43, %cst_32 {dimension_numbers = #tpu.dot_dimension_numbers<[1], [0], [0], [1], [0, 0, 1, 1], [], []>} : vector<12x32xf32>, vector<32x128xf32>, vector<12x128xf32> -> vector<12x128xf32>
    %45 = vector.extract_strided_slice %44 {offsets = [0, 0], sizes = [12, 32], strides = [1, 1]} : vector<12x128xf32> to vector<12x32xf32>
    %c0_33 = arith.constant 0 : index
    %c0_34 = arith.constant 0 : index
    %c0_35 = arith.constant 0 : index
    %46 = vector.load %arg1[%c0_33, %c0_34, %c0_35] : memref<6x12x12xf32, #tpu.memory_space<vmem>>, vector<1x12x12xf32>
    %47 = vector.shape_cast %46 : vector<1x12x12xf32> to vector<12x12xf32>
    %48 = vector.extract_strided_slice %44 {offsets = [0, 32], sizes = [12, 32], strides = [1, 1]} : vector<12x128xf32> to vector<12x32xf32>
    %cst_36 = arith.constant dense<0.000000e+00> : vector<12x32xf32>
    %49 = tpu.matmul %47, %48, %cst_36 {dimension_numbers = #tpu.dot_dimension_numbers<[1], [0], [0], [1], [0, 0, 1, 1], [], []>} : vector<12x12xf32>, vector<12x32xf32>, vector<12x32xf32> -> vector<12x32xf32>
    %50 = arith.addf %45, %49 : vector<12x32xf32>
    %c1_37 = arith.constant 1 : index
    %c0_38 = arith.constant 0 : index
    %c0_39 = arith.constant 0 : index
    %51 = vector.load %arg1[%c1_37, %c0_38, %c0_39] : memref<6x12x12xf32, #tpu.memory_space<vmem>>, vector<1x12x12xf32>
    %52 = vector.shape_cast %51 : vector<1x12x12xf32> to vector<12x12xf32>
    %53 = vector.extract_strided_slice %44 {offsets = [0, 64], sizes = [12, 32], strides = [1, 1]} : vector<12x128xf32> to vector<12x32xf32>
    %cst_40 = arith.constant dense<0.000000e+00> : vector<12x32xf32>
    %54 = tpu.matmul %52, %53, %cst_40 {dimension_numbers = #tpu.dot_dimension_numbers<[1], [0], [0], [1], [0, 0, 1, 1], [], []>} : vector<12x12xf32>, vector<12x32xf32>, vector<12x32xf32> -> vector<12x32xf32>
    %55 = arith.addf %50, %54 : vector<12x32xf32>
    %c2_41 = arith.constant 2 : index
    %c0_42 = arith.constant 0 : index
    %c0_43 = arith.constant 0 : index
    %56 = vector.load %arg1[%c2_41, %c0_42, %c0_43] : memref<6x12x12xf32, #tpu.memory_space<vmem>>, vector<1x12x12xf32>
    %57 = vector.shape_cast %56 : vector<1x12x12xf32> to vector<12x12xf32>
    %58 = vector.extract_strided_slice %44 {offsets = [0, 96], sizes = [12, 32], strides = [1, 1]} : vector<12x128xf32> to vector<12x32xf32>
    %cst_44 = arith.constant dense<0.000000e+00> : vector<12x32xf32>
    %59 = tpu.matmul %57, %58, %cst_44 {dimension_numbers = #tpu.dot_dimension_numbers<[1], [0], [0], [1], [0, 0, 1, 1], [], []>} : vector<12x12xf32>, vector<12x32xf32>, vector<12x32xf32> -> vector<12x32xf32>
    %60 = arith.addf %55, %59 : vector<12x32xf32>
    %c1_45 = arith.constant 1 : index
    %c0_46 = arith.constant 0 : index
    %c0_47 = arith.constant 0 : index
    %61 = vector.load %arg3[%c1_45, %c0_46, %c0_47] : memref<4x1x32xf32, #tpu.memory_space<vmem>>, vector<1x1x32xf32>
    %62 = vector.shape_cast %61 : vector<1x1x32xf32> to vector<1x32xf32>
    %63 = vector.broadcast %62 : vector<1x32xf32> to vector<12x32xf32>
    %64 = arith.addf %60, %63 : vector<12x32xf32>
    %65 = arith.addf %64, %41 : vector<12x32xf32>
    %cst_48 = arith.constant 0.000000e+00 : f32
    %66 = vector.broadcast %cst_48 : f32 to vector<12x32xf32>
    %67 = arith.maximumf %65, %66 : vector<12x32xf32>
    %c0_49 = arith.constant 0 : index
    %c0_50 = arith.constant 0 : index
    %c0_51 = arith.constant 0 : index
    %68 = vector.load %arg4[%c0_49, %c0_50, %c0_51] : memref<2x2x12xf32, #tpu.memory_space<vmem>>, vector<1x2x12xf32>
    %69 = vector.shape_cast %68 : vector<1x2x12xf32> to vector<2x12xf32>
    %cst_52 = arith.constant dense<0.000000e+00> : vector<2x32xf32>
    %70 = tpu.matmul %69, %67, %cst_52 {dimension_numbers = #tpu.dot_dimension_numbers<[1], [0], [0], [1], [0, 0, 1, 1], [], []>} : vector<2x12xf32>, vector<12x32xf32>, vector<2x32xf32> -> vector<2x32xf32>
    %c1_53 = arith.constant 1 : index
    %c0_54 = arith.constant 0 : index
    %c0_55 = arith.constant 0 : index
    %71 = vector.load %arg0[%c1_53, %c0_54, %c0_55] : memref<2x12x32xf32, #tpu.memory_space<vmem>>, vector<1x12x32xf32>
    %72 = vector.shape_cast %71 : vector<1x12x32xf32> to vector<12x32xf32>
    %c2_56 = arith.constant 2 : index
    %c0_57 = arith.constant 0 : index
    %c0_58 = arith.constant 0 : index
    %73 = vector.load %arg2[%c2_56, %c0_57, %c0_58] : memref<4x32x128xf32, #tpu.memory_space<vmem>>, vector<1x32x128xf32>
    %74 = vector.shape_cast %73 : vector<1x32x128xf32> to vector<32x128xf32>
    %cst_59 = arith.constant dense<0.000000e+00> : vector<12x128xf32>
    %75 = tpu.matmul %72, %74, %cst_59 {dimension_numbers = #tpu.dot_dimension_numbers<[1], [0], [0], [1], [0, 0, 1, 1], [], []>} : vector<12x32xf32>, vector<32x128xf32>, vector<12x128xf32> -> vector<12x128xf32>
    %76 = vector.extract_strided_slice %75 {offsets = [0, 0], sizes = [12, 32], strides = [1, 1]} : vector<12x128xf32> to vector<12x32xf32>
    %c3 = arith.constant 3 : index
    %c0_60 = arith.constant 0 : index
    %c0_61 = arith.constant 0 : index
    %77 = vector.load %arg1[%c3, %c0_60, %c0_61] : memref<6x12x12xf32, #tpu.memory_space<vmem>>, vector<1x12x12xf32>
    %78 = vector.shape_cast %77 : vector<1x12x12xf32> to vector<12x12xf32>
    %79 = vector.extract_strided_slice %75 {offsets = [0, 32], sizes = [12, 32], strides = [1, 1]} : vector<12x128xf32> to vector<12x32xf32>
    %cst_62 = arith.constant dense<0.000000e+00> : vector<12x32xf32>
    %80 = tpu.matmul %78, %79, %cst_62 {dimension_numbers = #tpu.dot_dimension_numbers<[1], [0], [0], [1], [0, 0, 1, 1], [], []>} : vector<12x12xf32>, vector<12x32xf32>, vector<12x32xf32> -> vector<12x32xf32>
    %81 = arith.addf %76, %80 : vector<12x32xf32>
    %c4 = arith.constant 4 : index
    %c0_63 = arith.constant 0 : index
    %c0_64 = arith.constant 0 : index
    %82 = vector.load %arg1[%c4, %c0_63, %c0_64] : memref<6x12x12xf32, #tpu.memory_space<vmem>>, vector<1x12x12xf32>
    %83 = vector.shape_cast %82 : vector<1x12x12xf32> to vector<12x12xf32>
    %84 = vector.extract_strided_slice %75 {offsets = [0, 64], sizes = [12, 32], strides = [1, 1]} : vector<12x128xf32> to vector<12x32xf32>
    %cst_65 = arith.constant dense<0.000000e+00> : vector<12x32xf32>
    %85 = tpu.matmul %83, %84, %cst_65 {dimension_numbers = #tpu.dot_dimension_numbers<[1], [0], [0], [1], [0, 0, 1, 1], [], []>} : vector<12x12xf32>, vector<12x32xf32>, vector<12x32xf32> -> vector<12x32xf32>
    %86 = arith.addf %81, %85 : vector<12x32xf32>
    %c5 = arith.constant 5 : index
    %c0_66 = arith.constant 0 : index
    %c0_67 = arith.constant 0 : index
    %87 = vector.load %arg1[%c5, %c0_66, %c0_67] : memref<6x12x12xf32, #tpu.memory_space<vmem>>, vector<1x12x12xf32>
    %88 = vector.shape_cast %87 : vector<1x12x12xf32> to vector<12x12xf32>
    %89 = vector.extract_strided_slice %75 {offsets = [0, 96], sizes = [12, 32], strides = [1, 1]} : vector<12x128xf32> to vector<12x32xf32>
    %cst_68 = arith.constant dense<0.000000e+00> : vector<12x32xf32>
    %90 = tpu.matmul %88, %89, %cst_68 {dimension_numbers = #tpu.dot_dimension_numbers<[1], [0], [0], [1], [0, 0, 1, 1], [], []>} : vector<12x12xf32>, vector<12x32xf32>, vector<12x32xf32> -> vector<12x32xf32>
    %91 = arith.addf %86, %90 : vector<12x32xf32>
    %c2_69 = arith.constant 2 : index
    %c0_70 = arith.constant 0 : index
    %c0_71 = arith.constant 0 : index
    %92 = vector.load %arg3[%c2_69, %c0_70, %c0_71] : memref<4x1x32xf32, #tpu.memory_space<vmem>>, vector<1x1x32xf32>
    %93 = vector.shape_cast %92 : vector<1x1x32xf32> to vector<1x32xf32>
    %94 = vector.broadcast %93 : vector<1x32xf32> to vector<12x32xf32>
    %95 = arith.addf %91, %94 : vector<12x32xf32>
    %96 = arith.addf %95, %72 : vector<12x32xf32>
    %cst_72 = arith.constant 0.000000e+00 : f32
    %97 = vector.broadcast %cst_72 : f32 to vector<12x32xf32>
    %98 = arith.maximumf %96, %97 : vector<12x32xf32>
    %c3_73 = arith.constant 3 : index
    %c0_74 = arith.constant 0 : index
    %c0_75 = arith.constant 0 : index
    %99 = vector.load %arg2[%c3_73, %c0_74, %c0_75] : memref<4x32x128xf32, #tpu.memory_space<vmem>>, vector<1x32x128xf32>
    %100 = vector.shape_cast %99 : vector<1x32x128xf32> to vector<32x128xf32>
    %cst_76 = arith.constant dense<0.000000e+00> : vector<12x128xf32>
    %101 = tpu.matmul %98, %100, %cst_76 {dimension_numbers = #tpu.dot_dimension_numbers<[1], [0], [0], [1], [0, 0, 1, 1], [], []>} : vector<12x32xf32>, vector<32x128xf32>, vector<12x128xf32> -> vector<12x128xf32>
    %102 = vector.extract_strided_slice %101 {offsets = [0, 0], sizes = [12, 32], strides = [1, 1]} : vector<12x128xf32> to vector<12x32xf32>
    %c3_77 = arith.constant 3 : index
    %c0_78 = arith.constant 0 : index
    %c0_79 = arith.constant 0 : index
    %103 = vector.load %arg1[%c3_77, %c0_78, %c0_79] : memref<6x12x12xf32, #tpu.memory_space<vmem>>, vector<1x12x12xf32>
    %104 = vector.shape_cast %103 : vector<1x12x12xf32> to vector<12x12xf32>
    %105 = vector.extract_strided_slice %101 {offsets = [0, 32], sizes = [12, 32], strides = [1, 1]} : vector<12x128xf32> to vector<12x32xf32>
    %cst_80 = arith.constant dense<0.000000e+00> : vector<12x32xf32>
    %106 = tpu.matmul %104, %105, %cst_80 {dimension_numbers = #tpu.dot_dimension_numbers<[1], [0], [0], [1], [0, 0, 1, 1], [], []>} : vector<12x12xf32>, vector<12x32xf32>, vector<12x32xf32> -> vector<12x32xf32>
    %107 = arith.addf %102, %106 : vector<12x32xf32>
    %c4_81 = arith.constant 4 : index
    %c0_82 = arith.constant 0 : index
    %c0_83 = arith.constant 0 : index
    %108 = vector.load %arg1[%c4_81, %c0_82, %c0_83] : memref<6x12x12xf32, #tpu.memory_space<vmem>>, vector<1x12x12xf32>
    %109 = vector.shape_cast %108 : vector<1x12x12xf32> to vector<12x12xf32>
    %110 = vector.extract_strided_slice %101 {offsets = [0, 64], sizes = [12, 32], strides = [1, 1]} : vector<12x128xf32> to vector<12x32xf32>
    %cst_84 = arith.constant dense<0.000000e+00> : vector<12x32xf32>
    %111 = tpu.matmul %109, %110, %cst_84 {dimension_numbers = #tpu.dot_dimension_numbers<[1], [0], [0], [1], [0, 0, 1, 1], [], []>} : vector<12x12xf32>, vector<12x32xf32>, vector<12x32xf32> -> vector<12x32xf32>
    %112 = arith.addf %107, %111 : vector<12x32xf32>
    %c5_85 = arith.constant 5 : index
    %c0_86 = arith.constant 0 : index
    %c0_87 = arith.constant 0 : index
    %113 = vector.load %arg1[%c5_85, %c0_86, %c0_87] : memref<6x12x12xf32, #tpu.memory_space<vmem>>, vector<1x12x12xf32>
    %114 = vector.shape_cast %113 : vector<1x12x12xf32> to vector<12x12xf32>
    %115 = vector.extract_strided_slice %101 {offsets = [0, 96], sizes = [12, 32], strides = [1, 1]} : vector<12x128xf32> to vector<12x32xf32>
    %cst_88 = arith.constant dense<0.000000e+00> : vector<12x32xf32>
    %116 = tpu.matmul %114, %115, %cst_88 {dimension_numbers = #tpu.dot_dimension_numbers<[1], [0], [0], [1], [0, 0, 1, 1], [], []>} : vector<12x12xf32>, vector<12x32xf32>, vector<12x32xf32> -> vector<12x32xf32>
    %117 = arith.addf %112, %116 : vector<12x32xf32>
    %c3_89 = arith.constant 3 : index
    %c0_90 = arith.constant 0 : index
    %c0_91 = arith.constant 0 : index
    %118 = vector.load %arg3[%c3_89, %c0_90, %c0_91] : memref<4x1x32xf32, #tpu.memory_space<vmem>>, vector<1x1x32xf32>
    %119 = vector.shape_cast %118 : vector<1x1x32xf32> to vector<1x32xf32>
    %120 = vector.broadcast %119 : vector<1x32xf32> to vector<12x32xf32>
    %121 = arith.addf %117, %120 : vector<12x32xf32>
    %122 = arith.addf %121, %98 : vector<12x32xf32>
    %cst_92 = arith.constant 0.000000e+00 : f32
    %123 = vector.broadcast %cst_92 : f32 to vector<12x32xf32>
    %124 = arith.maximumf %122, %123 : vector<12x32xf32>
    %c1_93 = arith.constant 1 : index
    %c0_94 = arith.constant 0 : index
    %c0_95 = arith.constant 0 : index
    %125 = vector.load %arg4[%c1_93, %c0_94, %c0_95] : memref<2x2x12xf32, #tpu.memory_space<vmem>>, vector<1x2x12xf32>
    %126 = vector.shape_cast %125 : vector<1x2x12xf32> to vector<2x12xf32>
    %cst_96 = arith.constant dense<0.000000e+00> : vector<2x32xf32>
    %127 = tpu.matmul %126, %124, %cst_96 {dimension_numbers = #tpu.dot_dimension_numbers<[1], [0], [0], [1], [0, 0, 1, 1], [], []>} : vector<2x12xf32>, vector<12x32xf32>, vector<2x32xf32> -> vector<2x32xf32>
    %128 = arith.truncf %70 : vector<2x32xf32> to vector<2x32xbf16>
    %129 = arith.truncf %127 : vector<2x32xf32> to vector<2x32xbf16>
    %c0_i32_97 = arith.constant 0 : i32
    %c0_i32_98 = arith.constant 0 : i32
    %c0_i32_99 = arith.constant 0 : i32
    %130 = tpu.memref_slice %arg5[%c0_i32_98, %c0_i32_99] : memref<848x768xbf16, #tpu.memory_space<any>> -> memref<80x768xbf16, #tpu.memory_space<any>>
    %c0_i32_100 = arith.constant 0 : i32
    %c0_i32_101 = arith.constant 0 : i32
    %131 = tpu.memref_slice %arg8[%c0_i32_100, %c0_i32_101] : memref<848x768xbf16, #tpu.memory_space<vmem>> -> memref<80x768xbf16, #tpu.memory_space<vmem>>
    %132 = tpu.memref_slice %arg10[%c0_i32_97] : memref<4x!tpu.dma_semaphore, #tpu.memory_space<semaphore_mem>> -> memref<1x!tpu.dma_semaphore, #tpu.memory_space<semaphore_mem>>
    %133 = tpu.memref_squeeze %132 : memref<1x!tpu.dma_semaphore, #tpu.memory_space<semaphore_mem>> -> memref<!tpu.dma_semaphore, #tpu.memory_space<semaphore_mem>>
    tpu.wait_dma2 semaphore(%133 : memref<!tpu.dma_semaphore, #tpu.memory_space<semaphore_mem>>) src(%130 : memref<80x768xbf16, #tpu.memory_space<any>>) dst(%131 : memref<80x768xbf16, #tpu.memory_space<vmem>>)
    %c0_102 = arith.constant 0 : index
    %c0_103 = arith.constant 0 : index
    %134 = vector.load %arg8[%c0_102, %c0_103] : memref<848x768xbf16, #tpu.memory_space<vmem>>, vector<32x768xbf16>
    %cst_104 = arith.constant dense<0.000000e+00> : vector<2x768xf32>
    %135 = tpu.matmul %128, %134, %cst_104 {dimension_numbers = #tpu.dot_dimension_numbers<[1], [0], [0], [1], [0, 0, 1, 1], [], []>} : vector<2x32xbf16>, vector<32x768xbf16>, vector<2x768xf32> -> vector<2x768xf32>
    %c32 = arith.constant 32 : index
    %c0_105 = arith.constant 0 : index
    %136 = vector.load %arg8[%c32, %c0_105] : memref<848x768xbf16, #tpu.memory_space<vmem>>, vector<32x768xbf16>
    %cst_106 = arith.constant dense<0.000000e+00> : vector<2x768xf32>
    %137 = tpu.matmul %129, %136, %cst_106 {dimension_numbers = #tpu.dot_dimension_numbers<[1], [0], [0], [1], [0, 0, 1, 1], [], []>} : vector<2x32xbf16>, vector<32x768xbf16>, vector<2x768xf32> -> vector<2x768xf32>
    %138 = arith.addf %135, %137 : vector<2x768xf32>
    %c64 = arith.constant 64 : index
    %c0_107 = arith.constant 0 : index
    %139 = vector.load %arg8[%c64, %c0_107] : memref<848x768xbf16, #tpu.memory_space<vmem>>, vector<1x768xbf16>
    %140 = arith.extf %139 : vector<1x768xbf16> to vector<1x768xf32>
    %141 = vector.broadcast %140 : vector<1x768xf32> to vector<2x768xf32>
    %142 = arith.addf %138, %141 : vector<2x768xf32>
    %cst_108 = arith.constant 0.000000e+00 : f32
    %143 = vector.broadcast %cst_108 : f32 to vector<2x768xf32>
    %144 = arith.maximumf %142, %143 : vector<2x768xf32>
    %145 = arith.truncf %144 : vector<2x768xf32> to vector<2x768xbf16>
    %c1_i32_109 = arith.constant 1 : i32
    %c80_i32_110 = arith.constant 80 : i32
    %c0_i32_111 = arith.constant 0 : i32
    %146 = tpu.memref_slice %arg5[%c80_i32_110, %c0_i32_111] : memref<848x768xbf16, #tpu.memory_space<any>> -> memref<384x768xbf16, #tpu.memory_space<any>>
    %c80_i32_112 = arith.constant 80 : i32
    %c0_i32_113 = arith.constant 0 : i32
    %147 = tpu.memref_slice %arg8[%c80_i32_112, %c0_i32_113] : memref<848x768xbf16, #tpu.memory_space<vmem>> -> memref<384x768xbf16, #tpu.memory_space<vmem>>
    %148 = tpu.memref_slice %arg10[%c1_i32_109] : memref<4x!tpu.dma_semaphore, #tpu.memory_space<semaphore_mem>> -> memref<1x!tpu.dma_semaphore, #tpu.memory_space<semaphore_mem>>
    %149 = tpu.memref_squeeze %148 : memref<1x!tpu.dma_semaphore, #tpu.memory_space<semaphore_mem>> -> memref<!tpu.dma_semaphore, #tpu.memory_space<semaphore_mem>>
    tpu.wait_dma2 semaphore(%149 : memref<!tpu.dma_semaphore, #tpu.memory_space<semaphore_mem>>) src(%146 : memref<384x768xbf16, #tpu.memory_space<any>>) dst(%147 : memref<384x768xbf16, #tpu.memory_space<vmem>>)
    %150 = vector.extract_strided_slice %145 {offsets = [0, 0], sizes = [2, 384], strides = [1, 1]} : vector<2x768xbf16> to vector<2x384xbf16>
    %c80 = arith.constant 80 : index
    %c0_114 = arith.constant 0 : index
    %151 = vector.load %arg8[%c80, %c0_114] : memref<848x768xbf16, #tpu.memory_space<vmem>>, vector<384x768xbf16>
    %cst_115 = arith.constant dense<0.000000e+00> : vector<2x768xf32>
    %152 = tpu.matmul %150, %151, %cst_115 {dimension_numbers = #tpu.dot_dimension_numbers<[1], [0], [0], [1], [0, 0, 1, 1], [], []>} : vector<2x384xbf16>, vector<384x768xbf16>, vector<2x768xf32> -> vector<2x768xf32>
    %c2_i32_116 = arith.constant 2 : i32
    %c464_i32_117 = arith.constant 464 : i32
    %c0_i32_118 = arith.constant 0 : i32
    %153 = tpu.memref_slice %arg5[%c464_i32_117, %c0_i32_118] : memref<848x768xbf16, #tpu.memory_space<any>> -> memref<384x768xbf16, #tpu.memory_space<any>>
    %c464_i32_119 = arith.constant 464 : i32
    %c0_i32_120 = arith.constant 0 : i32
    %154 = tpu.memref_slice %arg8[%c464_i32_119, %c0_i32_120] : memref<848x768xbf16, #tpu.memory_space<vmem>> -> memref<384x768xbf16, #tpu.memory_space<vmem>>
    %155 = tpu.memref_slice %arg10[%c2_i32_116] : memref<4x!tpu.dma_semaphore, #tpu.memory_space<semaphore_mem>> -> memref<1x!tpu.dma_semaphore, #tpu.memory_space<semaphore_mem>>
    %156 = tpu.memref_squeeze %155 : memref<1x!tpu.dma_semaphore, #tpu.memory_space<semaphore_mem>> -> memref<!tpu.dma_semaphore, #tpu.memory_space<semaphore_mem>>
    tpu.wait_dma2 semaphore(%156 : memref<!tpu.dma_semaphore, #tpu.memory_space<semaphore_mem>>) src(%153 : memref<384x768xbf16, #tpu.memory_space<any>>) dst(%154 : memref<384x768xbf16, #tpu.memory_space<vmem>>)
    %157 = vector.extract_strided_slice %145 {offsets = [0, 384], sizes = [2, 384], strides = [1, 1]} : vector<2x768xbf16> to vector<2x384xbf16>
    %c464 = arith.constant 464 : index
    %c0_121 = arith.constant 0 : index
    %158 = vector.load %arg8[%c464, %c0_121] : memref<848x768xbf16, #tpu.memory_space<vmem>>, vector<384x768xbf16>
    %cst_122 = arith.constant dense<0.000000e+00> : vector<2x768xf32>
    %159 = tpu.matmul %157, %158, %cst_122 {dimension_numbers = #tpu.dot_dimension_numbers<[1], [0], [0], [1], [0, 0, 1, 1], [], []>} : vector<2x384xbf16>, vector<384x768xbf16>, vector<2x768xf32> -> vector<2x768xf32>
    %160 = arith.addf %152, %159 : vector<2x768xf32>
    %c65 = arith.constant 65 : index
    %c0_123 = arith.constant 0 : index
    %161 = vector.load %arg8[%c65, %c0_123] : memref<848x768xbf16, #tpu.memory_space<vmem>>, vector<1x768xbf16>
    %162 = arith.extf %161 : vector<1x768xbf16> to vector<1x768xf32>
    %163 = vector.broadcast %162 : vector<1x768xf32> to vector<2x768xf32>
    %164 = arith.addf %160, %163 : vector<2x768xf32>
    %cst_124 = arith.constant 0.000000e+00 : f32
    %165 = vector.broadcast %cst_124 : f32 to vector<2x768xf32>
    %166 = arith.maximumf %164, %165 : vector<2x768xf32>
    %c3_i32_125 = arith.constant 3 : i32
    %167 = tpu.memref_slice %arg10[%c3_i32_125] : memref<4x!tpu.dma_semaphore, #tpu.memory_space<semaphore_mem>> -> memref<1x!tpu.dma_semaphore, #tpu.memory_space<semaphore_mem>>
    %168 = tpu.memref_squeeze %167 : memref<1x!tpu.dma_semaphore, #tpu.memory_space<semaphore_mem>> -> memref<!tpu.dma_semaphore, #tpu.memory_space<semaphore_mem>>
    tpu.wait_dma2 semaphore(%168 : memref<!tpu.dma_semaphore, #tpu.memory_space<semaphore_mem>>) src(%arg6 : memref<776x128xf32, #tpu.memory_space<any>>) dst(%arg9 : memref<776x128xf32, #tpu.memory_space<vmem>>)
    %c0_126 = arith.constant 0 : index
    %c0_127 = arith.constant 0 : index
    %169 = vector.load %arg9[%c0_126, %c0_127] : memref<776x128xf32, #tpu.memory_space<vmem>>, vector<768x128xf32>
    %cst_128 = arith.constant dense<0.000000e+00> : vector<2x128xf32>
    %170 = tpu.matmul %166, %169, %cst_128 {dimension_numbers = #tpu.dot_dimension_numbers<[1], [0], [0], [1], [0, 0, 1, 1], [], []>} : vector<2x768xf32>, vector<768x128xf32>, vector<2x128xf32> -> vector<2x128xf32>
    %c768 = arith.constant 768 : index
    %c0_129 = arith.constant 0 : index
    %171 = vector.load %arg9[%c768, %c0_129] : memref<776x128xf32, #tpu.memory_space<vmem>>, vector<1x128xf32>
    %172 = vector.broadcast %171 : vector<1x128xf32> to vector<2x128xf32>
    %173 = arith.addf %170, %172 : vector<2x128xf32>
    %c0_130 = arith.constant 0 : index
    %c0_131 = arith.constant 0 : index
    %174 = vector.load %arg7[%c0_130, %c0_131] : memref<2x128xf32, #tpu.memory_space<vmem>>, vector<2x128xf32>
    tpu.vector_store %arg7[%c0_130, %c0_131], %173 {strides = array<i32>} : memref<2x128xf32, #tpu.memory_space<vmem>>, vector<2x128xf32>,
    return
  }
}

</mosaic_0001>

<bundles_post_ra>
// kernel: tpu_custom_call.1
= control target key start
LH: loop header
LB: loop body
LE: loop exit
PB: predicated region body
PF: predicated region fallthrough
CT: control target
= control target key end

     0   :  { %12 = vsyncpa [#allocation6], 0  ;;  %s5079_s0 = inlined_call_operand.vmem [shape: f32[2,12,32], index: 0, kind: input, shape index: {}]   ;;  %s5080_s1 = inlined_call_operand.hbm [shape: f32[6,12,12], index: 1, kind: input, shape index: {}]   ;;  %s5081_s2 = inlined_call_operand.hbm [shape: f32[4,32,128], index: 2, kind: input, shape index: {}]   ;;  %s5082_s3 = inlined_call_operand.hbm [shape: f32[4,1,32], index: 3, kind: input, shape index: {}]   ;;  %s5083_s4 = inlined_call_operand.hbm [shape: f32[2,2,12], index: 4, kind: input, shape index: {}]   ;;  %s5084_s5 = inlined_call_operand.hbm [shape: bf16[848,768], index: 5, kind: input, shape index: {}]   ;;  %s5085_s6 = inlined_call_operand.hbm [shape: f32[776,128], index: 6, kind: input, shape index: {}]   ;;  %s5086_s7 = inlined_call_operand.hbm [shape: f32[2,128], index: 7, kind: output, shape index: {}]  }
   0x1   :  { %13 = vsyncpa [#allocation9], 0 }
   0x2   :  { %14 = vsyncpa [#allocation12], 0 }
   0x3   :  { %15 = vsyncpa [#allocation7], 0  ;;  %s4227_s24 = smov [#allocation8]   ;;  %s4228_s26 = smov [#allocation5]  }
   0x4   :  { %s35_s25 = sshll.u32 %s4227_s24, 4  ;;  %s23_s27 = sshll.u32 %s4228_s26, 4  ;;  %s36_s25 = int_to_ptr.vmem [resolvable:$true] %s35_s25  ;;  %s4299_s27 = int_to_ptr.vmem [resolvable:$true] %s23_s27 }
   0x5   :  { %s4079_s30 = scalar_lea.hbm %s5081_s2, 2048 }
   0x6   :  { %p4080_p0 = scmp.ne.s32.totalorder %s5081_s2, %s4079_s30  ;;  %p4083_p1 = scmp.lt.u32.totalorder %s4079_s30, %s5081_s2 }
   0x8   :  { %p4085_p2 = pnand %p4083_p1, %p4080_p0 }
   0xa   :  { %4088 = shalt.err (!%p4085_p2)
}
   0xb   :  { %s4089_s12 = scalar_lea.vmem %s36_s25, 2048  ;;  %p4094_p4 = scmp.lt.s32.totalorder %s36_s25, %s36_s25 }
   0xc   :  { %p4090_p3 = scmp.ne.s32.totalorder %s36_s25, %s4089_s12  ;;  %p4095_p5 = scmp.lt.s32.totalorder %s4089_s12, %s4089_s12 }
   0xe   :  { %p4096_p6 = por %p4095_p5, %p4094_p4 }
  0x10   :  { %p4097_p7 = pnand %p4096_p6, %p4090_p3 }
  0x12   :  { %4100 = shalt.err (!%p4097_p7)
}
  0x13   :  { %s4229_s13 = smov 128   ;;  %s4230_s14 = smov 8  }
  0x14   :  { %41 = dma.hbm_to_vmem [thread:$0]  %s5081_s2, 2048, %s36_s25, [#allocation9], %s4229_s13, %s4229_s13, %s4230_s14  }
  0x15   :  { %s4101_s19 = scalar_lea.hbm %s5080_s1, 1536 }
  0x16   :  { %p4102_p8 = scmp.ne.s32.totalorder %s5080_s1, %s4101_s19  ;;  %p4105_p9 = scmp.lt.u32.totalorder %s4101_s19, %s5080_s1 }
  0x18   :  { %p4107_p10 = pnand %p4105_p9, %p4102_p8 }
  0x1a   :  { %4110 = shalt.err (!%p4107_p10)
}
  0x1b   :  { %s4111_s24 = scalar_lea.vmem %s4299_s27, 1536  ;;  %p4116_p12 = scmp.lt.s32.totalorder %s4299_s27, %s4299_s27 }
  0x1c   :  { %p4112_p11 = scmp.ne.s32.totalorder %s4299_s27, %s4111_s24  ;;  %p4117_p13 = scmp.lt.s32.totalorder %s4111_s24, %s4111_s24 }
  0x1e   :  { %p4118_p0 = por %p4117_p13, %p4116_p12 }
  0x20   :  { %p4119_p1 = pnand %p4118_p0, %p4112_p11 }
  0x22   :  { %4122 = shalt.err (!%p4119_p1)
}
  0x23   :  { %29 = dma.hbm_to_vmem [thread:$0]  %s5080_s1, 1536, %s4299_s27, [#allocation6], %s4229_s13, %s4229_s13, %s4230_s14  }
  0x24   :  { %s4231_s26 = smov [#allocation10]   ;;  %s4123_s8 = scalar_lea.hbm %s5082_s3, 64 }
  0x25   :  { %s47_s28 = sshll.u32 %s4231_s26, 4  ;;  %p4124_p2 = scmp.ne.s32.totalorder %s5082_s3, %s4123_s8  ;;  %s48_s28 = int_to_ptr.vmem [resolvable:$true] %s47_s28 }
  0x26   :  { %p4127_p3 = scmp.lt.u32.totalorder %s4123_s8, %s5082_s3 }
  0x28   :  { %p4129_p4 = pnand %p4127_p3, %p4124_p2 }
  0x2a   :  { %4132 = shalt.err (!%p4129_p4)
}
  0x2b   :  { %s4133_s15 = scalar_lea.vmem %s48_s28, 64  ;;  %p4138_p6 = scmp.lt.s32.totalorder %s48_s28, %s48_s28 }
  0x2c   :  { %p4134_p5 = scmp.ne.s32.totalorder %s48_s28, %s4133_s15  ;;  %p4139_p7 = scmp.lt.s32.totalorder %s4133_s15, %s4133_s15 }
  0x2e   :  { %p4140_p8 = por %p4139_p7, %p4138_p6 }
  0x30   :  { %p4141_p9 = pnand %p4140_p8, %p4134_p5 }
  0x32   :  { %4144 = shalt.err (!%p4141_p9)
}
  0x33   :  { %s4232_s1 = smov 16   ;;  %s4233_s27 = smov 1  }
  0x34   :  { %53 = dma.hbm_to_vmem [thread:$0]  %s5082_s3, 64, %s48_s28, [#allocation9], %s4232_s1, %s4232_s1, %s4233_s27  }
  0x35   :  { %s4234_s17 = smov [#allocation11]   ;;  %s4145_s21 = scalar_lea.hbm %s5083_s4, 64 }
  0x36   :  { %s59_s18 = sshll.u32 %s4234_s17, 4  ;;  %p4146_p10 = scmp.ne.s32.totalorder %s5083_s4, %s4145_s21  ;;  %s60_s18 = int_to_ptr.vmem [resolvable:$true] %s59_s18 }
  0x37   :  { %p4149_p11 = scmp.lt.u32.totalorder %s4145_s21, %s5083_s4 }
  0x39   :  { %p4151_p12 = pnand %p4149_p11, %p4146_p10 }
  0x3b   :  { %4154 = shalt.err (!%p4151_p12)
}
  0x3c   :  { %s4155_s25 = scalar_lea.vmem %s60_s18, 64  ;;  %p4160_p0 = scmp.lt.s32.totalorder %s60_s18, %s60_s18 }
  0x3d   :  { %p4156_p13 = scmp.ne.s32.totalorder %s60_s18, %s4155_s25  ;;  %p4161_p1 = scmp.lt.s32.totalorder %s4155_s25, %s4155_s25 }
  0x3f   :  { %p4162_p2 = por %p4161_p1, %p4160_p0 }
  0x41   :  { %p4163_p3 = pnand %p4162_p2, %p4156_p13 }
  0x43   :  { %4166 = shalt.err (!%p4163_p3)
}
  0x44   :  { %s4235_s3 = smov 32   ;;  %s4236_s26 = smov 2  }
  0x45   :  { %65 = dma.hbm_to_vmem [thread:$0]  %s5083_s4, 64, %s60_s18, [#allocation12], %s4235_s3, %s4235_s3, %s4236_s26  }
  0x46   :  { %4211 = dma.done.wait [#allocation6], 1536  }
  0x47   :  { %4212 = vsyncadd [#allocation6], 4294965760 }
  0x48   :  { %4213 = dma.done.wait [#allocation9], 2112  }
  0x49   :  { %4214 = vsyncadd [#allocation9], 4294965184 }
  0x4a   :  { %4215 = dma.done.wait [#allocation12], 64  }
  0x4b   :  { %4216 = vsyncadd [#allocation12], 4294967232  ;;  %s83_s30 = sld [smem:[#allocation0]]   ;;  %s4237_s8 = smov 768   ;;  %vm206_vm0 = vcmask 261120   ;;  %vm297_vm1 = vcmask 97280  }
  0x4c   :  { %95 = sst [smem:[#allocation15]] %s4237_s8  ;;  %s4238_s9 = smov 64   ;;  %vm304_vm2 = vcmask 1043456   ;;  %vm4252_vm3 = vmmov 1   ;;  %vm4254_vm5 = vmmov 0  }
  0x4d   :  { %97 = sst [smem:[#allocation15 + $0x1]] %s4237_s8  ;;  %s4239_s10 = smov [#allocation2]   ;;  %vm4424_vm4 = vmpackc.low %vm304_vm2, %vm4252_vm3 }
  0x4e   :  { %101 = sst [smem:[#allocation15 + $0x3]] %s4238_s9  ;;  %s91_s11 = sshll.u32 %s4239_s10, 4  ;;  %s92_s11 = int_to_ptr.vmem [resolvable:$true] %s91_s11 }
  0x4f   :  { %103 = sst [smem:[#allocation15 + $0x4]] %s4229_s13  ;;  %s4240_s12 = smov 6  }
  0x50   :  { %105 = sst [smem:[#allocation15 + $0x5]] %s4236_s26  ;;  %s4241_s1 = smov 384  }
  0x51   :  { %109 = sst [smem:[#allocation15 + $0x7]] %s4238_s9  ;;  %s3359_s4 = sshll.u32 %s83_s30, 26 }
  0x52   :  { %99 = sst [smem:[#allocation15 + $0x2]] %s4240_s12  ;;  %s4368_s15 = sadd.s32 134217728, %s3359_s4 }
  0x53   :  { %107 = sst [smem:[#allocation15 + $0x6]] %s4241_s1  ;;  %s4242_s27 = smov 4  }
  0x54   :  { %111 = sst [smem:[#allocation15 + $0x8]] %s4242_s27  ;;  %s4243_s14 = smov [#allocation4]  }
  0x55   :  { %s4244_s16 = smov [#allocation14]   ;;  %s4245_s19 = smov [#allocation2 + $0xf0]  }
  0x56   :  { %113 = dma.general %s5084_s5, 3840, %s92_s11, %s4243_s14, %s4244_s16, [#allocation15], %s4368_s15, 0  }
  0x57   :  { %132 = sst [smem:[#allocation17]] %s4237_s8  ;;  %s128_s20 = sshll.u32 %s4245_s19, 4  ;;  %s129_s20 = int_to_ptr.vmem [resolvable:$true] %s128_s20 }
  0x58   :  { %134 = sst [smem:[#allocation17 + $0x1]] %s4237_s8  ;;  %s114_s23 = scalar_lea.hbm %s5084_s5, 3840 }
  0x59   :  { %136 = sst [smem:[#allocation17 + $0x2]] %s4240_s12  ;;  %s4246_s24 = smov [#allocation4 + $0x1]  }
  0x5a   :  { %138 = sst [smem:[#allocation17 + $0x3]] %s4238_s9  ;;  %s4247_s2 = smov [#allocation16]  }
  0x5b   :  { %140 = sst [smem:[#allocation17 + $0x4]] %s4229_s13  ;;  %s4248_s25 = smov [#allocation2 + $0x570]  }
  0x5c   :  { %142 = sst [smem:[#allocation17 + $0x5]] %s4236_s26  ;;  %s165_s28 = sshll.u32 %s4248_s25, 4  ;;  %s166_s28 = int_to_ptr.vmem [resolvable:$true] %s165_s28 }
  0x5d   :  { %144 = sst [smem:[#allocation17 + $0x6]] %s4241_s1  ;;  %s151_s10 = scalar_lea.hbm %s5084_s5, 22272 }
  0x5e   :  { %146 = sst [smem:[#allocation17 + $0x7]] %s4238_s9  ;;  %s4250_s11 = smov [#allocation18]  }
  0x5f   :  { %148 = sst [smem:[#allocation17 + $0x8]] %s4242_s27  ;;  %s4167_s17 = scalar_lea.hbm %s5085_s6, 12416 }
  0x60   :  { %150 = dma.general %s114_s23, 18432, %s129_s20, %s4246_s24, %s4247_s2, [#allocation17], %s4368_s15, 0  }
  0x61   :  { %169 = sst [smem:[#allocation19]] %s4237_s8  ;;  %p4168_p4 = scmp.ne.s32.totalorder %s5085_s6, %s4167_s17 }
  0x62   :  { %171 = sst [smem:[#allocation19 + $0x1]] %s4237_s8  ;;  %s4249_s8 = smov [#allocation4 + $0x2]  }
  0x63   :  { %173 = sst [smem:[#allocation19 + $0x2]] %s4240_s12  ;;  %s4251_s12 = smov 96  }
  0x64   :  { %175 = sst [smem:[#allocation19 + $0x3]] %s4238_s9  ;;  %p4171_p5 = scmp.lt.u32.totalorder %s4167_s17, %s5085_s6 }
  0x65   :  { %177 = sst [smem:[#allocation19 + $0x4]] %s4229_s13 }
  0x66   :  { %179 = sst [smem:[#allocation19 + $0x5]] %s4236_s26  ;;  %p4173_p6 = pnand %p4171_p5, %p4168_p4 }
  0x67   :  { %181 = sst [smem:[#allocation19 + $0x6]] %s4241_s1 }
  0x68   :  { %183 = sst [smem:[#allocation19 + $0x7]] %s4238_s9 }
  0x69   :  { %185 = sst [smem:[#allocation19 + $0x8]] %s4242_s27 }
  0x6a   :  { %187 = dma.general %s151_s10, 18432, %s166_s28, %s4249_s8, %s4250_s11, [#allocation19], %s4368_s15, 0  }
  0x6b   :  { %v202_v0 = vld [vmem:[#allocation8] sm:$0xff]  ;;  %v203_v1 = vld [vmem:[#allocation8 + $0x8] sm:$0xff]  ;;  %v204_v2 = vld [vmem:[#allocation8 + $0x10] sm:$0xff] }
  0x6c   :  { %v3755_v3 = vpack.c.bf16 %v203_v1, %v202_v0  ;;  %v205_v4 = vld [vmem:[#allocation8 + $0x18] sm:$0xff]  ;;  %v4405_v5 = vld [vmem:[%s5079_s0] sm:$0xff]  ;;  %v4412_v7 = vld [vmem:[%s5079_s0 + $0x8] sm:$0xf] }
  0x6d   :  { %v3759_v6 = vpack.c.bf16 %v205_v4, %v204_v2  ;;  %3621 = vmatprep.mubr.msk.f32.mxu0 %vm206_vm0, %v4405_v5  ;;  %v4416_v8 = vld [vmem:[#allocation5 + $0x10] sm:$0xff]  ;;  %v288_v10 = vld [vmem:[#allocation5] sm:$0xff]  ;;  %v4432_v25 = vld [vmem:[#allocation5 + $0x18] sm:$0xf]  ;;  %v4253_v2 = vmov 0.0|0.0  }
  0x6e   :  { %3756 = vmatprep.subr.bf16.mxu0 %v3755_v3  ;;  %3635 = vmatprep.mubr.msk.f32.mxu1 %vm297_vm1, %v4416_v8  ;;  %v4436_v27 = vld [vmem:[#allocation5 + $0x20] sm:$0xff]  ;;  %v289_v28 = vld [vmem:[#allocation5 + $0x8] sm:$0xf]  ;;  %v586_v33 = vld [vmem:[#allocation8 + $0x30] sm:$0xff] }
  0x6f   :  { %3758 = vmatpush3.bf16.msra.mxu0 %v3755_v3  ;;  %v479_v29 = vld [vmem:[#allocation5 + $0x28] sm:$0xf]  ;;  %v584_v30 = vld [vmem:[#allocation8 + $0x20] sm:$0xff]  ;;  %v587_v34 = vld [vmem:[#allocation8 + $0x38] sm:$0xff]  ;;  %v4255_v3 = vmov 0.0  }
  0x70   :  { %3760 = vmatprep.subr.bf16.mxu0 %v3759_v6  ;;  %v585_v31 = vld [vmem:[#allocation8 + $0x28] sm:$0xff]  ;;  %v3785_v35 = vpack.c.bf16 %v587_v34, %v586_v33  ;;  %v3376_v41 = vld [vmem:[#allocation10] ss:$0 sm:$0xff] }
  0x71   :  { %v3781_v32 = vpack.c.bf16 %v585_v31, %v584_v30 }
  0x73   :  { %3762 = vmatpush3.bf16.msra.mxu0 %v3759_v6 }
  0x76   :  { %3622 = vmatmul.mubr.msk.f32.vlgmr.msra.gmra.mrb[0].mxu0 %vm206_vm0, %v4412_v7 }
  0x77   :  { %3628 = vmatprep.mubr.msk.f32.mxu0 %vm297_vm1, %v288_v10 }
 0x149   :  { %v3623_v9 = vpop.f32.mrb[0].mxu0 }
 0x14a   :  { %v279_v11 = vpop.f32.mrb[1].mxu0 }
 0x14b   :  { %v4029_v12 = vpack.i.bf16 %v3623_v9, %v279_v11 }
 0x14d   :  { %4030 = vrot.lane.b32.xlu1 %v4029_v12, %s4235_s3  ;;  %4020 = vrot.lane.b32.xlu0 %v4029_v12, %s4238_s9 }
 0x151   :  { %4025 = vrot.lane.b32.xlu0 %v4029_v12, %s4251_s12 }
 0x1bf   :  { %v4031_v13 = vpop.permute.xlu1 %4030  ;;  %v4021_v14 = vpop.permute.xlu0 %4020 }
 0x1c0   :  { %v4033_v15 = vunpack.i.h.bf16 %v4031_v13  ;;  %v4032_v16 = vunpack.i.l.bf16 %v4031_v13  ;;  %v4023_v17 = vunpack.i.h.bf16 %v4021_v14  ;;  %v4022_v18 = vunpack.i.l.bf16 %v4021_v14  ;;  %v1018_v13 = vld [vmem:[#allocation8 + $0x40] sm:$0xff]  ;;  %v1019_v14 = vld [vmem:[#allocation8 + $0x48] sm:$0xff] }
 0x1c2   :  { %v3769_v20 = vpack.c.bf16 %v4023_v17, %v4022_v18  ;;  %v3775_v22 = vpack.c.bf16 %v4033_v15, %v4032_v16  ;;  %v3811_v17 = vpack.c.bf16 %v1019_v14, %v1018_v13 }
 0x1c3   :  { %v4026_v21 = vpop.permute.xlu0 %4025 }
 0x1c4   :  { %v4028_v23 = vunpack.i.h.bf16 %v4026_v21  ;;  %v4027_v24 = vunpack.i.l.bf16 %v4026_v21  ;;  %3771 = vmatprep.subr.msk.bf16.mxu1 %vm4424_vm4, %v3769_v20  ;;  %v1021_v21 = vld [vmem:[#allocation8 + $0x58] sm:$0xff] }
 0x1c5   :  { %3774 = vmatpush3.bf16.msk.msra.mxu1 %vm4424_vm4, %v3769_v20  ;;  %v1020_v20 = vld [vmem:[#allocation8 + $0x50] sm:$0xff] }
 0x1c6   :  { %v3763_v26 = vpack.c.bf16 %v4028_v23, %v4027_v24  ;;  %3777 = vmatprep.subr.msk.bf16.mxu1 %vm4424_vm4, %v3775_v22  ;;  %v3815_v23 = vpack.c.bf16 %v1021_v21, %v1020_v20  ;;  %v4486_v24 = vld [vmem:[%s5079_s0 + $0x10] sm:$0xff]  ;;  %v3416_v20 = vld [vmem:[#allocation10 + $0x3] ss:$0 sm:$0xff] }
 0x1c8   :  { %3765 = vmatprep.subr.msk.bf16.mxu0 %vm4424_vm4, %v3763_v26  ;;  %3636 = vmatmul.mubr.msk.f32.vlgmr.msra.gmra.mrb[0].mxu1 %vm297_vm1, %v4432_v25 }
 0x1c9   :  { %3768 = vmatpush3.bf16.msk.msra.mxu0 %vm4424_vm4, %v3763_v26  ;;  %3780 = vmatpush3.bf16.msk.msra.mxu1 %vm4424_vm4, %v3775_v22  ;;  %v937_v22 = vld [vmem:[#allocation11] sm:$0x3] }
 0x1ca   :  { %3642 = vmatprep.mubr.msk.f32.mxu1 %vm297_vm1, %v4436_v27  ;;  %3782 = vmatprep.subr.bf16.mxu0 %v3781_v32 }
 0x1cc   :  { %3629 = vmatmul.mubr.msk.f32.vlgmr.msra.gmra.mrb[2].mxu0 %vm297_vm1, %v289_v28 }
 0x1cd   :  { %3784 = vmatpush3.bf16.msra.mxu0 %v3781_v32 }
 0x1ce   :  { %3786 = vmatprep.subr.bf16.mxu0 %v3785_v35 }
 0x1d0   :  { %3643 = vmatmul.mubr.msk.f32.vlgmr.msra.gmra.mrb[0].mxu1 %vm297_vm1, %v479_v29 }
 0x1d1   :  { %3660 = vmatprep.mubr.msk.f32.mxu1 %vm297_vm1, %v288_v10  ;;  %3788 = vmatpush3.bf16.msra.mxu0 %v3785_v35 }
 0x1d2   :  { %3807 = vmatprep.subr.bf16.mxu0 %v4253_v2 }
 0x29f   :  { %v3630_v36 = vpop.f32.mrb[2].mxu0 }
 0x2a0   :  { %v383_v37 = vadd.f32 %v3630_v36, %v3623_v9  ;;  %v373_v38 = vpop.f32.mrb[3].mxu0 }
 0x2a1   :  { %v382_v39 = vadd.f32 %v373_v38, %v279_v11 }
 0x2a3   :  { %v3644_v40 = vpop.f32.mrb[0].mxu1 }
 0x2a4   :  { %v3964_v42 = vadd.f32 %v3644_v40, %v383_v37  ;;  %v559_v43 = vpop.f32.mrb[1].mxu1 }
 0x2a5   :  { %v3966_v44 = vadd.f32 %v559_v43, %v382_v39 }
 0x2a6   :  { %v578_v45 = vadd.f32 %v3964_v42, %v3376_v41 }
 0x2a7   :  { %v577_v46 = vadd.f32 %v3966_v44, %v3376_v41  ;;  %v1105_v44 = vld [vmem:[#allocation5 + $0x38] sm:$0xf] }
 0x2a8   :  { %v580_v47 = vadd.f32 %v578_v45, %v4412_v7  ;;  %v1199_v45 = vld [vmem:[#allocation5 + $0x40] sm:$0xff] }
 0x2a9   :  { %v579_v48 = vadd.f32 %v577_v46, %v4405_v5  ;;  %v3388_v5 = vld [vmem:[#allocation10 + $0x1] ss:$0 sm:$0xff] }
 0x2aa   :  { %v582_v50 = vmax.f32 %v580_v47, 0.0  ;;  %v1200_v47 = vld [vmem:[#allocation5 + $0x48] sm:$0xf] }
 0x2ab   :  { %v581_v49 = vmax.f32 %v579_v48, 0.0  ;;  %v1292_v48 = vld [vmem:[#allocation5 + $0x50] sm:$0xff] }
 0x2ad   :  { %3653 = vmatprep.mubr.msk.f32.mxu0 %vm206_vm0, %v581_v49 }
 0x2ae   :  { %3654 = vmatmul.mubr.msk.f32.vlgmr.msra.gmra.mrb[4].mxu0 %vm206_vm0, %v582_v50 }
 0x2af   :  { %3681 = vmatprep.mubr.msk.f32.mxu0 %vm4254_vm5, %v4255_v3 }
 0x381   :  { %v3655_v51 = vpop.f32.mrb[4].mxu0 }
 0x382   :  { %v660_v52 = vpop.f32.mrb[5].mxu0 }
 0x383   :  { %v4039_v53 = vpack.i.bf16 %v3655_v51, %v660_v52 }
 0x385   :  { %4040 = vrot.lane.b32.xlu0 %v4039_v53, %s4238_s9  ;;  %4035 = vrot.lane.b32.xlu1 %v4039_v53, %s4251_s12 }
 0x389   :  { %4045 = vrot.lane.b32.xlu1 %v4039_v53, %s4235_s3  ;;  %v1401_v53 = vld [vmem:[#allocation8 + $0x70] sm:$0xff] }
 0x3f7   :  { %v4041_v54 = vpop.permute.xlu0 %4040  ;;  %v4036_v55 = vpop.permute.xlu1 %4035 }
 0x3f8   :  { %v4043_v56 = vunpack.i.h.bf16 %v4041_v54  ;;  %v4042_v57 = vunpack.i.l.bf16 %v4041_v54  ;;  %v4038_v58 = vunpack.i.h.bf16 %v4036_v55  ;;  %v4037_v59 = vunpack.i.l.bf16 %v4036_v55  ;;  %v1402_v54 = vld [vmem:[#allocation8 + $0x78] sm:$0xff] }
 0x3f9   :  { %v3841_v55 = vpack.c.bf16 %v1402_v54, %v1401_v53 }
 0x3fa   :  { %v3789_v60 = vpack.c.bf16 %v4038_v58, %v4037_v59  ;;  %v3795_v62 = vpack.c.bf16 %v4043_v56, %v4042_v57  ;;  %v3404_v57 = vld [vmem:[#allocation10 + $0x2] ss:$0 sm:$0xff] }
 0x3fb   :  { %v4046_v61 = vpop.permute.xlu1 %4045 }
 0x3fc   :  { %v4048_v63 = vunpack.i.h.bf16 %v4046_v61  ;;  %v4047_v0 = vunpack.i.l.bf16 %v4046_v61  ;;  %3791 = vmatprep.subr.msk.bf16.mxu1 %vm4424_vm4, %v3789_v60 }
 0x3fd   :  { %3794 = vmatpush3.bf16.msk.msra.mxu1 %vm4424_vm4, %v3789_v60 }
 0x3fe   :  { %3797 = vmatprep.subr.msk.bf16.mxu1 %vm4424_vm4, %v3795_v62  ;;  %v3801_v1 = vpack.c.bf16 %v4048_v63, %v4047_v0 }
 0x400   :  { %3661 = vmatmul.mubr.msk.f32.vlgmr.msra.gmra.mrb[2].mxu1 %vm297_vm1, %v289_v28 }
 0x401   :  { %3800 = vmatpush3.bf16.msk.msra.mxu1 %vm4424_vm4, %v3795_v62  ;;  %3667 = vmatprep.mubr.msk.f32.mxu1 %vm297_vm1, %v4416_v8 }
 0x402   :  { %3803 = vmatprep.subr.msk.bf16.mxu1 %vm4424_vm4, %v3801_v1 }
 0x408   :  { %3668 = vmatmul.mubr.msk.f32.vlgmr.msra.gmra.mrb[2].mxu1 %vm297_vm1, %v4432_v25  ;;  %v3392_v25 = vld [vmem:[%s5079_s0 + $0x18] sm:$0xf]  ;;  %s4256_s0 = smov [#allocation3]  }
 0x409   :  { %3806 = vmatpush3.bf16.msk.msra.mxu1 %vm4424_vm4, %v3801_v1  ;;  %3674 = vmatprep.mubr.msk.f32.mxu1 %vm297_vm1, %v4436_v27 }
 0x410   :  { %3675 = vmatmul.mubr.msk.f32.vlgmr.msra.gmra.mrb[2].mxu1 %vm297_vm1, %v479_v29  ;;  %v1104_v29 = vld [vmem:[#allocation5 + $0x30] sm:$0xff] }
 0x411   :  { %3699 = vmatprep.mubr.msk.f32.mxu1 %vm297_vm1, %v1104_v29 }
 0x4e3   :  { %v3676_v4 = vpop.f32.mrb[2].mxu1 }
 0x4e4   :  { %v3967_v6 = vadd.f32 %v3676_v4, %v3655_v51  ;;  %v912_v7 = vpop.f32.mrb[3].mxu1  ;;  %v1400_v51 = vld [vmem:[#allocation8 + $0x68] sm:$0xff] }
 0x4e5   :  { %v3968_v8 = vadd.f32 %v912_v7, %v660_v52 }
 0x4e6   :  { %v932_v9 = vadd.f32 %v3967_v6, %v3388_v5 }
 0x4e7   :  { %v931_v10 = vadd.f32 %v3968_v8, %v3388_v5 }
 0x4e8   :  { %v934_v11 = vadd.f32 %v932_v9, %v582_v50  ;;  %v1399_v50 = vld [vmem:[#allocation8 + $0x60] sm:$0xff] }
 0x4e9   :  { %v933_v12 = vadd.f32 %v931_v10, %v581_v49  ;;  %v1293_v49 = vld [vmem:[#allocation5 + $0x58] sm:$0xf]  ;;  %v3837_v52 = vpack.c.bf16 %v1400_v51, %v1399_v50 }
 0x4ea   :  { %v936_v15 = vmax.f32 %v934_v11, 0.0 }
 0x4eb   :  { %v935_v16 = vmax.f32 %v933_v12, 0.0 }
 0x4ed   :  { %v3808_v18 = vpack.c.bf16 %v936_v15, %v935_v16 }
 0x4ef   :  { %3810 = vmatpush3.bf16.msk.msra.mxu0 %vm4424_vm4, %v3808_v18 }
 0x4f0   :  { %3812 = vmatprep.subr.bf16.mxu0 %v3811_v17 }
 0x4f2   :  { %3682 = vmatmul.mubr.msk.f32.vlgmr.msra.gmra.mrb[6].mxu0 %vm297_vm1, %v937_v22 }
 0x4f3   :  { %3814 = vmatpush3.bf16.msra.mxu0 %v3811_v17  ;;  %3692 = vmatprep.mubr.msk.f32.mxu0 %vm206_vm0, %v4486_v24 }
 0x4f4   :  { %3816 = vmatprep.subr.bf16.mxu0 %v3815_v23 }
 0x4f7   :  { %3818 = vmatpush3.bf16.msra.mxu0 %v3815_v23 }
 0x4f8   :  { %3838 = vmatprep.subr.bf16.mxu0 %v3837_v52 }
 0x4fa   :  { %3693 = vmatmul.mubr.msk.f32.vlgmr.msra.gmra.mrb[8].mxu0 %vm206_vm0, %v3392_v25 }
 0x4fb   :  { %3840 = vmatpush3.bf16.msra.mxu0 %v3837_v52 }
 0x4fc   :  { %3842 = vmatprep.subr.bf16.mxu0 %v3841_v55 }
 0x4ff   :  { %3844 = vmatpush3.bf16.msra.mxu0 %v3841_v55 }
 0x5c5   :  { %v1010_v26 = vpop.f32.mrb[6].mxu0 }
 0x5c6   :  { %v4495_v27 = vpack.c.bf16 %v1010_v26, %v1010_v26  ;;  %v3683_v28 = vpop.f32.mrb[7].mxu0 }
 0x5cd   :  { %v3694_v30 = vpop.f32.mrb[8].mxu0 }
 0x5ce   :  { %v1094_v31 = vpop.f32.mrb[9].mxu0 }
 0x5cf   :  { %v4054_v32 = vpack.i.bf16 %v3694_v30, %v1094_v31 }
 0x5d1   :  { %4055 = vrot.lane.b32.xlu1 %v4054_v32, %s4238_s9  ;;  %4050 = vrot.lane.b32.xlu0 %v4054_v32, %s4251_s12 }
 0x5d5   :  { %4060 = vrot.lane.b32.xlu0 %v4054_v32, %s4235_s3  ;;  %v1753_v32 = vld [vmem:[#allocation11 + $0x2] sm:$0x3] }
 0x643   :  { %v4056_v33 = vpop.permute.xlu1 %4055  ;;  %v4051_v34 = vpop.permute.xlu0 %4050 }
 0x644   :  { %v4058_v35 = vunpack.i.h.bf16 %v4056_v33  ;;  %v4057_v36 = vunpack.i.l.bf16 %v4056_v33  ;;  %v4053_v37 = vunpack.i.h.bf16 %v4051_v34  ;;  %v4052_v38 = vunpack.i.l.bf16 %v4051_v34 }
 0x646   :  { %v3819_v39 = vpack.c.bf16 %v4053_v37, %v4052_v38  ;;  %v3825_v41 = vpack.c.bf16 %v4058_v35, %v4057_v36 }
 0x647   :  { %v4061_v40 = vpop.permute.xlu0 %4060 }
 0x648   :  { %v4063_v42 = vunpack.i.h.bf16 %v4061_v40  ;;  %v4062_v43 = vunpack.i.l.bf16 %v4061_v40  ;;  %3821 = vmatprep.subr.msk.bf16.mxu1 %vm4424_vm4, %v3819_v39 }
 0x649   :  { %3824 = vmatpush3.bf16.msk.msra.mxu1 %vm4424_vm4, %v3819_v39 }
 0x64a   :  { %3827 = vmatprep.subr.msk.bf16.mxu1 %vm4424_vm4, %v3825_v41  ;;  %v3831_v46 = vpack.c.bf16 %v4063_v42, %v4062_v43 }
 0x64c   :  { %3700 = vmatmul.mubr.msk.f32.vlgmr.msra.gmra.mrb[4].mxu1 %vm297_vm1, %v1105_v44 }
 0x64d   :  { %3830 = vmatpush3.bf16.msk.msra.mxu1 %vm4424_vm4, %v3825_v41  ;;  %3706 = vmatprep.mubr.msk.f32.mxu1 %vm297_vm1, %v1199_v45 }
 0x64e   :  { %3833 = vmatprep.subr.msk.bf16.mxu1 %vm4424_vm4, %v3831_v46 }
 0x654   :  { %3707 = vmatmul.mubr.msk.f32.vlgmr.msra.gmra.mrb[4].mxu1 %vm297_vm1, %v1200_v47 }
 0x655   :  { %3836 = vmatpush3.bf16.msk.msra.mxu1 %vm4424_vm4, %v3831_v46  ;;  %3713 = vmatprep.mubr.msk.f32.mxu1 %vm297_vm1, %v1292_v48 }
 0x656   :  { %3863 = vmatprep.subr.bf16.mxu1 %v4253_v2 }
 0x65c   :  { %3714 = vmatmul.mubr.msk.f32.vlgmr.msra.gmra.mrb[4].mxu1 %vm297_vm1, %v1293_v49 }
 0x65d   :  { %3752 = vmatprep.mubr.msk.f32.mxu1 %vm4254_vm5, %v4255_v3 }
 0x72f   :  { %v3715_v56 = vpop.f32.mrb[4].mxu1 }
 0x730   :  { %v3969_v58 = vadd.f32 %v3715_v56, %v3694_v30  ;;  %v1373_v59 = vpop.f32.mrb[5].mxu1 }
 0x731   :  { %v3970_v60 = vadd.f32 %v1373_v59, %v1094_v31 }
 0x732   :  { %v1393_v61 = vadd.f32 %v3969_v58, %v3404_v57 }
 0x733   :  { %v1392_v62 = vadd.f32 %v3970_v60, %v3404_v57 }
 0x734   :  { %v1395_v63 = vadd.f32 %v3392_v25, %v1393_v61 }
 0x735   :  { %v1394_v0 = vadd.f32 %v4486_v24, %v1392_v62 }
 0x736   :  { %v1397_v2 = vmax.f32 %v1395_v63, 0.0 }
 0x737   :  { %v1396_v1 = vmax.f32 %v1394_v0, 0.0 }
 0x739   :  { %3724 = vmatprep.mubr.msk.f32.mxu0 %vm206_vm0, %v1396_v1 }
 0x73a   :  { %3725 = vmatmul.mubr.msk.f32.vlgmr.msra.gmra.mrb[10].mxu0 %vm206_vm0, %v1397_v2 }
 0x73b   :  { %3731 = vmatprep.mubr.msk.f32.mxu0 %vm297_vm1, %v1104_v29 }
 0x80d   :  { %v3726_v3 = vpop.f32.mrb[10].mxu0 }
 0x80e   :  { %v1475_v4 = vpop.f32.mrb[11].mxu0 }
 0x80f   :  { %v4069_v5 = vpack.i.bf16 %v3726_v3, %v1475_v4 }
 0x811   :  { %4070 = vrot.lane.b32.xlu0 %v4069_v5, %s4238_s9  ;;  %4065 = vrot.lane.b32.xlu1 %v4069_v5, %s4251_s12 }
 0x815   :  { %4075 = vrot.lane.b32.xlu1 %v4069_v5, %s4235_s3  ;;  %s196_s3 = sshll.u32 %s4256_s0, 4  ;;  %s197_s3 = int_to_ptr.vmem [resolvable:$true] %s196_s3 }
 0x883   :  { %v4071_v6 = vpop.permute.xlu0 %4070  ;;  %v4066_v7 = vpop.permute.xlu1 %4065 }
 0x884   :  { %v4073_v8 = vunpack.i.h.bf16 %v4071_v6  ;;  %v4072_v9 = vunpack.i.l.bf16 %v4071_v6  ;;  %v4068_v10 = vunpack.i.h.bf16 %v4066_v7  ;;  %v4067_v11 = vunpack.i.l.bf16 %v4066_v7 }
 0x886   :  { %v3845_v12 = vpack.c.bf16 %v4068_v10, %v4067_v11  ;;  %v3851_v14 = vpack.c.bf16 %v4073_v8, %v4072_v9 }
 0x887   :  { %v4076_v13 = vpop.permute.xlu1 %4075 }
 0x888   :  { %v4078_v15 = vunpack.i.h.bf16 %v4076_v13  ;;  %v4077_v16 = vunpack.i.l.bf16 %v4076_v13  ;;  %3847 = vmatprep.subr.msk.bf16.mxu0 %vm4424_vm4, %v3845_v12 }
 0x889   :  { %3850 = vmatpush3.bf16.msk.msra.mxu0 %vm4424_vm4, %v3845_v12 }
 0x88a   :  { %3853 = vmatprep.subr.msk.bf16.mxu0 %vm4424_vm4, %v3851_v14  ;;  %v3857_v17 = vpack.c.bf16 %v4078_v15, %v4077_v16 }
 0x88c   :  { %3732 = vmatmul.mubr.msk.f32.vlgmr.msra.gmra.mrb[12].mxu0 %vm297_vm1, %v1105_v44 }
 0x88d   :  { %3856 = vmatpush3.bf16.msk.msra.mxu0 %vm4424_vm4, %v3851_v14  ;;  %3738 = vmatprep.mubr.msk.f32.mxu0 %vm297_vm1, %v1199_v45 }
 0x88e   :  { %3859 = vmatprep.subr.msk.bf16.mxu0 %vm4424_vm4, %v3857_v17 }
 0x894   :  { %3739 = vmatmul.mubr.msk.f32.vlgmr.msra.gmra.mrb[12].mxu0 %vm297_vm1, %v1200_v47 }
 0x895   :  { %3862 = vmatpush3.bf16.msk.msra.mxu0 %vm4424_vm4, %v3857_v17  ;;  %3745 = vmatprep.mubr.msk.f32.mxu0 %vm297_vm1, %v1292_v48 }
 0x89c   :  { %3746 = vmatmul.mubr.msk.f32.vlgmr.msra.gmra.mrb[12].mxu0 %vm297_vm1, %v1293_v49 }
 0x96f   :  { %v3747_v18 = vpop.f32.mrb[12].mxu0 }
 0x970   :  { %v3971_v21 = vadd.f32 %v3747_v18, %v3726_v3  ;;  %v1727_v22 = vpop.f32.mrb[13].mxu0 }
 0x971   :  { %v3972_v23 = vadd.f32 %v1727_v22, %v1475_v4 }
 0x972   :  { %v1747_v24 = vadd.f32 %v3971_v21, %v3416_v20 }
 0x973   :  { %v1746_v25 = vadd.f32 %v3972_v23, %v3416_v20 }
 0x974   :  { %v1749_v26 = vadd.f32 %v1747_v24, %v1397_v2 }
 0x975   :  { %v1748_v28 = vadd.f32 %v1746_v25, %v1396_v1 }
 0x976   :  { %v1751_v29 = vmax.f32 %v1749_v26, 0.0 }
 0x977   :  { %v1750_v30 = vmax.f32 %v1748_v28, 0.0 }
 0x979   :  { %v3864_v31 = vpack.c.bf16 %v1751_v29, %v1750_v30 }
 0x97b   :  { %3866 = vmatpush3.bf16.msk.msra.mxu1 %vm4424_vm4, %v3864_v31 }
 0x97e   :  { %3753 = vmatmul.mubr.msk.f32.vlgmr.msra.gmra.mrb[6].mxu1 %vm297_vm1, %v1753_v32 }
 0x97f   :  { %4176 = shalt.err (!%p4173_p6)  }
 0x980   :  { %s4177_s22 = scalar_lea.vmem %s197_s3, 12416  ;;  %p4182_p8 = scmp.lt.s32.totalorder %s197_s3, %s197_s3 }
 0x981   :  { %p4178_p7 = scmp.ne.s32.totalorder %s197_s3, %s4177_s22  ;;  %p4183_p9 = scmp.lt.s32.totalorder %s4177_s22, %s4177_s22 }
 0x983   :  { %p4184_p10 = por %p4183_p9, %p4182_p8 }
 0x985   :  { %p4185_p11 = pnand %p4184_p10, %p4178_p7 }
 0x987   :  { %4188 = shalt.err (!%p4185_p11)  }
 0x988   :  { %199 = dma.hbm_to_vmem [thread:$0]  %s5085_s6, 12416, %s197_s3, [#allocation4 + $0x3] }
 0xa51   :  { %v1826_v19 = vpop.f32.mrb[6].mxu1 }
 0xa52   :  { %v1831_v33 = vpack.c.bf16 %v1826_v19, %v1826_v19  ;;  %v3754_v34 = vpop.f32.mrb[7].mxu1 }
 0xa53   :  { %4217 = dma.done.wait [#allocation4], 3840 }
 0xa54   :  { %4218 = vsyncadd [#allocation4], 4294963456  ;;  %v5087_v35 = vmov 0   ;;  %v1849_v36 = vld [vmem:[#allocation2 + $0x68] sm:$0xff]  ;;  %v1848_v38 = vld [vmem:[#allocation2 + $0x60] sm:$0xff]  ;;  %v2124_v60 = vlaneseq }
 0xa55   :  { %1895 = vmatprep.mubr.bf16.mxu0 %v5087_v35  ;;  %1977 = vmatprep.mubr.bf16.mxu1 %v5087_v35  ;;  %v1853_v37 = vld [vmem:[#allocation2 + $0x88] sm:$0xff]  ;;  %v1852_v39 = vld [vmem:[#allocation2 + $0x80] sm:$0xff]  ;;  %v1855_v40 = vld [vmem:[#allocation2 + $0x98] sm:$0xff] }
 0xa56   :  { %1863 = vmatprep.subr.bf16.mxu0 %v1849_v36  ;;  %1945 = vmatprep.subr.bf16.mxu1 %v1853_v37  ;;  %v1859_v41 = vld [vmem:[#allocation2 + $0xb8] sm:$0xff]  ;;  %v1854_v42 = vld [vmem:[#allocation2 + $0x90] sm:$0xff]  ;;  %v1857_v48 = vld [vmem:[#allocation2 + $0xa8] sm:$0xff]  ;;  %v4575_v61 = vshrl.u32 %v2124_v60, 7 }
 0xa57   :  { %1864 = vmatpush1.bf16.msra.mxu0 %v1848_v38  ;;  %1946 = vmatpush1.bf16.msra.mxu1 %v1852_v39  ;;  %v1858_v43 = vld [vmem:[#allocation2 + $0xb0] sm:$0xff]  ;;  %v1851_v44 = vld [vmem:[#allocation2 + $0x78] sm:$0xff]  ;;  %v1845_v49 = vld [vmem:[#allocation2 + $0x48] sm:$0xff] }
 0xa58   :  { %1865 = vmatprep.subr.bf16.mxu0 %v1855_v40  ;;  %1947 = vmatprep.subr.bf16.mxu1 %v1859_v41  ;;  %v1839_v45 = vld [vmem:[#allocation2 + $0x18] sm:$0xff]  ;;  %v1850_v46 = vld [vmem:[#allocation2 + $0x70] sm:$0xff]  ;;  %v1856_v50 = vld [vmem:[#allocation2 + $0xa0] sm:$0xff]  ;;  %5094 = vst [vmem:[#allocation32_spill] sm:$0xff] %v4575_v61  ;;  %v2126_v9 = vsub.s32 0, %v4575_v61 }
 0xa59   :  { %v1838_v47 = vld [vmem:[#allocation2 + $0x10] sm:$0xff]  ;;  %v1844_v51 = vld [vmem:[#allocation2 + $0x40] sm:$0xff]  ;;  %v1837_v52 = vld [vmem:[#allocation2 + $0x8] sm:$0xff] }
 0xa5a   :  { %v1836_v53 = vld [vmem:[#allocation2] sm:$0xff]  ;;  %v1843_v54 = vld [vmem:[#allocation2 + $0x38] sm:$0xff]  ;;  %v1842_v55 = vld [vmem:[#allocation2 + $0x30] sm:$0xff] }
 0xa5b   :  { %1866 = vmatpush1.bf16.msra.mxu0 %v1854_v42  ;;  %1948 = vmatpush1.bf16.msra.mxu1 %v1858_v43  ;;  %v1841_v56 = vld [vmem:[#allocation2 + $0x28] sm:$0xff]  ;;  %v1840_v57 = vld [vmem:[#allocation2 + $0x20] sm:$0xff]  ;;  %v1847_v58 = vld [vmem:[#allocation2 + $0x58] sm:$0xff] }
 0xa5c   :  { %1904 = vmatprep.subr.bf16.mxu0 %v1851_v44  ;;  %2030 = vmatprep.subr.bf16.mxu1 %v1839_v45  ;;  %v1846_v59 = vld [vmem:[#allocation2 + $0x50] sm:$0xff]  ;;  %v2115_v3 = vld [vmem:[#allocation2 + $0xd8] sm:$0x1]  ;;  %v2112_v14 = vld [vmem:[#allocation2 + $0xc0] sm:$0x1] }
 0xa5d   :  { %v2114_v0 = vld [vmem:[#allocation2 + $0xd0] sm:$0x1]  ;;  %v2121_v10 = vunpack.c.l.bf16 %v2115_v3  ;;  %v2113_v18 = vld [vmem:[#allocation2 + $0xc8] sm:$0x1]  ;;  %v2118_v25 = vunpack.c.l.bf16 %v2112_v14  ;;  %v2116_v37 = vld [vmem:[#allocation2 + $0xe0] sm:$0x1] }
 0xa5e   :  { %3419 = vmatmul.mubr.msk.bf16.vlgmr.msra.gmra.mrb[16].mxu0 %vm206_vm0, %v1831_v33  ;;  %3421 = vmatmul.mubr.msk.bf16.vlgmr.msra.gmra.mrb[8].mxu1 %vm206_vm0, %v1831_v33  ;;  %v2120_v8 = vunpack.c.l.bf16 %v2114_v0  ;;  %v2119_v29 = vunpack.c.l.bf16 %v2113_v18  ;;  %v2117_v40 = vld [vmem:[#allocation2 + $0xe8] sm:$0x1]  ;;  %v2122_v45 = vunpack.c.l.bf16 %v2116_v37 }
 0xa5f   :  { %1905 = vmatpush1.bf16.msra.mxu0 %v1850_v46  ;;  %2031 = vmatpush1.bf16.msra.mxu1 %v1838_v47  ;;  %v2139_v13 = vrot.slane %v2121_v10, %v2126_v9  ;;  %v2127_v19 = vrot.slane %v2118_v25, %v2126_v9  ;;  %v2123_v47 = vunpack.c.l.bf16 %v2117_v40 }
 0xa60   :  { %1906 = vmatprep.subr.bf16.mxu0 %v1857_v48  ;;  %2032 = vmatprep.subr.bf16.mxu1 %v1845_v49  ;;  %v2135_v11 = vrot.slane %v2120_v8, %v2126_v9  ;;  %v2131_v36 = vrot.slane %v2119_v29, %v2126_v9 }
 0xa61   :  { %1936 = vmatprep.mubr.bf16.mxu0 %v5087_v35  ;;  %2062 = vmatprep.mubr.bf16.mxu1 %v5087_v35 }
 0xa63   :  { %1907 = vmatpush1.bf16.msra.mxu0 %v1856_v50  ;;  %2033 = vmatpush1.bf16.msra.mxu1 %v1844_v51  ;;  %v2143_v51 = vrot.slane %v2122_v45, %v2126_v9 }
 0xa64   :  { %1989 = vmatprep.subr.bf16.mxu0 %v1837_v52 }
 0xa66   :  { %3420 = vmatmul.mubr.msk.bf16.vlgmr.msra.gmra.mrb[20].mxu0 %vm206_vm0, %v1831_v33  ;;  %3423 = vmatmul.mubr.msk.bf16.vlgmr.msra.gmra.mrb[12].mxu1 %vm206_vm0, %v4495_v27 }
 0xa67   :  { %1990 = vmatpush1.bf16.msra.mxu0 %v1836_v53  ;;  %2021 = vmatprep.mubr.bf16.mxu0 %v5087_v35 }
 0xa68   :  { %1991 = vmatprep.subr.bf16.mxu0 %v1843_v54  ;;  %v2147_v54 = vrot.slane %v2123_v47, %v2126_v9 }
 0xa6b   :  { %1992 = vmatpush1.bf16.msra.mxu0 %v1842_v55 }
 0xa6c   :  { %2071 = vmatprep.subr.bf16.mxu0 %v1841_v56 }
 0xa6e   :  { %3422 = vmatmul.mubr.msk.bf16.vlgmr.msra.gmra.mrb[24].mxu0 %vm206_vm0, %v4495_v27 }
 0xa6f   :  { %2072 = vmatpush1.bf16.msra.mxu0 %v1840_v57  ;;  %2103 = vmatprep.mubr.bf16.mxu0 %v5087_v35 }
 0xa70   :  { %2073 = vmatprep.subr.bf16.mxu0 %v1847_v58 }
 0xa73   :  { %2074 = vmatpush1.bf16.msra.mxu0 %v1846_v59 }
 0xa76   :  { %3424 = vmatmul.mubr.msk.bf16.vlgmr.msra.gmra.mrb[28].mxu0 %vm206_vm0, %v4495_v27 }
 0xb31   :  { %v1897_v62 = vpop.f32.mrb[16].mxu0  ;;  %v1979_v63 = vpop.f32.mrb[8].mxu1 }
 0xb32   :  { %v1899_v1 = vpop.f32.mrb[17].mxu0  ;;  %v1981_v2 = vpop.f32.mrb[9].mxu1 }
 0xb33   :  { %v1901_v4 = vpop.f32.mrb[18].mxu0  ;;  %v1983_v5 = vpop.f32.mrb[10].mxu1 }
 0xb34   :  { %v1902_v6 = vpop.f32.mrb[19].mxu0  ;;  %v1984_v7 = vpop.f32.mrb[11].mxu1 }
 0xb39   :  { %v1938_v12 = vpop.f32.mrb[20].mxu0  ;;  %v2064_v27 = vpop.f32.mrb[12].mxu1 }
 0xb3a   :  { %v2065_v15 = vadd.f32 %v2064_v27, %v1938_v12  ;;  %v1940_v16 = vpop.f32.mrb[21].mxu0  ;;  %v2066_v17 = vpop.f32.mrb[13].mxu1 }
 0xb3b   :  { %v2067_v20 = vadd.f32 %v2066_v17, %v1940_v16  ;;  %v1942_v21 = vpop.f32.mrb[22].mxu0  ;;  %v2068_v22 = vpop.f32.mrb[14].mxu1 }
 0xb3c   :  { %v2150_v23 = vadd.f32 %v2135_v11, %v2065_v15  ;;  %v1943_v24 = vpop.f32.mrb[23].mxu0  ;;  %v2069_v26 = vpop.f32.mrb[15].mxu1 }
 0xb3d   :  { %v2151_v28 = vadd.f32 %v2139_v13, %v2067_v20 }
 0xb3e   :  { %v2156_v30 = vmax.f32 %v2150_v23, 0.0 }
 0xb3f   :  { %v2157_v31 = vmax.f32 %v2151_v28, 0.0 }
 0xb40   :  { %v4578_v32 = vpack.c.bf16 %v2156_v30, %v2156_v30 }
 0xb41   :  { %v4580_v33 = vpack.c.bf16 %v2157_v31, %v2157_v31  ;;  %v2023_v34 = vpop.f32.mrb[24].mxu0 }
 0xb42   :  { %5095 = vst [vmem:[#allocation33_spill] sm:$0xff] %v4578_v32  ;;  %v2024_v38 = vadd.f32 %v2023_v34, %v1897_v62  ;;  %v2025_v39 = vpop.f32.mrb[25].mxu0 }
 0xb43   :  { %v2026_v41 = vadd.f32 %v2025_v39, %v1899_v1  ;;  %v2027_v42 = vpop.f32.mrb[26].mxu0 }
 0xb44   :  { %v2148_v43 = vadd.f32 %v2127_v19, %v2024_v38  ;;  %v2028_v44 = vpop.f32.mrb[27].mxu0 }
 0xb45   :  { %v2149_v46 = vadd.f32 %v2131_v36, %v2026_v41 }
 0xb46   :  { %v2154_v48 = vmax.f32 %v2148_v43, 0.0 }
 0xb47   :  { %v2155_v49 = vmax.f32 %v2149_v46, 0.0 }
 0xb48   :  { %v4582_v50 = vpack.c.bf16 %v2154_v48, %v2154_v48 }
 0xb49   :  { %v4584_v52 = vpack.c.bf16 %v2155_v49, %v2155_v49  ;;  %v2105_v53 = vpop.f32.mrb[28].mxu0 }
 0xb4a   :  { %5096 = vst [vmem:[#allocation34_spill] sm:$0xff] %v4582_v50  ;;  %v2106_v55 = vadd.f32 %v2105_v53, %v1979_v63  ;;  %v2107_v56 = vpop.f32.mrb[29].mxu0 }
 0xb4b   :  { %v2108_v57 = vadd.f32 %v2107_v56, %v1981_v2  ;;  %v2109_v58 = vpop.f32.mrb[30].mxu0 }
 0xb4c   :  { %v2152_v59 = vadd.f32 %v2143_v51, %v2106_v55  ;;  %v2110_v60 = vpop.f32.mrb[31].mxu0 }
 0xb4d   :  { %v2153_v62 = vadd.f32 %v2147_v54, %v2108_v57 }
 0xb4e   :  { %v2158_v0 = vmax.f32 %v2152_v59, 0.0 }
 0xb4f   :  { %v2159_v1 = vmax.f32 %v2153_v62, 0.0 }
 0xb50   :  { %v4586_v3 = vpack.c.bf16 %v2158_v0, %v2158_v0 }
 0xb51   :  { %v4588_v4 = vpack.c.bf16 %v2159_v1, %v2159_v1 }
 0xb52   :  { %4219 = dma.done.wait [#allocation4 + $0x1], 18432 }
 0xb53   :  { %4220 = vsyncadd [#allocation4 + $0x1], 4294948864  ;;  %v4590_v5 = vld [vmem:[#allocation2 + $0xf0] sm:$0xff]  ;;  %v4592_v6 = vld [vmem:[#allocation2 + $0xf8] sm:$0xff] }
 0xb54   :  { %v4594_v7 = vld [vmem:[#allocation2 + $0x100] sm:$0xff]  ;;  %v4596_v63 = vld [vmem:[#allocation2 + $0x108] sm:$0xff]  ;;  %v4598_v2 = vld [vmem:[#allocation2 + $0x110] sm:$0xff] }
 0xb55   :  { %5097 = vst [vmem:[#allocation35_spill] sm:$0xff] %v4594_v7  ;;  %5098 = vst [vmem:[#allocation36_spill] sm:$0xff] %v4596_v63  ;;  %v4600_v8 = vld [vmem:[#allocation2 + $0x118] sm:$0xff]  ;;  %v4602_v9 = vld [vmem:[#allocation2 + $0x120] sm:$0xff] }
 0xb56   :  { %5099 = vst [vmem:[#allocation37_spill] sm:$0xff] %v4598_v2  ;;  %5100 = vst [vmem:[#allocation38_spill] sm:$0xff] %v4600_v8  ;;  %v4604_v10 = vld [vmem:[#allocation2 + $0x128] sm:$0xff]  ;;  %v4606_v11 = vld [vmem:[#allocation2 + $0x130] sm:$0xff] }
 0xb57   :  { %5101 = vst [vmem:[#allocation39_spill] sm:$0xff] %v4606_v11  ;;  %v4608_v12 = vld [vmem:[#allocation2 + $0x138] sm:$0xff]  ;;  %v4610_v27 = vld [vmem:[#allocation2 + $0x140] sm:$0xff]  ;;  %v4612_v13 = vld [vmem:[#allocation2 + $0x148] sm:$0xff] }
 0xb58   :  { %5102 = vst [vmem:[#allocation40_spill] sm:$0xff] %v4608_v12  ;;  %5103 = vst [vmem:[#allocation41_spill] sm:$0xff] %v4610_v27  ;;  %v4614_v14 = vld [vmem:[#allocation2 + $0x150] sm:$0xff]  ;;  %v4616_v15 = vld [vmem:[#allocation2 + $0x158] sm:$0xff] }
 0xb59   :  { %5104 = vst [vmem:[#allocation42_spill] sm:$0xff] %v4612_v13  ;;  %v4618_v16 = vld [vmem:[#allocation2 + $0x160] sm:$0xff]  ;;  %v4620_v17 = vld [vmem:[#allocation2 + $0x168] sm:$0xff]  ;;  %v4622_v18 = vld [vmem:[#allocation2 + $0x170] sm:$0xff] }
 0xb5a   :  { %5105 = vst [vmem:[#allocation43_spill] sm:$0xff] %v4618_v16  ;;  %5106 = vst [vmem:[#allocation44_spill] sm:$0xff] %v4620_v17  ;;  %v4624_v20 = vld [vmem:[#allocation2 + $0x178] sm:$0xff]  ;;  %v4626_v21 = vld [vmem:[#allocation2 + $0x180] sm:$0xff] }
 0xb5b   :  { %5107 = vst [vmem:[#allocation45_spill] sm:$0xff] %v4622_v18  ;;  %5108 = vst [vmem:[#allocation46_spill] sm:$0xff] %v4624_v20  ;;  %v4628_v22 = vld [vmem:[#allocation2 + $0x188] sm:$0xff]  ;;  %v4630_v23 = vld [vmem:[#allocation2 + $0x190] sm:$0xff] }
 0xb5c   :  { %5109 = vst [vmem:[#allocation47_spill] sm:$0xff] %v4630_v23  ;;  %v4632_v24 = vld [vmem:[#allocation2 + $0x198] sm:$0xff]  ;;  %v4634_v25 = vld [vmem:[#allocation2 + $0x1a0] sm:$0xff]  ;;  %v4636_v26 = vld [vmem:[#allocation2 + $0x1a8] sm:$0xff] }
 0xb5d   :  { %5110 = vst [vmem:[#allocation48_spill] sm:$0xff] %v4632_v24  ;;  %5111 = vst [vmem:[#allocation49_spill] sm:$0xff] %v4634_v25  ;;  %v4638_v28 = vld [vmem:[#allocation2 + $0x1b0] sm:$0xff]  ;;  %v4640_v29 = vld [vmem:[#allocation2 + $0x1b8] sm:$0xff] }
 0xb5e   :  { %5112 = vst [vmem:[#allocation50_spill] sm:$0xff] %v4636_v26  ;;  %v4642_v30 = vld [vmem:[#allocation2 + $0x1c0] sm:$0xff]  ;;  %v4644_v31 = vld [vmem:[#allocation2 + $0x1c8] sm:$0xff]  ;;  %v4646_v19 = vld [vmem:[#allocation2 + $0x1d0] sm:$0xff] }
 0xb5f   :  { %5113 = vst [vmem:[#allocation51_spill] sm:$0xff] %v4642_v30  ;;  %5114 = vst [vmem:[#allocation52_spill] sm:$0xff] %v4644_v31  ;;  %v4648_v34 = vld [vmem:[#allocation2 + $0x1d8] sm:$0xff]  ;;  %v4650_v36 = vld [vmem:[#allocation2 + $0x1e0] sm:$0xff] }
 0xb60   :  { %5115 = vst [vmem:[#allocation53_spill] sm:$0xff] %v4646_v19  ;;  %5116 = vst [vmem:[#allocation54_spill] sm:$0xff] %v4648_v34  ;;  %v4652_v37 = vld [vmem:[#allocation2 + $0x1e8] sm:$0xff]  ;;  %v4654_v38 = vld [vmem:[#allocation2 + $0x1f0] sm:$0xff] }
 0xb61   :  { %5117 = vst [vmem:[#allocation55_spill] sm:$0xff] %v4654_v38  ;;  %v4656_v39 = vld [vmem:[#allocation2 + $0x1f8] sm:$0xff]  ;;  %v4658_v40 = vld [vmem:[#allocation2 + $0x200] sm:$0xff]  ;;  %v4660_v41 = vld [vmem:[#allocation2 + $0x208] sm:$0xff] }
 0xb62   :  { %5118 = vst [vmem:[#allocation56_spill] sm:$0xff] %v4656_v39  ;;  %5119 = vst [vmem:[#allocation57_spill] sm:$0xff] %v4658_v40  ;;  %v4662_v42 = vld [vmem:[#allocation2 + $0x210] sm:$0xff]  ;;  %v4664_v43 = vld [vmem:[#allocation2 + $0x218] sm:$0xff] }
 0xb63   :  { %5120 = vst [vmem:[#allocation58_spill] sm:$0xff] %v4660_v41  ;;  %v4666_v44 = vld [vmem:[#allocation2 + $0x220] sm:$0xff]  ;;  %v4668_v45 = vld [vmem:[#allocation2 + $0x228] sm:$0xff]  ;;  %v4670_v46 = vld [vmem:[#allocation2 + $0x230] sm:$0xff] }
 0xb64   :  { %5121 = vst [vmem:[#allocation59_spill] sm:$0xff] %v4666_v44  ;;  %5122 = vst [vmem:[#allocation60_spill] sm:$0xff] %v4668_v45  ;;  %v4672_v47 = vld [vmem:[#allocation2 + $0x238] sm:$0xff]  ;;  %v4674_v48 = vld [vmem:[#allocation2 + $0x240] sm:$0xff] }
 0xb65   :  { %5123 = vst [vmem:[#allocation61_spill] sm:$0xff] %v4670_v46  ;;  %5124 = vst [vmem:[#allocation62_spill] sm:$0xff] %v4672_v47  ;;  %v4676_v49 = vld [vmem:[#allocation2 + $0x248] sm:$0xff]  ;;  %v4678_v51 = vld [vmem:[#allocation2 + $0x250] sm:$0xff] }
 0xb66   :  { %5125 = vst [vmem:[#allocation63_spill] sm:$0xff] %v4678_v51  ;;  %v4680_v53 = vld [vmem:[#allocation2 + $0x258] sm:$0xff]  ;;  %v4682_v54 = vld [vmem:[#allocation2 + $0x260] sm:$0xff]  ;;  %v4684_v55 = vld [vmem:[#allocation2 + $0x268] sm:$0xff] }
 0xb67   :  { %5126 = vst [vmem:[#allocation64_spill] sm:$0xff] %v4680_v53  ;;  %5127 = vst [vmem:[#allocation65_spill] sm:$0xff] %v4682_v54  ;;  %v4686_v56 = vld [vmem:[#allocation2 + $0x270] sm:$0xff]  ;;  %v4688_v57 = vld [vmem:[#allocation2 + $0x278] sm:$0xff] }
 0xb68   :  { %5128 = vst [vmem:[#allocation66_spill] sm:$0xff] %v4684_v55  ;;  %v4690_v58 = vld [vmem:[#allocation2 + $0x280] sm:$0xff]  ;;  %v4692_v59 = vld [vmem:[#allocation2 + $0x288] sm:$0xff]  ;;  %v4694_v60 = vld [vmem:[#allocation2 + $0x290] sm:$0xff] }
 0xb69   :  { %5129 = vst [vmem:[#allocation67_spill] sm:$0xff] %v4690_v58  ;;  %5130 = vst [vmem:[#allocation68_spill] sm:$0xff] %v4692_v59  ;;  %v4696_v62 = vld [vmem:[#allocation2 + $0x298] sm:$0xff]  ;;  %v4698_v0 = vld [vmem:[#allocation2 + $0x2a0] sm:$0xff] }
 0xb6a   :  { %5131 = vst [vmem:[#allocation69_spill] sm:$0xff] %v4694_v60  ;;  %5132 = vst [vmem:[#allocation70_spill] sm:$0xff] %v4696_v62  ;;  %v4700_v1 = vld [vmem:[#allocation2 + $0x2a8] sm:$0xff]  ;;  %v4702_v35 = vld [vmem:[#allocation2 + $0x2b0] sm:$0xff] }
 0xb6b   :  { %5133 = vst [vmem:[#allocation71_spill] sm:$0xff] %v4702_v35  ;;  %v4704_v61 = vld [vmem:[#allocation2 + $0x2b8] sm:$0xff]  ;;  %v4706_v54 = vld [vmem:[#allocation2 + $0x2c0] sm:$0xff]  ;;  %v4708_v55 = vld [vmem:[#allocation2 + $0x2c8] sm:$0xff] }
 0xb6c   :  { %5134 = vst [vmem:[#allocation72_spill] sm:$0xff] %v4704_v61  ;;  %5135 = vst [vmem:[#allocation73_spill] sm:$0xff] %v4706_v54  ;;  %v4710_v46 = vld [vmem:[#allocation2 + $0x2d0] sm:$0xff]  ;;  %v4712_v47 = vld [vmem:[#allocation2 + $0x2d8] sm:$0xff] }
 0xb6d   :  { %5136 = vst [vmem:[#allocation74_spill] sm:$0xff] %v4708_v55  ;;  %v4714_v40 = vld [vmem:[#allocation2 + $0x2e0] sm:$0xff]  ;;  %v4716_v60 = vld [vmem:[#allocation2 + $0x2e8] sm:$0xff]  ;;  %v4718_v62 = vld [vmem:[#allocation2 + $0x2f0] sm:$0xff] }
 0xb6e   :  { %5137 = vst [vmem:[#allocation75_spill] sm:$0xff] %v4714_v40  ;;  %5138 = vst [vmem:[#allocation76_spill] sm:$0xff] %v4716_v60  ;;  %v4720_v41 = vld [vmem:[#allocation2 + $0x2f8] sm:$0xff]  ;;  %v4722_v19 = vld [vmem:[#allocation2 + $0x300] sm:$0xff] }
 0xb6f   :  { %5139 = vst [vmem:[#allocation77_spill] sm:$0xff] %v4718_v62  ;;  %5140 = vst [vmem:[#allocation78_spill] sm:$0xff] %v4720_v41  ;;  %v4724_v34 = vld [vmem:[#allocation2 + $0x308] sm:$0xff]  ;;  %v4726_v25 = vld [vmem:[#allocation2 + $0x310] sm:$0xff] }
 0xb70   :  { %5141 = vst [vmem:[#allocation79_spill] sm:$0xff] %v4726_v25  ;;  %v4728_v54 = vld [vmem:[#allocation2 + $0x318] sm:$0xff]  ;;  %v4730_v55 = vld [vmem:[#allocation2 + $0x320] sm:$0xff]  ;;  %v4732_v26 = vld [vmem:[#allocation2 + $0x328] sm:$0xff] }
 0xb71   :  { %5142 = vst [vmem:[#allocation80_spill] sm:$0xff] %v4728_v54  ;;  %5143 = vst [vmem:[#allocation81_spill] sm:$0xff] %v4730_v55  ;;  %v4734_v18 = vld [vmem:[#allocation2 + $0x330] sm:$0xff]  ;;  %v4736_v40 = vld [vmem:[#allocation2 + $0x338] sm:$0xff] }
 0xb72   :  { %5144 = vst [vmem:[#allocation82_spill] sm:$0xff] %v4732_v26  ;;  %v4738_v20 = vld [vmem:[#allocation2 + $0x340] sm:$0xff]  ;;  %v4740_v62 = vld [vmem:[#allocation2 + $0x348] sm:$0xff]  ;;  %v4742_v41 = vld [vmem:[#allocation2 + $0x350] sm:$0xff] }
 0xb73   :  { %5145 = vst [vmem:[#allocation83_spill] sm:$0xff] %v4738_v20  ;;  %5146 = vst [vmem:[#allocation84_spill] sm:$0xff] %v4740_v62  ;;  %v4744_v60 = vld [vmem:[#allocation2 + $0x358] sm:$0xff]  ;;  %v4746_v27 = vld [vmem:[#allocation2 + $0x360] sm:$0xff] }
 0xb74   :  { %5147 = vst [vmem:[#allocation85_spill] sm:$0xff] %v4742_v41  ;;  %5148 = vst [vmem:[#allocation86_spill] sm:$0xff] %v4744_v60  ;;  %v4748_v25 = vld [vmem:[#allocation2 + $0x368] sm:$0xff]  ;;  %v4750_v54 = vld [vmem:[#allocation2 + $0x370] sm:$0xff] }
 0xb75   :  { %5149 = vst [vmem:[#allocation87_spill] sm:$0xff] %v4750_v54  ;;  %v4752_v55 = vld [vmem:[#allocation2 + $0x378] sm:$0xff]  ;;  %v4754_v26 = vld [vmem:[#allocation2 + $0x380] sm:$0xff]  ;;  %v4756_v35 = vld [vmem:[#allocation2 + $0x388] sm:$0xff] }
 0xb76   :  { %5150 = vst [vmem:[#allocation88_spill] sm:$0xff] %v4752_v55  ;;  %5151 = vst [vmem:[#allocation89_spill] sm:$0xff] %v4754_v26  ;;  %v4758_v13 = vld [vmem:[#allocation2 + $0x390] sm:$0xff]  ;;  %v4760_v20 = vld [vmem:[#allocation2 + $0x398] sm:$0xff] }
 0xb77   :  { %5152 = vst [vmem:[#allocation90_spill] sm:$0xff] %v4756_v35  ;;  %v4762_v62 = vld [vmem:[#allocation2 + $0x3a0] sm:$0xff]  ;;  %v4764_v41 = vld [vmem:[#allocation2 + $0x3a8] sm:$0xff]  ;;  %v4766_v60 = vld [vmem:[#allocation2 + $0x3b0] sm:$0xff] }
 0xb78   :  { %5153 = vst [vmem:[#allocation91_spill] sm:$0xff] %v4762_v62  ;;  %5154 = vst [vmem:[#allocation92_spill] sm:$0xff] %v4764_v41  ;;  %v4768_v61 = vld [vmem:[#allocation2 + $0x3b8] sm:$0xff]  ;;  %v4770_v2 = vld [vmem:[#allocation2 + $0x3c0] sm:$0xff] }
 0xb79   :  { %5155 = vst [vmem:[#allocation93_spill] sm:$0xff] %v4766_v60  ;;  %5156 = vst [vmem:[#allocation94_spill] sm:$0xff] %v4768_v61  ;;  %v4772_v54 = vld [vmem:[#allocation2 + $0x3c8] sm:$0xff]  ;;  %v4774_v55 = vld [vmem:[#allocation2 + $0x3d0] sm:$0xff] }
 0xb7a   :  { %5157 = vst [vmem:[#allocation95_spill] sm:$0xff] %v4770_v2  ;;  %5158 = vst [vmem:[#allocation96_spill] sm:$0xff] %v4774_v55  ;;  %v4776_v26 = vld [vmem:[#allocation2 + $0x3d8] sm:$0xff]  ;;  %v4778_v35 = vld [vmem:[#allocation2 + $0x3e0] sm:$0xff] }
 0xb7b   :  { %5159 = vst [vmem:[#allocation97_spill] sm:$0xff] %v4776_v26  ;;  %5160 = vst [vmem:[#allocation98_spill] sm:$0xff] %v4778_v35  ;;  %v4780_v58 = vld [vmem:[#allocation2 + $0x3e8] sm:$0xff]  ;;  %v4782_v8 = vld [vmem:[#allocation2 + $0x3f0] sm:$0xff] }
 0xb7c   :  { %5161 = vst [vmem:[#allocation99_spill] sm:$0xff] %v4780_v58  ;;  %v4784_v62 = vld [vmem:[#allocation2 + $0x3f8] sm:$0xff]  ;;  %v4786_v41 = vld [vmem:[#allocation2 + $0x400] sm:$0xff]  ;;  %v4788_v60 = vld [vmem:[#allocation2 + $0x408] sm:$0xff] }
 0xb7d   :  { %5162 = vst [vmem:[#allocation100_spill] sm:$0xff] %v4786_v41  ;;  %5163 = vst [vmem:[#allocation101_spill] sm:$0xff] %v4788_v60  ;;  %v4790_v61 = vld [vmem:[#allocation2 + $0x410] sm:$0xff]  ;;  %v4792_v59 = vld [vmem:[#allocation2 + $0x418] sm:$0xff] }
 0xb7e   :  { %5164 = vst [vmem:[#allocation102_spill] sm:$0xff] %v4790_v61  ;;  %5165 = vst [vmem:[#allocation103_spill] sm:$0xff] %v4792_v59  ;;  %v4794_v51 = vld [vmem:[#allocation2 + $0x420] sm:$0xff]  ;;  %v4796_v55 = vld [vmem:[#allocation2 + $0x428] sm:$0xff] }
 0xb7f   :  { %v4798_v26 = vld [vmem:[#allocation2 + $0x430] sm:$0xff]  ;;  %v4800_v35 = vld [vmem:[#allocation2 + $0x438] sm:$0xff]  ;;  %v4802_v58 = vld [vmem:[#allocation2 + $0x440] sm:$0xff] }
 0xb80   :  { %5166 = vst [vmem:[#allocation104_spill] sm:$0xff] %v4798_v26  ;;  %5167 = vst [vmem:[#allocation105_spill] sm:$0xff] %v4800_v35  ;;  %v4804_v53 = vld [vmem:[#allocation2 + $0x448] sm:$0xff]  ;;  %v4806_v44 = vld [vmem:[#allocation2 + $0x450] sm:$0xff] }
 0xb81   :  { %5168 = vst [vmem:[#allocation106_spill] sm:$0xff] %v4802_v58  ;;  %5169 = vst [vmem:[#allocation107_spill] sm:$0xff] %v4804_v53  ;;  %v4808_v45 = vld [vmem:[#allocation2 + $0x458] sm:$0xff]  ;;  %v4810_v38 = vld [vmem:[#allocation2 + $0x460] sm:$0xff] }
 0xb82   :  { %5170 = vst [vmem:[#allocation108_spill] sm:$0xff] %v4810_v38  ;;  %v4812_v61 = vld [vmem:[#allocation2 + $0x468] sm:$0xff]  ;;  %v4814_v59 = vld [vmem:[#allocation2 + $0x470] sm:$0xff]  ;;  %v4816_v39 = vld [vmem:[#allocation2 + $0x478] sm:$0xff] }
 0xb83   :  { %5171 = vst [vmem:[#allocation109_spill] sm:$0xff] %v4812_v61  ;;  %5172 = vst [vmem:[#allocation110_spill] sm:$0xff] %v4814_v59  ;;  %v4818_v30 = vld [vmem:[#allocation2 + $0x480] sm:$0xff]  ;;  %v4820_v31 = vld [vmem:[#allocation2 + $0x488] sm:$0xff] }
 0xb84   :  { %5173 = vst [vmem:[#allocation111_spill] sm:$0xff] %v4816_v39  ;;  %v4822_v23 = vld [vmem:[#allocation2 + $0x490] sm:$0xff]  ;;  %v4824_v58 = vld [vmem:[#allocation2 + $0x498] sm:$0xff]  ;;  %v4826_v53 = vld [vmem:[#allocation2 + $0x4a0] sm:$0xff] }
 0xb85   :  { %5174 = vst [vmem:[#allocation112_spill] sm:$0xff] %v4822_v23  ;;  %5175 = vst [vmem:[#allocation113_spill] sm:$0xff] %v4824_v58  ;;  %v4828_v24 = vld [vmem:[#allocation2 + $0x4a8] sm:$0xff]  ;;  %v4830_v16 = vld [vmem:[#allocation2 + $0x4b0] sm:$0xff] }
 0xb86   :  { %5176 = vst [vmem:[#allocation114_spill] sm:$0xff] %v4826_v53  ;;  %5177 = vst [vmem:[#allocation115_spill] sm:$0xff] %v4828_v24  ;;  %v4832_v38 = vld [vmem:[#allocation2 + $0x4b8] sm:$0xff]  ;;  %v4834_v61 = vld [vmem:[#allocation2 + $0x4c0] sm:$0xff] }
 0xb87   :  { %5178 = vst [vmem:[#allocation116_spill] sm:$0xff] %v4834_v61  ;;  %v4836_v59 = vld [vmem:[#allocation2 + $0x4c8] sm:$0xff]  ;;  %v4838_v39 = vld [vmem:[#allocation2 + $0x4d0] sm:$0xff]  ;;  %v4840_v17 = vld [vmem:[#allocation2 + $0x4d8] sm:$0xff] }
 0xb88   :  { %5179 = vst [vmem:[#allocation117_spill] sm:$0xff] %v4836_v59  ;;  %5180 = vst [vmem:[#allocation118_spill] sm:$0xff] %v4838_v39  ;;  %v4842_v26 = vld [vmem:[#allocation2 + $0x4e0] sm:$0xff]  ;;  %v4844_v23 = vld [vmem:[#allocation2 + $0x4e8] sm:$0xff] }
 0xb89   :  { %5181 = vst [vmem:[#allocation119_spill] sm:$0xff] %v4840_v17  ;;  %v4846_v58 = vld [vmem:[#allocation2 + $0x4f0] sm:$0xff]  ;;  %v4848_v53 = vld [vmem:[#allocation2 + $0x4f8] sm:$0xff]  ;;  %v4850_v24 = vld [vmem:[#allocation2 + $0x500] sm:$0xff] }
 0xb8a   :  { %5182 = vst [vmem:[#allocation120_spill] sm:$0xff] %v4846_v58  ;;  %5183 = vst [vmem:[#allocation121_spill] sm:$0xff] %v4848_v53  ;;  %v4852_v11 = vld [vmem:[#allocation2 + $0x508] sm:$0xff]  ;;  %v4854_v35 = vld [vmem:[#allocation2 + $0x510] sm:$0xff] }
 0xb8b   :  { %5184 = vst [vmem:[#allocation122_spill] sm:$0xff] %v4850_v24  ;;  %5185 = vst [vmem:[#allocation123_spill] sm:$0xff] %v4852_v11  ;;  %v4856_v61 = vld [vmem:[#allocation2 + $0x518] sm:$0xff]  ;;  %v4858_v59 = vld [vmem:[#allocation2 + $0x520] sm:$0xff] }
 0xb8c   :  { %5186 = vst [vmem:[#allocation124_spill] sm:$0xff] %v4858_v59  ;;  %v4860_v39 = vld [vmem:[#allocation2 + $0x528] sm:$0xff]  ;;  %v4862_v17 = vld [vmem:[#allocation2 + $0x530] sm:$0xff]  ;;  %v4864_v12 = vld [vmem:[#allocation2 + $0x538] sm:$0xff] }
 0xb8d   :  { %5187 = vst [vmem:[#allocation125_spill] sm:$0xff] %v4860_v39  ;;  %5188 = vst [vmem:[#allocation126_spill] sm:$0xff] %v4862_v17  ;;  %v4866_v41 = vld [vmem:[#allocation2 + $0x540] sm:$0xff]  ;;  %v4868_v58 = vld [vmem:[#allocation2 + $0x548] sm:$0xff] }
 0xb8e   :  { %5189 = vst [vmem:[#allocation127_spill] sm:$0xff] %v4864_v12  ;;  %5190 = vst [vmem:[#allocation128_spill] sm:$0xff] %v4866_v41  ;;  %v4870_v53 = vld [vmem:[#allocation2 + $0x550] sm:$0xff]  ;;  %v4872_v24 = vld [vmem:[#allocation2 + $0x558] sm:$0xff] }
 0xb8f   :  { %5191 = vst [vmem:[#allocation129_spill] sm:$0xff] %v4870_v53  ;;  %5192 = vst [vmem:[#allocation130_spill] sm:$0xff] %v4872_v24  ;;  %v4874_v11 = vld [vmem:[#allocation2 + $0x560] sm:$0xff]  ;;  %v4876_v7 = vld [vmem:[#allocation2 + $0x568] sm:$0xff] }
 0xb90   :  { %5193 = vst [vmem:[#allocation131_spill] sm:$0xff] %v4874_v11  ;;  %5194 = vst [vmem:[#allocation132_spill] sm:$0xff] %v4876_v7 }
 0xb91   :  { %4221 = dma.done.wait [#allocation4 + $0x2], 18432 }
 0xb92   :  { %4222 = vsyncadd [#allocation4 + $0x2], 4294948864  ;;  %v5195_v59 = vmov 0   ;;  %2492 = vmatprep.mubr.bf16.mxu1 %v4586_v3  ;;  %v2317_v17 = vld [vmem:[#allocation2 + $0x578] sm:$0xff]  ;;  %v2316_v39 = vld [vmem:[#allocation2 + $0x570] sm:$0xff] }
 0xb93   :  { %2533 = vmatprep.mubr.bf16.mxu0 %v5195_v59  ;;  %v2413_v12 = vld [vmem:[#allocation2 + $0x878] sm:$0xff]  ;;  %2460 = vmatprep.subr.bf16.mxu1 %v2317_v17  ;;  %v2412_v32 = vld [vmem:[#allocation2 + $0x870] sm:$0xff]  ;;  %v2323_v50 = vld [vmem:[#allocation2 + $0x5a8] sm:$0xff] }
 0xb94   :  { %2501 = vmatprep.subr.bf16.mxu0 %v2413_v12  ;;  %v2419_v53 = vld [vmem:[#allocation2 + $0x8a8] sm:$0xff]  ;;  %2461 = vmatpush1.bf16.msra.mxu1 %v2316_v39  ;;  %v2322_v11 = vld [vmem:[#allocation2 + $0x5a0] sm:$0xff]  ;;  %v2329_v24 = vld [vmem:[#allocation2 + $0x5d8] sm:$0xff] }
 0xb95   :  { %2502 = vmatpush1.bf16.msra.mxu0 %v2412_v32  ;;  %2462 = vmatprep.subr.bf16.mxu1 %v2323_v50  ;;  %v2418_v7 = vld [vmem:[#allocation2 + $0x8a0] sm:$0xff]  ;;  %v2425_v60 = vld [vmem:[#allocation2 + $0x8d8] sm:$0xff]  ;;  %v2328_v63 = vld [vmem:[#allocation2 + $0x5d0] sm:$0xff] }
 0xb96   :  { %2503 = vmatprep.subr.bf16.mxu0 %v2419_v53  ;;  %v2424_v41 = vld [vmem:[#allocation2 + $0x8d0] sm:$0xff]  ;;  %v2335_v2 = vld [vmem:[#allocation2 + $0x608] sm:$0xff]  ;;  %v2334_v12 = vld [vmem:[#allocation2 + $0x600] sm:$0xff] }
 0xb97   :  { %v2431_v17 = vld [vmem:[#allocation2 + $0x908] sm:$0xff]  ;;  %v2430_v32 = vld [vmem:[#allocation2 + $0x900] sm:$0xff]  ;;  %v2341_v50 = vld [vmem:[#allocation2 + $0x638] sm:$0xff] }
 0xb98   :  { %2463 = vmatpush1.bf16.msra.mxu1 %v2322_v11  ;;  %v2437_v39 = vld [vmem:[#allocation2 + $0x938] sm:$0xff]  ;;  %v2340_v11 = vld [vmem:[#allocation2 + $0x630] sm:$0xff]  ;;  %v2443_v53 = vld [vmem:[#allocation2 + $0x968] sm:$0xff] }
 0xb99   :  { %2504 = vmatpush1.bf16.msra.mxu0 %v2418_v7  ;;  %2464 = vmatprep.subr.bf16.mxu1 %v2329_v24  ;;  %v2436_v7 = vld [vmem:[#allocation2 + $0x930] sm:$0xff]  ;;  %v2347_v24 = vld [vmem:[#allocation2 + $0x668] sm:$0xff] }
 0xb9a   :  { %2505 = vmatprep.subr.bf16.mxu0 %v2425_v60  ;;  %v2449_v60 = vld [vmem:[#allocation2 + $0x998] sm:$0xff] }
 0xb9c   :  { %2465 = vmatpush1.bf16.msra.mxu1 %v2328_v63  ;;  %v2346_v63 = vld [vmem:[#allocation2 + $0x660] sm:$0xff] }
 0xb9d   :  { %2506 = vmatpush1.bf16.msra.mxu0 %v2424_v41  ;;  %2466 = vmatprep.subr.bf16.mxu1 %v2335_v2  ;;  %v2442_v41 = vld [vmem:[#allocation2 + $0x960] sm:$0xff]  ;;  %v2353_v2 = vld [vmem:[#allocation2 + $0x698] sm:$0xff] }
 0xb9e   :  { %2507 = vmatprep.subr.bf16.mxu0 %v2431_v17  ;;  %v2352_v17 = vld [vmem:[#allocation2 + $0x690] sm:$0xff] }
 0xba0   :  { %2467 = vmatpush1.bf16.msra.mxu1 %v2334_v12  ;;  %v2448_v12 = vld [vmem:[#allocation2 + $0x990] sm:$0xff] }
 0xba1   :  { %2508 = vmatpush1.bf16.msra.mxu0 %v2430_v32  ;;  %2468 = vmatprep.subr.bf16.mxu1 %v2341_v50  ;;  %v2359_v32 = vld [vmem:[#allocation2 + $0x6c8] sm:$0xff] }
 0xba2   :  { %2509 = vmatprep.subr.bf16.mxu0 %v2437_v39  ;;  %v2455_v50 = vld [vmem:[#allocation2 + $0x9c8] sm:$0xff]  ;;  %v2358_v39 = vld [vmem:[#allocation2 + $0x6c0] sm:$0xff] }
 0xba4   :  { %2469 = vmatpush1.bf16.msra.mxu1 %v2340_v11  ;;  %v2454_v11 = vld [vmem:[#allocation2 + $0x9c0] sm:$0xff] }
 0xba5   :  { %2510 = vmatpush1.bf16.msra.mxu0 %v2436_v7  ;;  %2470 = vmatprep.subr.bf16.mxu1 %v2347_v24  ;;  %v2365_v7 = vld [vmem:[#allocation2 + $0x6f8] sm:$0xff]  ;;  %v2319_v24 = vld [vmem:[#allocation2 + $0x588] sm:$0xff] }
 0xba6   :  { %2511 = vmatprep.subr.bf16.mxu0 %v2443_v53  ;;  %v2364_v53 = vld [vmem:[#allocation2 + $0x6f0] sm:$0xff] }
 0xba8   :  { %2471 = vmatpush1.bf16.msra.mxu1 %v2346_v63  ;;  %v2318_v63 = vld [vmem:[#allocation2 + $0x580] sm:$0xff] }
 0xba9   :  { %2512 = vmatpush1.bf16.msra.mxu0 %v2442_v41  ;;  %2472 = vmatprep.subr.bf16.mxu1 %v2353_v2  ;;  %v2371_v41 = vld [vmem:[#allocation2 + $0x728] sm:$0xff]  ;;  %v2325_v2 = vld [vmem:[#allocation2 + $0x5b8] sm:$0xff] }
 0xbaa   :  { %2513 = vmatprep.subr.bf16.mxu0 %v2449_v60  ;;  %v2370_v60 = vld [vmem:[#allocation2 + $0x720] sm:$0xff] }
 0xbac   :  { %2473 = vmatpush1.bf16.msra.mxu1 %v2352_v17  ;;  %v2324_v17 = vld [vmem:[#allocation2 + $0x5b0] sm:$0xff] }
 0xbad   :  { %2514 = vmatpush1.bf16.msra.mxu0 %v2448_v12  ;;  %2474 = vmatprep.subr.bf16.mxu1 %v2359_v32  ;;  %v2377_v12 = vld [vmem:[#allocation2 + $0x758] sm:$0xff]  ;;  %v2331_v32 = vld [vmem:[#allocation2 + $0x5e8] sm:$0xff] }
 0xbae   :  { %2515 = vmatprep.subr.bf16.mxu0 %v2455_v50  ;;  %v2376_v50 = vld [vmem:[#allocation2 + $0x750] sm:$0xff] }
 0xbb0   :  { %2475 = vmatpush1.bf16.msra.mxu1 %v2358_v39  ;;  %v2330_v39 = vld [vmem:[#allocation2 + $0x5e0] sm:$0xff] }
 0xbb1   :  { %2516 = vmatpush1.bf16.msra.mxu0 %v2454_v11  ;;  %2476 = vmatprep.subr.bf16.mxu1 %v2365_v7  ;;  %v2383_v11 = vld [vmem:[#allocation2 + $0x788] sm:$0xff]  ;;  %v2337_v7 = vld [vmem:[#allocation2 + $0x618] sm:$0xff] }
 0xbb2   :  { %2542 = vmatprep.subr.bf16.mxu0 %v2319_v24  ;;  %v2382_v24 = vld [vmem:[#allocation2 + $0x780] sm:$0xff] }
 0xbb4   :  { %2534 = vmatmul.mubr.bf16.vlgmr.msra.gmra.mrb[32].mxu0 %v4588_v4  ;;  %2477 = vmatpush1.bf16.msra.mxu1 %v2364_v53  ;;  %v2336_v53 = vld [vmem:[#allocation2 + $0x610] sm:$0xff] }
 0xbb5   :  { %2543 = vmatpush1.bf16.msra.mxu0 %v2318_v63  ;;  %2478 = vmatprep.subr.bf16.mxu1 %v2371_v41  ;;  %v2389_v63 = vld [vmem:[#allocation2 + $0x7b8] sm:$0xff]  ;;  %v2343_v41 = vld [vmem:[#allocation2 + $0x648] sm:$0xff] }
 0xbb6   :  { %2544 = vmatprep.subr.bf16.mxu0 %v2325_v2  ;;  %2574 = vmatprep.mubr.bf16.mxu0 %v4586_v3  ;;  %v2388_v2 = vld [vmem:[#allocation2 + $0x7b0] sm:$0xff] }
 0xbb8   :  { %2479 = vmatpush1.bf16.msra.mxu1 %v2370_v60  ;;  %v2342_v60 = vld [vmem:[#allocation2 + $0x640] sm:$0xff] }
 0xbb9   :  { %2545 = vmatpush1.bf16.msra.mxu0 %v2324_v17  ;;  %2480 = vmatprep.subr.bf16.mxu1 %v2377_v12  ;;  %v2395_v17 = vld [vmem:[#allocation2 + $0x7e8] sm:$0xff]  ;;  %v2349_v12 = vld [vmem:[#allocation2 + $0x678] sm:$0xff] }
 0xbba   :  { %2546 = vmatprep.subr.bf16.mxu0 %v2331_v32  ;;  %v2394_v32 = vld [vmem:[#allocation2 + $0x7e0] sm:$0xff] }
 0xbbc   :  { %2481 = vmatpush1.bf16.msra.mxu1 %v2376_v50  ;;  %v2348_v50 = vld [vmem:[#allocation2 + $0x670] sm:$0xff] }
 0xbbd   :  { %2547 = vmatpush1.bf16.msra.mxu0 %v2330_v39  ;;  %2482 = vmatprep.subr.bf16.mxu1 %v2383_v11  ;;  %v2401_v39 = vld [vmem:[#allocation2 + $0x818] sm:$0xff]  ;;  %v2355_v11 = vld [vmem:[#allocation2 + $0x6a8] sm:$0xff] }
 0xbbe   :  { %2548 = vmatprep.subr.bf16.mxu0 %v2337_v7  ;;  %v2400_v7 = vld [vmem:[#allocation2 + $0x810] sm:$0xff] }
 0xbc0   :  { %2483 = vmatpush1.bf16.msra.mxu1 %v2382_v24  ;;  %v2354_v24 = vld [vmem:[#allocation2 + $0x6a0] sm:$0xff] }
 0xbc1   :  { %2549 = vmatpush1.bf16.msra.mxu0 %v2336_v53  ;;  %2484 = vmatprep.subr.bf16.mxu1 %v2389_v63  ;;  %v2407_v53 = vld [vmem:[#allocation2 + $0x848] sm:$0xff]  ;;  %v2361_v63 = vld [vmem:[#allocation2 + $0x6d8] sm:$0xff] }
 0xbc2   :  { %2550 = vmatprep.subr.bf16.mxu0 %v2343_v41  ;;  %v2406_v41 = vld [vmem:[#allocation2 + $0x840] sm:$0xff] }
 0xbc4   :  { %2485 = vmatpush1.bf16.msra.mxu1 %v2388_v2  ;;  %v2360_v2 = vld [vmem:[#allocation2 + $0x6d0] sm:$0xff] }
 0xbc5   :  { %2551 = vmatpush1.bf16.msra.mxu0 %v2342_v60  ;;  %2486 = vmatprep.subr.bf16.mxu1 %v2395_v17  ;;  %v2367_v60 = vld [vmem:[#allocation2 + $0x708] sm:$0xff] }
 0xbc6   :  { %2552 = vmatprep.subr.bf16.mxu0 %v2349_v12  ;;  %v2415_v17 = vld [vmem:[#allocation2 + $0x888] sm:$0xff]  ;;  %v2366_v12 = vld [vmem:[#allocation2 + $0x700] sm:$0xff] }
 0xbc8   :  { %2487 = vmatpush1.bf16.msra.mxu1 %v2394_v32  ;;  %v2414_v32 = vld [vmem:[#allocation2 + $0x880] sm:$0xff] }
 0xbc9   :  { %2553 = vmatpush1.bf16.msra.mxu0 %v2348_v50  ;;  %2488 = vmatprep.subr.bf16.mxu1 %v2401_v39  ;;  %v2373_v50 = vld [vmem:[#allocation2 + $0x738] sm:$0xff] }
 0xbca   :  { %2554 = vmatprep.subr.bf16.mxu0 %v2355_v11  ;;  %v2421_v39 = vld [vmem:[#allocation2 + $0x8b8] sm:$0xff]  ;;  %v2372_v11 = vld [vmem:[#allocation2 + $0x730] sm:$0xff] }
 0xbcc   :  { %2489 = vmatpush1.bf16.msra.mxu1 %v2400_v7  ;;  %v2420_v7 = vld [vmem:[#allocation2 + $0x8b0] sm:$0xff] }
 0xbcd   :  { %2555 = vmatpush1.bf16.msra.mxu0 %v2354_v24  ;;  %2490 = vmatprep.subr.bf16.mxu1 %v2407_v53  ;;  %v2379_v24 = vld [vmem:[#allocation2 + $0x768] sm:$0xff] }
 0xbce   :  { %2556 = vmatprep.subr.bf16.mxu0 %v2361_v63  ;;  %v2427_v53 = vld [vmem:[#allocation2 + $0x8e8] sm:$0xff]  ;;  %v2378_v63 = vld [vmem:[#allocation2 + $0x760] sm:$0xff] }
 0xbd0   :  { %2491 = vmatpush1.bf16.msra.mxu1 %v2406_v41  ;;  %v2426_v41 = vld [vmem:[#allocation2 + $0x8e0] sm:$0xff] }
 0xbd1   :  { %2557 = vmatpush1.bf16.msra.mxu0 %v2360_v2  ;;  %2583 = vmatprep.subr.bf16.mxu1 %v2415_v17  ;;  %v2385_v2 = vld [vmem:[#allocation2 + $0x798] sm:$0xff]  ;;  %v2384_v17 = vld [vmem:[#allocation2 + $0x790] sm:$0xff] }
 0xbd2   :  { %2558 = vmatprep.subr.bf16.mxu0 %v2367_v60  ;;  %v2433_v60 = vld [vmem:[#allocation2 + $0x918] sm:$0xff] }
 0xbd3   :  { %2493 = vmatmul.mubr.bf16.vlgmr.msra.gmra.mrb[16].mxu1 %v4580_v33 }
 0xbd4   :  { %2584 = vmatpush1.bf16.msra.mxu1 %v2414_v32  ;;  %2615 = vmatprep.mubr.bf16.mxu1 %v5195_v59  ;;  %v2391_v32 = vld [vmem:[#allocation2 + $0x7c8] sm:$0xff] }
 0xbd5   :  { %2559 = vmatpush1.bf16.msra.mxu0 %v2366_v12  ;;  %2585 = vmatprep.subr.bf16.mxu1 %v2421_v39  ;;  %v2432_v12 = vld [vmem:[#allocation2 + $0x910] sm:$0xff]  ;;  %v2390_v39 = vld [vmem:[#allocation2 + $0x7c0] sm:$0xff] }
 0xbd6   :  { %2560 = vmatprep.subr.bf16.mxu0 %v2373_v50  ;;  %v2439_v50 = vld [vmem:[#allocation2 + $0x948] sm:$0xff] }
 0xbd8   :  { %2586 = vmatpush1.bf16.msra.mxu1 %v2420_v7  ;;  %v2397_v7 = vld [vmem:[#allocation2 + $0x7f8] sm:$0xff] }
 0xbd9   :  { %2561 = vmatpush1.bf16.msra.mxu0 %v2372_v11  ;;  %2587 = vmatprep.subr.bf16.mxu1 %v2427_v53  ;;  %v2438_v11 = vld [vmem:[#allocation2 + $0x940] sm:$0xff]  ;;  %v2396_v53 = vld [vmem:[#allocation2 + $0x7f0] sm:$0xff] }
 0xbda   :  { %2562 = vmatprep.subr.bf16.mxu0 %v2379_v24  ;;  %v2445_v24 = vld [vmem:[#allocation2 + $0x978] sm:$0xff] }
 0xbdc   :  { %2588 = vmatpush1.bf16.msra.mxu1 %v2426_v41  ;;  %v2403_v41 = vld [vmem:[#allocation2 + $0x828] sm:$0xff] }
 0xbdd   :  { %2563 = vmatpush1.bf16.msra.mxu0 %v2378_v63  ;;  %2589 = vmatprep.subr.bf16.mxu1 %v2433_v60  ;;  %v2444_v63 = vld [vmem:[#allocation2 + $0x970] sm:$0xff]  ;;  %v2402_v60 = vld [vmem:[#allocation2 + $0x820] sm:$0xff] }
 0xbde   :  { %2564 = vmatprep.subr.bf16.mxu0 %v2385_v2  ;;  %v2451_v2 = vld [vmem:[#allocation2 + $0x9a8] sm:$0xff] }
 0xbe0   :  { %2590 = vmatpush1.bf16.msra.mxu1 %v2432_v12  ;;  %v2409_v12 = vld [vmem:[#allocation2 + $0x858] sm:$0xff] }
 0xbe1   :  { %2565 = vmatpush1.bf16.msra.mxu0 %v2384_v17  ;;  %2591 = vmatprep.subr.bf16.mxu1 %v2439_v50  ;;  %v2450_v17 = vld [vmem:[#allocation2 + $0x9a0] sm:$0xff]  ;;  %v2408_v50 = vld [vmem:[#allocation2 + $0x850] sm:$0xff] }
 0xbe2   :  { %2566 = vmatprep.subr.bf16.mxu0 %v2391_v32  ;;  %v2457_v32 = vld [vmem:[#allocation2 + $0x9d8] sm:$0xff] }
 0xbe4   :  { %2592 = vmatpush1.bf16.msra.mxu1 %v2438_v11  ;;  %v2321_v11 = vld [vmem:[#allocation2 + $0x598] sm:$0xff] }
 0xbe5   :  { %2567 = vmatpush1.bf16.msra.mxu0 %v2390_v39  ;;  %2593 = vmatprep.subr.bf16.mxu1 %v2445_v24  ;;  %v2456_v39 = vld [vmem:[#allocation2 + $0x9d0] sm:$0xff] }
 0xbe6   :  { %2568 = vmatprep.subr.bf16.mxu0 %v2397_v7  ;;  %v2417_v7 = vld [vmem:[#allocation2 + $0x898] sm:$0xff]  ;;  %v2320_v24 = vld [vmem:[#allocation2 + $0x590] sm:$0xff] }
 0xbe8   :  { %2594 = vmatpush1.bf16.msra.mxu1 %v2444_v63  ;;  %v2327_v63 = vld [vmem:[#allocation2 + $0x5c8] sm:$0xff] }
 0xbe9   :  { %2569 = vmatpush1.bf16.msra.mxu0 %v2396_v53  ;;  %2595 = vmatprep.subr.bf16.mxu1 %v2451_v2  ;;  %v2416_v53 = vld [vmem:[#allocation2 + $0x890] sm:$0xff]  ;;  %v2326_v2 = vld [vmem:[#allocation2 + $0x5c0] sm:$0xff] }
 0xbea   :  { %2570 = vmatprep.subr.bf16.mxu0 %v2403_v41  ;;  %v2423_v41 = vld [vmem:[#allocation2 + $0x8c8] sm:$0xff] }
 0xbec   :  { %2596 = vmatpush1.bf16.msra.mxu1 %v2450_v17  ;;  %v2333_v17 = vld [vmem:[#allocation2 + $0x5f8] sm:$0xff] }
 0xbed   :  { %2571 = vmatpush1.bf16.msra.mxu0 %v2402_v60  ;;  %2597 = vmatprep.subr.bf16.mxu1 %v2457_v32  ;;  %v2422_v60 = vld [vmem:[#allocation2 + $0x8c0] sm:$0xff]  ;;  %v2332_v32 = vld [vmem:[#allocation2 + $0x5f0] sm:$0xff] }
 0xbee   :  { %2572 = vmatprep.subr.bf16.mxu0 %v2409_v12  ;;  %v2429_v12 = vld [vmem:[#allocation2 + $0x8f8] sm:$0xff] }
 0xbf0   :  { %2598 = vmatpush1.bf16.msra.mxu1 %v2456_v39  ;;  %v2339_v39 = vld [vmem:[#allocation2 + $0x628] sm:$0xff] }
 0xbf1   :  { %2573 = vmatpush1.bf16.msra.mxu0 %v2408_v50  ;;  %2624 = vmatprep.subr.bf16.mxu1 %v2321_v11  ;;  %v2428_v50 = vld [vmem:[#allocation2 + $0x8f0] sm:$0xff]  ;;  %v2435_v11 = vld [vmem:[#allocation2 + $0x928] sm:$0xff] }
 0xbf2   :  { %2665 = vmatprep.subr.bf16.mxu0 %v2417_v7  ;;  %v2338_v7 = vld [vmem:[#allocation2 + $0x620] sm:$0xff] }
 0xbf3   :  { %2616 = vmatmul.mubr.bf16.vlgmr.msra.gmra.mrb[20].mxu1 %v4588_v4 }
 0xbf4   :  { %2575 = vmatmul.mubr.bf16.vlgmr.msra.gmra.mrb[36].mxu0 %v4580_v33  ;;  %2625 = vmatpush1.bf16.msra.mxu1 %v2320_v24  ;;  %v2434_v24 = vld [vmem:[#allocation2 + $0x920] sm:$0xff] }
 0xbf5   :  { %2666 = vmatpush1.bf16.msra.mxu0 %v2416_v53  ;;  %2626 = vmatprep.subr.bf16.mxu1 %v2327_v63  ;;  %v2345_v53 = vld [vmem:[#allocation2 + $0x658] sm:$0xff] }
 0xbf6   :  { %2667 = vmatprep.subr.bf16.mxu0 %v2423_v41  ;;  %2697 = vmatprep.mubr.bf16.mxu0 %v5195_v59  ;;  %v2441_v63 = vld [vmem:[#allocation2 + $0x958] sm:$0xff]  ;;  %v2440_v41 = vld [vmem:[#allocation2 + $0x950] sm:$0xff] }
 0xbf7   :  { %2656 = vmatprep.mubr.bf16.mxu1 %v4586_v3  ;;  %v2344_v3 = vld [vmem:[#allocation2 + $0x650] sm:$0xff] }
 0xbf8   :  { %2627 = vmatpush1.bf16.msra.mxu1 %v2326_v2  ;;  %v2351_v2 = vld [vmem:[#allocation2 + $0x688] sm:$0xff] }
 0xbf9   :  { %2668 = vmatpush1.bf16.msra.mxu0 %v2422_v60  ;;  %2628 = vmatprep.subr.bf16.mxu1 %v2333_v17  ;;  %v2447_v60 = vld [vmem:[#allocation2 + $0x988] sm:$0xff]  ;;  %v2350_v17 = vld [vmem:[#allocation2 + $0x680] sm:$0xff] }
 0xbfa   :  { %2669 = vmatprep.subr.bf16.mxu0 %v2429_v12  ;;  %v2446_v12 = vld [vmem:[#allocation2 + $0x980] sm:$0xff] }
 0xbfc   :  { %2629 = vmatpush1.bf16.msra.mxu1 %v2332_v32  ;;  %v2357_v32 = vld [vmem:[#allocation2 + $0x6b8] sm:$0xff] }
 0xbfd   :  { %2670 = vmatpush1.bf16.msra.mxu0 %v2428_v50  ;;  %2630 = vmatprep.subr.bf16.mxu1 %v2339_v39  ;;  %v2453_v50 = vld [vmem:[#allocation2 + $0x9b8] sm:$0xff]  ;;  %v2356_v39 = vld [vmem:[#allocation2 + $0x6b0] sm:$0xff] }
 0xbfe   :  { %2671 = vmatprep.subr.bf16.mxu0 %v2435_v11  ;;  %v2452_v11 = vld [vmem:[#allocation2 + $0x9b0] sm:$0xff] }
 0xc00   :  { %2631 = vmatpush1.bf16.msra.mxu1 %v2338_v7  ;;  %v2363_v7 = vld [vmem:[#allocation2 + $0x6e8] sm:$0xff] }
 0xc01   :  { %2672 = vmatpush1.bf16.msra.mxu0 %v2434_v24  ;;  %2632 = vmatprep.subr.bf16.mxu1 %v2345_v53  ;;  %v2459_v24 = vld [vmem:[#allocation2 + $0x9e8] sm:$0xff]  ;;  %v2362_v53 = vld [vmem:[#allocation2 + $0x6e0] sm:$0xff] }
 0xc02   :  { %2673 = vmatprep.subr.bf16.mxu0 %v2441_v63  ;;  %v2458_v63 = vld [vmem:[#allocation2 + $0x9e0] sm:$0xff] }
 0xc04   :  { %2633 = vmatpush1.bf16.msra.mxu1 %v2344_v3  ;;  %v2369_v3 = vld [vmem:[#allocation2 + $0x718] sm:$0xff] }
 0xc05   :  { %2674 = vmatpush1.bf16.msra.mxu0 %v2440_v41  ;;  %2634 = vmatprep.subr.bf16.mxu1 %v2351_v2  ;;  %v2368_v41 = vld [vmem:[#allocation2 + $0x710] sm:$0xff]  ;;  %v2375_v2 = vld [vmem:[#allocation2 + $0x748] sm:$0xff] }
 0xc06   :  { %2675 = vmatprep.subr.bf16.mxu0 %v2447_v60  ;;  %v2374_v60 = vld [vmem:[#allocation2 + $0x740] sm:$0xff] }
 0xc08   :  { %2635 = vmatpush1.bf16.msra.mxu1 %v2350_v17  ;;  %v2381_v17 = vld [vmem:[#allocation2 + $0x778] sm:$0xff] }
 0xc09   :  { %2676 = vmatpush1.bf16.msra.mxu0 %v2446_v12  ;;  %2636 = vmatprep.subr.bf16.mxu1 %v2357_v32  ;;  %v2387_v12 = vld [vmem:[#allocation2 + $0x7a8] sm:$0xff]  ;;  %v5234_v32 = vld [vmem:[#allocation67_spill] sm:$0xff] }
 0xc0a   :  { %2677 = vmatprep.subr.bf16.mxu0 %v2453_v50  ;;  %v5235_v50 = vld [vmem:[#allocation37_spill] sm:$0xff] }
 0xc0c   :  { %2637 = vmatpush1.bf16.msra.mxu1 %v2356_v39  ;;  %v5236_v39 = vld [vmem:[#allocation72_spill] sm:$0xff] }
 0xc0d   :  { %2678 = vmatpush1.bf16.msra.mxu0 %v2452_v11  ;;  %2638 = vmatprep.subr.bf16.mxu1 %v2363_v7  ;;  %v5237_v11 = vld [vmem:[#allocation42_spill] sm:$0xff]  ;;  %v5238_v7 = vld [vmem:[#allocation71_spill] sm:$0xff] }
 0xc0e   :  { %2679 = vmatprep.subr.bf16.mxu0 %v2459_v24  ;;  %v5239_v24 = vld [vmem:[#allocation41_spill] sm:$0xff] }
 0xc10   :  { %2639 = vmatpush1.bf16.msra.mxu1 %v2362_v53  ;;  %v5240_v53 = vld [vmem:[#allocation76_spill] sm:$0xff] }
 0xc11   :  { %2680 = vmatpush1.bf16.msra.mxu0 %v2458_v63  ;;  %2640 = vmatprep.subr.bf16.mxu1 %v2369_v3  ;;  %v5241_v63 = vld [vmem:[#allocation46_spill] sm:$0xff]  ;;  %v5242_v3 = vld [vmem:[#allocation75_spill] sm:$0xff] }
 0xc12   :  { %2706 = vmatprep.subr.bf16.mxu0 %v4592_v6  ;;  %v2380_v6 = vld [vmem:[#allocation2 + $0x770] sm:$0xff] }
 0xc14   :  { %2698 = vmatmul.mubr.bf16.vlgmr.msra.gmra.mrb[40].mxu0 %v4588_v4  ;;  %2641 = vmatpush1.bf16.msra.mxu1 %v2368_v41  ;;  %v2386_v4 = vld [vmem:[#allocation2 + $0x7a0] sm:$0xff]  ;;  %v5243_v41 = vld [vmem:[#allocation45_spill] sm:$0xff] }
 0xc15   :  { %2707 = vmatpush1.bf16.msra.mxu0 %v4590_v5  ;;  %2642 = vmatprep.subr.bf16.mxu1 %v2375_v2  ;;  %v2393_v5 = vld [vmem:[#allocation2 + $0x7d8] sm:$0xff]  ;;  %v5244_v2 = vld [vmem:[#allocation80_spill] sm:$0xff] }
 0xc16   :  { %2708 = vmatprep.subr.bf16.mxu0 %v4604_v10  ;;  %2738 = vmatprep.mubr.bf16.mxu0 %v4584_v52  ;;  %v2399_v10 = vld [vmem:[#allocation2 + $0x808] sm:$0xff] }
 0xc18   :  { %2643 = vmatpush1.bf16.msra.mxu1 %v2374_v60  ;;  %v5245_v60 = vld [vmem:[#allocation50_spill] sm:$0xff] }
 0xc19   :  { %2709 = vmatpush1.bf16.msra.mxu0 %v4602_v9  ;;  %2644 = vmatprep.subr.bf16.mxu1 %v2381_v17  ;;  %v2392_v9 = vld [vmem:[#allocation2 + $0x7d0] sm:$0xff]  ;;  %v5246_v17 = vld [vmem:[#allocation79_spill] sm:$0xff] }
 0xc1a   :  { %2710 = vmatprep.subr.bf16.mxu0 %v4616_v15  ;;  %v2405_v15 = vld [vmem:[#allocation2 + $0x838] sm:$0xff] }
 0xc1c   :  { %2645 = vmatpush1.bf16.msra.mxu1 %v2380_v6  ;;  %v5247_v6 = vld [vmem:[#allocation49_spill] sm:$0xff] }
 0xc1d   :  { %2711 = vmatpush1.bf16.msra.mxu0 %v4614_v14  ;;  %2646 = vmatprep.subr.bf16.mxu1 %v2387_v12  ;;  %v2398_v14 = vld [vmem:[#allocation2 + $0x800] sm:$0xff]  ;;  %v5249_v12 = vld [vmem:[#allocation54_spill] sm:$0xff] }
 0xc1e   :  { %2712 = vmatprep.subr.bf16.mxu0 %v4628_v22  ;;  %v2411_v22 = vld [vmem:[#allocation2 + $0x868] sm:$0xff] }
 0xc20   :  { %2647 = vmatpush1.bf16.msra.mxu1 %v2386_v4  ;;  %v5250_v4 = vld [vmem:[#allocation83_spill] sm:$0xff] }
 0xc21   :  { %2713 = vmatpush1.bf16.msra.mxu0 %v4626_v21  ;;  %2648 = vmatprep.subr.bf16.mxu1 %v2393_v5  ;;  %v2404_v21 = vld [vmem:[#allocation2 + $0x830] sm:$0xff] }
 0xc22   :  { %2714 = vmatprep.subr.bf16.mxu0 %v4640_v29  ;;  %v5208_v29 = vld [vmem:[#allocation44_spill] sm:$0xff]  ;;  %v5251_v5 = vld [vmem:[#allocation53_spill] sm:$0xff] }
 0xc24   :  { %2649 = vmatpush1.bf16.msra.mxu1 %v2392_v9  ;;  %v5252_v9 = vld [vmem:[#allocation88_spill] sm:$0xff] }
 0xc25   :  { %2715 = vmatpush1.bf16.msra.mxu0 %v4638_v28  ;;  %2650 = vmatprep.subr.bf16.mxu1 %v2399_v10  ;;  %v2410_v28 = vld [vmem:[#allocation2 + $0x860] sm:$0xff]  ;;  %v5253_v10 = vld [vmem:[#allocation58_spill] sm:$0xff] }
 0xc26   :  { %2716 = vmatprep.subr.bf16.mxu0 %v4652_v37  ;;  %v5214_v37 = vld [vmem:[#allocation47_spill] sm:$0xff] }
 0xc28   :  { %2651 = vmatpush1.bf16.msra.mxu1 %v2398_v14 }
 0xc29   :  { %2717 = vmatpush1.bf16.msra.mxu0 %v4650_v36  ;;  %2652 = vmatprep.subr.bf16.mxu1 %v2405_v15  ;;  %v5213_v36 = vld [vmem:[#allocation113_spill] sm:$0xff] }
 0xc2a   :  { %2718 = vmatprep.subr.bf16.mxu0 %v4664_v43  ;;  %v5218_v43 = vld [vmem:[#allocation51_spill] sm:$0xff] }
 0xc2c   :  { %2653 = vmatpush1.bf16.msra.mxu1 %v2404_v21 }
 0xc2d   :  { %2719 = vmatpush1.bf16.msra.mxu0 %v4662_v42  ;;  %2654 = vmatprep.subr.bf16.mxu1 %v2411_v22  ;;  %v5217_v42 = vld [vmem:[#allocation117_spill] sm:$0xff]  ;;  %v5254_v22 = vld [vmem:[#allocation87_spill] sm:$0xff] }
 0xc2e   :  { %2720 = vmatprep.subr.bf16.mxu0 %v4676_v49  ;;  %v5224_v49 = vld [vmem:[#allocation60_spill] sm:$0xff] }
 0xc30   :  { %2655 = vmatpush1.bf16.msra.mxu1 %v2410_v28  ;;  %v5255_v28 = vld [vmem:[#allocation57_spill] sm:$0xff] }
 0xc31   :  { %2721 = vmatpush1.bf16.msra.mxu0 %v4674_v48  ;;  %2747 = vmatprep.subr.bf16.mxu1 %v4784_v62  ;;  %v5223_v48 = vld [vmem:[#allocation120_spill] sm:$0xff]  ;;  %v5231_v62 = vld [vmem:[#allocation129_spill] sm:$0xff] }
 0xc32   :  { %2722 = vmatprep.subr.bf16.mxu0 %v4688_v57  ;;  %v5229_v57 = vld [vmem:[#allocation130_spill] sm:$0xff] }
 0xc33   :  { %2657 = vmatmul.mubr.bf16.vlgmr.msra.gmra.mrb[24].mxu1 %v4580_v33  ;;  %v5196_v33 = vld [vmem:[#allocation95_spill] sm:$0xff] }
 0xc34   :  { %2748 = vmatpush1.bf16.msra.mxu1 %v4782_v8  ;;  %2779 = vmatprep.mubr.bf16.mxu1 %v5195_v59  ;;  %v5197_v8 = vld [vmem:[#allocation128_spill] sm:$0xff] }
 0xc35   :  { %2723 = vmatpush1.bf16.msra.mxu0 %v4686_v56  ;;  %2749 = vmatprep.subr.bf16.mxu1 %v4796_v55  ;;  %v5227_v55 = vld [vmem:[#allocation124_spill] sm:$0xff] }
 0xc36   :  { %2724 = vmatprep.subr.bf16.mxu0 %v4700_v1  ;;  %v5228_v56 = vld [vmem:[#allocation64_spill] sm:$0xff]  ;;  %v5233_v1 = vld [vmem:[#allocation38_spill] sm:$0xff] }
 0xc38   :  { %2750 = vmatpush1.bf16.msra.mxu1 %v4794_v51  ;;  %v5225_v51 = vld [vmem:[#allocation125_spill] sm:$0xff] }
 0xc39   :  { %2725 = vmatpush1.bf16.msra.mxu0 %v4698_v0  ;;  %2751 = vmatprep.subr.bf16.mxu1 %v4808_v45  ;;  %v5220_v45 = vld [vmem:[#allocation56_spill] sm:$0xff] }
 0xc3a   :  { %2726 = vmatprep.subr.bf16.mxu0 %v4712_v47  ;;  %v5222_v47 = vld [vmem:[#allocation55_spill] sm:$0xff]  ;;  %v5232_v0 = vld [vmem:[#allocation68_spill] sm:$0xff] }
 0xc3c   :  { %2752 = vmatpush1.bf16.msra.mxu1 %v4806_v44  ;;  %v5219_v44 = vld [vmem:[#allocation116_spill] sm:$0xff] }
 0xc3d   :  { %2727 = vmatpush1.bf16.msra.mxu0 %v4710_v46  ;;  %2753 = vmatprep.subr.bf16.mxu1 %v4820_v31  ;;  %v5210_v31 = vld [vmem:[#allocation43_spill] sm:$0xff]  ;;  %v5221_v46 = vld [vmem:[#allocation121_spill] sm:$0xff] }
 0xc3e   :  { %2728 = vmatprep.subr.bf16.mxu0 %v4724_v34  ;;  %v5212_v34 = vld [vmem:[#allocation48_spill] sm:$0xff] }
 0xc40   :  { %2754 = vmatpush1.bf16.msra.mxu1 %v4818_v30  ;;  %v5209_v30 = vld [vmem:[#allocation109_spill] sm:$0xff] }
 0xc41   :  { %2729 = vmatpush1.bf16.msra.mxu0 %v4722_v19  ;;  %2755 = vmatprep.subr.bf16.mxu1 %v4832_v38  ;;  %v5211_v19 = vld [vmem:[#allocation108_spill] sm:$0xff] }
 0xc42   :  { %2730 = vmatprep.subr.bf16.mxu0 %v4736_v40  ;;  %v5215_v38 = vld [vmem:[#allocation112_spill] sm:$0xff] }
 0xc43   :  { %v5216_v40 = vld [vmem:[#allocation52_spill] sm:$0xff] }
 0xc44   :  { %2756 = vmatpush1.bf16.msra.mxu1 %v4830_v16  ;;  %v5198_v16 = vld [vmem:[#allocation36_spill] sm:$0xff] }
 0xc45   :  { %2731 = vmatpush1.bf16.msra.mxu0 %v4734_v18  ;;  %2757 = vmatprep.subr.bf16.mxu1 %v4844_v23  ;;  %v5200_v18 = vld [vmem:[#allocation34_spill] sm:$0xff]  ;;  %v5205_v23 = vld [vmem:[#allocation105_spill] sm:$0xff] }
 0xc46   :  { %2732 = vmatprep.subr.bf16.mxu0 %v4748_v25  ;;  %v5206_v25 = vld [vmem:[#allocation39_spill] sm:$0xff] }
 0xc48   :  { %2758 = vmatpush1.bf16.msra.mxu1 %v4842_v26  ;;  %v5207_v26 = vld [vmem:[#allocation104_spill] sm:$0xff] }
 0xc49   :  { %2733 = vmatpush1.bf16.msra.mxu0 %v4746_v27  ;;  %2759 = vmatprep.subr.bf16.mxu1 %v4856_v61  ;;  %v5199_v27 = vld [vmem:[#allocation101_spill] sm:$0xff]  ;;  %v5202_v61 = vld [vmem:[#allocation35_spill] sm:$0xff] }
 0xc4a   :  { %2734 = vmatprep.subr.bf16.mxu0 %v4760_v20  ;;  %v5201_v20 = vld [vmem:[#allocation33_spill] sm:$0xff] }
 0xc4c   :  { %2760 = vmatpush1.bf16.msra.mxu1 %v4854_v35  ;;  %v5204_v35 = vld [vmem:[#allocation40_spill] sm:$0xff] }
 0xc4d   :  { %2735 = vmatpush1.bf16.msra.mxu0 %v4758_v13  ;;  %2761 = vmatprep.subr.bf16.mxu1 %v4868_v58  ;;  %v5203_v13 = vld [vmem:[#allocation100_spill] sm:$0xff]  ;;  %v5230_v58 = vld [vmem:[#allocation63_spill] sm:$0xff] }
 0xc4e   :  { %2736 = vmatprep.subr.bf16.mxu0 %v4772_v54  ;;  %v5226_v54 = vld [vmem:[#allocation59_spill] sm:$0xff] }
 0xc50   :  { %2762 = vmatpush1.bf16.msra.mxu1 %v5197_v8  ;;  %v5256_v8 = vld [vmem:[#allocation92_spill] sm:$0xff] }
 0xc51   :  { %2737 = vmatpush1.bf16.msra.mxu0 %v5196_v33  ;;  %2788 = vmatprep.subr.bf16.mxu1 %v5198_v16  ;;  %v5257_v16 = vld [vmem:[#allocation62_spill] sm:$0xff] }
 0xc52   :  { %2829 = vmatprep.subr.bf16.mxu0 %v5199_v27  ;;  %v5258_v27 = vld [vmem:[#allocation91_spill] sm:$0xff] }
 0xc53   :  { %2780 = vmatmul.mubr.bf16.vlgmr.msra.gmra.mrb[28].mxu1 %v5201_v20 }
 0xc54   :  { %2739 = vmatmul.mubr.bf16.vlgmr.msra.gmra.mrb[44].mxu0 %v5200_v18  ;;  %2789 = vmatpush1.bf16.msra.mxu1 %v5202_v61  ;;  %v5259_v61 = vld [vmem:[#allocation61_spill] sm:$0xff] }
 0xc55   :  { %2830 = vmatpush1.bf16.msra.mxu0 %v5203_v13  ;;  %2790 = vmatprep.subr.bf16.mxu1 %v5204_v35  ;;  %v5260_v13 = vld [vmem:[#allocation97_spill] sm:$0xff]  ;;  %v5261_v35 = vld [vmem:[#allocation66_spill] sm:$0xff] }
 0xc56   :  { %2831 = vmatprep.subr.bf16.mxu0 %v5205_v23  ;;  %2861 = vmatprep.mubr.bf16.mxu0 %v5195_v59  ;;  %v5262_v23 = vld [vmem:[#allocation96_spill] sm:$0xff] }
 0xc57   :  { %2820 = vmatprep.mubr.bf16.mxu1 %v4584_v52 }
 0xc58   :  { %2791 = vmatpush1.bf16.msra.mxu1 %v5206_v25  ;;  %v5263_v25 = vld [vmem:[#allocation65_spill] sm:$0xff] }
 0xc59   :  { %2832 = vmatpush1.bf16.msra.mxu0 %v5207_v26  ;;  %2792 = vmatprep.subr.bf16.mxu1 %v5208_v29  ;;  %v5264_v26 = vld [vmem:[#allocation70_spill] sm:$0xff]  ;;  %v5265_v29 = vld [vmem:[#allocation103_spill] sm:$0xff] }
 0xc5a   :  { %2833 = vmatprep.subr.bf16.mxu0 %v5209_v30  ;;  %v5266_v30 = vld [vmem:[#allocation69_spill] sm:$0xff] }
 0xc5c   :  { %2793 = vmatpush1.bf16.msra.mxu1 %v5210_v31  ;;  %v5267_v31 = vld [vmem:[#allocation102_spill] sm:$0xff] }
 0xc5d   :  { %2834 = vmatpush1.bf16.msra.mxu0 %v5211_v19  ;;  %2794 = vmatprep.subr.bf16.mxu1 %v5212_v34  ;;  %v5268_v19 = vld [vmem:[#allocation74_spill] sm:$0xff]  ;;  %v5269_v34 = vld [vmem:[#allocation107_spill] sm:$0xff] }
 0xc5e   :  { %2835 = vmatprep.subr.bf16.mxu0 %v5213_v36  ;;  %v5270_v36 = vld [vmem:[#allocation73_spill] sm:$0xff] }
 0xc60   :  { %2795 = vmatpush1.bf16.msra.mxu1 %v5214_v37  ;;  %v5271_v37 = vld [vmem:[#allocation106_spill] sm:$0xff] }
 0xc61   :  { %2836 = vmatpush1.bf16.msra.mxu0 %v5215_v38  ;;  %2796 = vmatprep.subr.bf16.mxu1 %v5216_v40  ;;  %v5272_v38 = vld [vmem:[#allocation78_spill] sm:$0xff]  ;;  %v5273_v40 = vld [vmem:[#allocation111_spill] sm:$0xff] }
 0xc62   :  { %2837 = vmatprep.subr.bf16.mxu0 %v5217_v42  ;;  %v5274_v42 = vld [vmem:[#allocation77_spill] sm:$0xff] }
 0xc64   :  { %2797 = vmatpush1.bf16.msra.mxu1 %v5218_v43  ;;  %v5275_v43 = vld [vmem:[#allocation110_spill] sm:$0xff] }
 0xc65   :  { %2838 = vmatpush1.bf16.msra.mxu0 %v5219_v44  ;;  %2798 = vmatprep.subr.bf16.mxu1 %v5220_v45  ;;  %v5276_v44 = vld [vmem:[#allocation82_spill] sm:$0xff]  ;;  %v5277_v45 = vld [vmem:[#allocation115_spill] sm:$0xff] }
 0xc66   :  { %2839 = vmatprep.subr.bf16.mxu0 %v5221_v46  ;;  %v5278_v46 = vld [vmem:[#allocation81_spill] sm:$0xff] }
 0xc68   :  { %2799 = vmatpush1.bf16.msra.mxu1 %v5222_v47  ;;  %v5279_v47 = vld [vmem:[#allocation114_spill] sm:$0xff] }
 0xc69   :  { %2840 = vmatpush1.bf16.msra.mxu0 %v5223_v48  ;;  %2800 = vmatprep.subr.bf16.mxu1 %v5224_v49  ;;  %v5281_v48 = vld [vmem:[#allocation119_spill] sm:$0xff]  ;;  %v5282_v49 = vld [vmem:[#allocation85_spill] sm:$0xff] }
 0xc6a   :  { %2841 = vmatprep.subr.bf16.mxu0 %v5225_v51  ;;  %v5283_v51 = vld [vmem:[#allocation118_spill] sm:$0xff] }
 0xc6c   :  { %2801 = vmatpush1.bf16.msra.mxu1 %v5226_v54  ;;  %v5284_v54 = vld [vmem:[#allocation90_spill] sm:$0xff] }
 0xc6d   :  { %2842 = vmatpush1.bf16.msra.mxu0 %v5227_v55  ;;  %2802 = vmatprep.subr.bf16.mxu1 %v5228_v56  ;;  %v5285_v55 = vld [vmem:[#allocation123_spill] sm:$0xff] }
 0xc6e   :  { %2843 = vmatprep.subr.bf16.mxu0 %v5229_v57 }
 0xc70   :  { %2803 = vmatpush1.bf16.msra.mxu1 %v5230_v58 }
 0xc71   :  { %2844 = vmatpush1.bf16.msra.mxu0 %v5231_v62  ;;  %2804 = vmatprep.subr.bf16.mxu1 %v5232_v0 }
 0xc72   :  { %2870 = vmatprep.subr.bf16.mxu0 %v5233_v1  ;;  %v5286_v1 = vld [vmem:[#allocation89_spill] sm:$0xff] }
 0xc74   :  { %2862 = vmatmul.mubr.bf16.vlgmr.msra.gmra.mrb[48].mxu0 %v5201_v20  ;;  %2805 = vmatpush1.bf16.msra.mxu1 %v5234_v32  ;;  %v5287_v32 = vld [vmem:[#allocation122_spill] sm:$0xff] }
 0xc75   :  { %2871 = vmatpush1.bf16.msra.mxu0 %v5235_v50  ;;  %2806 = vmatprep.subr.bf16.mxu1 %v5236_v39  ;;  %v5288_v39 = vld [vmem:[#allocation94_spill] sm:$0xff] }
 0xc76   :  { %2872 = vmatprep.subr.bf16.mxu0 %v5237_v11  ;;  %2902 = vmatprep.mubr.bf16.mxu0 %v4584_v52  ;;  %v5248_v52 = vld [vmem:[#allocation84_spill] sm:$0xff]  ;;  %v5289_v11 = vld [vmem:[#allocation127_spill] sm:$0xff] }
 0xc78   :  { %2807 = vmatpush1.bf16.msra.mxu1 %v5238_v7  ;;  %v5290_v7 = vld [vmem:[#allocation93_spill] sm:$0xff] }
 0xc79   :  { %2873 = vmatpush1.bf16.msra.mxu0 %v5239_v24  ;;  %2808 = vmatprep.subr.bf16.mxu1 %v5240_v53  ;;  %v5291_v24 = vld [vmem:[#allocation126_spill] sm:$0xff]  ;;  %v5292_v53 = vld [vmem:[#allocation99_spill] sm:$0xff] }
 0xc7a   :  { %2874 = vmatprep.subr.bf16.mxu0 %v5241_v63  ;;  %v5293_v63 = vld [vmem:[#allocation132_spill] sm:$0xff] }
 0xc7c   :  { %2809 = vmatpush1.bf16.msra.mxu1 %v5242_v3  ;;  %v5294_v3 = vld [vmem:[#allocation98_spill] sm:$0xff] }
 0xc7d   :  { %2875 = vmatpush1.bf16.msra.mxu0 %v5243_v41  ;;  %2810 = vmatprep.subr.bf16.mxu1 %v5244_v2  ;;  %v5295_v41 = vld [vmem:[#allocation131_spill] sm:$0xff] }
 0xc7e   :  { %2876 = vmatprep.subr.bf16.mxu0 %v5245_v60 }
 0xc80   :  { %2811 = vmatpush1.bf16.msra.mxu1 %v5246_v17 }
 0xc81   :  { %2877 = vmatpush1.bf16.msra.mxu0 %v5247_v6  ;;  %2812 = vmatprep.subr.bf16.mxu1 %v5248_v52 }
 0xc82   :  { %2878 = vmatprep.subr.bf16.mxu0 %v5249_v12 }
 0xc84   :  { %2813 = vmatpush1.bf16.msra.mxu1 %v5250_v4 }
 0xc85   :  { %2879 = vmatpush1.bf16.msra.mxu0 %v5251_v5  ;;  %2814 = vmatprep.subr.bf16.mxu1 %v5252_v9 }
 0xc86   :  { %2880 = vmatprep.subr.bf16.mxu0 %v5253_v10 }
 0xc87   :  { %v2535_v14 = vpop.f32.mrb[32].mxu0 }
 0xc88   :  { %v2537_v15 = vpop.f32.mrb[33].mxu0  ;;  %2815 = vmatpush1.bf16.msra.mxu1 %v5254_v22 }
 0xc89   :  { %v2539_v21 = vpop.f32.mrb[34].mxu0  ;;  %2881 = vmatpush1.bf16.msra.mxu0 %v5255_v28  ;;  %2816 = vmatprep.subr.bf16.mxu1 %v5256_v8 }
 0xc8a   :  { %v2540_v33 = vpop.f32.mrb[35].mxu0  ;;  %2882 = vmatprep.subr.bf16.mxu0 %v5257_v16 }
 0xc8c   :  { %2817 = vmatpush1.bf16.msra.mxu1 %v5258_v27  ;;  %v2952_v27 = vld [vmem:[#allocation2 + $0xc0] sm:$0x1] }
 0xc8d   :  { %2883 = vmatpush1.bf16.msra.mxu0 %v5259_v61  ;;  %2818 = vmatprep.subr.bf16.mxu1 %v5260_v13  ;;  %v2953_v61 = vld [vmem:[#allocation2 + $0xc8] sm:$0x1]  ;;  %v2958_v13 = vunpack.c.l.bf16 %v2952_v27 }
 0xc8e   :  { %2884 = vmatprep.subr.bf16.mxu0 %v5261_v35  ;;  %v5296_v35 = vld [vmem:[#allocation32_spill] sm:$0xff] }
 0xc90   :  { %2819 = vmatpush1.bf16.msra.mxu1 %v5262_v23  ;;  %v2966_v23 = vsub.s32 1, %v5296_v35 }
 0xc91   :  { %2885 = vmatpush1.bf16.msra.mxu0 %v5263_v25  ;;  %2911 = vmatprep.subr.bf16.mxu1 %v5265_v29  ;;  %v2959_v25 = vunpack.c.l.bf16 %v2953_v61 }
 0xc92   :  { %2886 = vmatprep.subr.bf16.mxu0 %v5264_v26 }
 0xc93   :  { %2821 = vmatmul.mubr.bf16.vlgmr.msra.gmra.mrb[32].mxu1 %v5200_v18 }
 0xc94   :  { %2912 = vmatpush1.bf16.msra.mxu1 %v5267_v31  ;;  %2943 = vmatprep.mubr.bf16.mxu1 %v5195_v59  ;;  %v5280_v59 = vld [vmem:[#allocation86_spill] sm:$0xff]  ;;  %v2967_v31 = vrot.slane %v2958_v13, %v2966_v23 }
 0xc95   :  { %2887 = vmatpush1.bf16.msra.mxu0 %v5266_v30  ;;  %2913 = vmatprep.subr.bf16.mxu1 %v5269_v34 }
 0xc96   :  { %2888 = vmatprep.subr.bf16.mxu0 %v5268_v19 }
 0xc98   :  { %2914 = vmatpush1.bf16.msra.mxu1 %v5271_v37  ;;  %v2971_v37 = vrot.slane %v2959_v25, %v2966_v23 }
 0xc99   :  { %2889 = vmatpush1.bf16.msra.mxu0 %v5270_v36  ;;  %2915 = vmatprep.subr.bf16.mxu1 %v5273_v40 }
 0xc9a   :  { %2890 = vmatprep.subr.bf16.mxu0 %v5272_v38 }
 0xc9c   :  { %2916 = vmatpush1.bf16.msra.mxu1 %v5275_v43 }
 0xc9d   :  { %2891 = vmatpush1.bf16.msra.mxu0 %v5274_v42  ;;  %2917 = vmatprep.subr.bf16.mxu1 %v5277_v45 }
 0xc9e   :  { %2892 = vmatprep.subr.bf16.mxu0 %v5276_v44 }
 0xca0   :  { %2918 = vmatpush1.bf16.msra.mxu1 %v5279_v47 }
 0xca1   :  { %2893 = vmatpush1.bf16.msra.mxu0 %v5278_v46  ;;  %2919 = vmatprep.subr.bf16.mxu1 %v5281_v48 }
 0xca2   :  { %2894 = vmatprep.subr.bf16.mxu0 %v5280_v59 }
 0xca4   :  { %2920 = vmatpush1.bf16.msra.mxu1 %v5283_v51 }
 0xca5   :  { %2895 = vmatpush1.bf16.msra.mxu0 %v5282_v49  ;;  %2921 = vmatprep.subr.bf16.mxu1 %v5285_v55 }
 0xca6   :  { %2896 = vmatprep.subr.bf16.mxu0 %v5284_v54  ;;  %v2494_v56 = vpop.f32.mrb[16].mxu1 }
 0xca7   :  { %v2536_v57 = vadd.f32 %v2535_v14, %v2494_v56  ;;  %v2496_v58 = vpop.f32.mrb[17].mxu1  ;;  %v2954_v56 = vld [vmem:[#allocation2 + $0xd0] sm:$0x1] }
 0xca8   :  { %v2538_v62 = vadd.f32 %v2537_v15, %v2496_v58  ;;  %v2498_v0 = vpop.f32.mrb[18].mxu1  ;;  %2922 = vmatpush1.bf16.msra.mxu1 %v5287_v32  ;;  %v2960_v58 = vunpack.c.l.bf16 %v2954_v56 }
 0xca9   :  { %2897 = vmatpush1.bf16.msra.mxu0 %v5286_v1  ;;  %v2499_v50 = vpop.f32.mrb[19].mxu1  ;;  %2923 = vmatprep.subr.bf16.mxu1 %v5289_v11 }
 0xcaa   :  { %2898 = vmatprep.subr.bf16.mxu0 %v5288_v39  ;;  %v2975_v32 = vrot.slane %v2960_v58, %v2966_v23 }
 0xcac   :  { %2924 = vmatpush1.bf16.msra.mxu1 %v5291_v24 }
 0xcad   :  { %2899 = vmatpush1.bf16.msra.mxu0 %v5290_v7  ;;  %2925 = vmatprep.subr.bf16.mxu1 %v5293_v63 }
 0xcae   :  { %2900 = vmatprep.subr.bf16.mxu0 %v5292_v53 }
 0xcb0   :  { %2926 = vmatpush1.bf16.msra.mxu1 %v5295_v41 }
 0xcb1   :  { %2901 = vmatpush1.bf16.msra.mxu0 %v5294_v3 }
 0xcb3   :  { %2944 = vmatmul.mubr.bf16.vlgmr.msra.gmra.mrb[36].mxu1 %v5201_v20 }
 0xcb4   :  { %2903 = vmatmul.mubr.bf16.vlgmr.msra.gmra.mrb[52].mxu0 %v5200_v18 }
 0xcc6   :  { %v2617_v60 = vpop.f32.mrb[20].mxu1 }
 0xcc7   :  { %v2576_v2 = vpop.f32.mrb[36].mxu0  ;;  %v2619_v52 = vpop.f32.mrb[21].mxu1 }
 0xcc8   :  { %v2618_v17 = vadd.f32 %v2617_v60, %v2576_v2  ;;  %v2578_v6 = vpop.f32.mrb[37].mxu0  ;;  %v2621_v5 = vpop.f32.mrb[22].mxu1 }
 0xcc9   :  { %v2620_v12 = vadd.f32 %v2619_v52, %v2578_v6  ;;  %v2580_v4 = vpop.f32.mrb[38].mxu0  ;;  %v2622_v10 = vpop.f32.mrb[23].mxu1  ;;  %v2956_v6 = vld [vmem:[#allocation2 + $0xe0] sm:$0x1]  ;;  %v2957_v52 = vld [vmem:[#allocation2 + $0xe8] sm:$0x1] }
 0xcca   :  { %v2581_v9 = vpop.f32.mrb[39].mxu0  ;;  %v2962_v4 = vunpack.c.l.bf16 %v2956_v6  ;;  %v2963_v5 = vunpack.c.l.bf16 %v2957_v52 }
 0xce7   :  { %v2699_v14 = vpop.f32.mrb[40].mxu0 }
 0xce8   :  { %v2701_v15 = vpop.f32.mrb[41].mxu0 }
 0xce9   :  { %v2703_v21 = vpop.f32.mrb[42].mxu0 }
 0xcea   :  { %v2704_v22 = vpop.f32.mrb[43].mxu0 }
 0xceb   :  { %v2987_v22 = vrot.slane %v2963_v5, %v2966_v23 }
 0xd06   :  { %v2658_v28 = vpop.f32.mrb[24].mxu1 }
 0xd07   :  { %v2700_v33 = vadd.f32 %v2699_v14, %v2658_v28  ;;  %v2660_v8 = vpop.f32.mrb[25].mxu1  ;;  %v2983_v14 = vrot.slane %v2962_v4, %v2966_v23 }
 0xd08   :  { %v2702_v18 = vadd.f32 %v2701_v15, %v2660_v8  ;;  %v2662_v16 = vpop.f32.mrb[26].mxu1 }
 0xd09   :  { %v2663_v20 = vpop.f32.mrb[27].mxu1 }
 0xd26   :  { %v2781_v29 = vpop.f32.mrb[28].mxu1 }
 0xd27   :  { %v2740_v26 = vpop.f32.mrb[44].mxu0  ;;  %v2783_v34 = vpop.f32.mrb[29].mxu1 }
 0xd28   :  { %v2741_v30 = vadd.f32 %v2740_v26, %v2536_v57  ;;  %v2742_v19 = vpop.f32.mrb[45].mxu0  ;;  %v2785_v40 = vpop.f32.mrb[30].mxu1  ;;  %v2955_v57 = vld [vmem:[#allocation2 + $0xd8] sm:$0x1] }
 0xd29   :  { %v2743_v36 = vadd.f32 %v2742_v19, %v2538_v62  ;;  %v2744_v38 = vpop.f32.mrb[46].mxu0  ;;  %v2786_v44 = vpop.f32.mrb[31].mxu1  ;;  %v2961_v62 = vunpack.c.l.bf16 %v2955_v57 }
 0xd2a   :  { %v2782_v42 = vadd.f32 %v2781_v29, %v2741_v30  ;;  %v2745_v43 = vpop.f32.mrb[47].mxu0 }
 0xd2b   :  { %v2784_v45 = vadd.f32 %v2783_v34, %v2743_v36  ;;  %v2979_v11 = vrot.slane %v2961_v62, %v2966_v23 }
 0xd2c   :  { %v5047_v46 = vadd.f32 %v2967_v31, %v2782_v42 }
 0xd2d   :  { %v2989_v47 = vadd.f32 %v2971_v37, %v2784_v45 }
 0xd2e   :  { %v2994_v59 = vmax.f32 %v5047_v46, 0.0 }
 0xd2f   :  { %v2995_v48 = vmax.f32 %v2989_v47, 0.0 }
 0xd47   :  { %v2863_v49 = vpop.f32.mrb[48].mxu0 }
 0xd48   :  { %v2865_v51 = vpop.f32.mrb[49].mxu0 }
 0xd49   :  { %v2867_v54 = vpop.f32.mrb[50].mxu0 }
 0xd4a   :  { %v2868_v55 = vpop.f32.mrb[51].mxu0 }
 0xd66   :  { %v2822_v0 = vpop.f32.mrb[32].mxu1 }
 0xd67   :  { %v2823_v1 = vadd.f32 %v2822_v0, %v2618_v17  ;;  %v2824_v50 = vpop.f32.mrb[33].mxu1 }
 0xd68   :  { %v2825_v39 = vadd.f32 %v2824_v50, %v2620_v12  ;;  %v2826_v7 = vpop.f32.mrb[34].mxu1 }
 0xd69   :  { %v2864_v24 = vadd.f32 %v2863_v49, %v2823_v1  ;;  %v2827_v53 = vpop.f32.mrb[35].mxu1 }
 0xd6a   :  { %v2866_v63 = vadd.f32 %v2865_v51, %v2825_v39 }
 0xd6b   :  { %v5050_v3 = vadd.f32 %v2975_v32, %v2864_v24 }
 0xd6c   :  { %v2991_v41 = vadd.f32 %v2979_v11, %v2866_v63 }
 0xd6d   :  { %v2996_v2 = vmax.f32 %v5050_v3, 0.0 }
 0xd6e   :  { %v2997_v60 = vmax.f32 %v2991_v41, 0.0 }
 0xd86   :  { %v2945_v17 = vpop.f32.mrb[36].mxu1 }
 0xd87   :  { %v2904_v9 = vpop.f32.mrb[52].mxu0  ;;  %v2947_v15 = vpop.f32.mrb[37].mxu1 }
 0xd88   :  { %v2905_v10 = vadd.f32 %v2904_v9, %v2700_v33  ;;  %v2906_v12 = vpop.f32.mrb[53].mxu0  ;;  %v2949_v8 = vpop.f32.mrb[38].mxu1 }
 0xd89   :  { %v2907_v21 = vadd.f32 %v2906_v12, %v2702_v18  ;;  %v2908_v28 = vpop.f32.mrb[54].mxu0  ;;  %v2950_v27 = vpop.f32.mrb[39].mxu1 }
 0xd8a   :  { %v2946_v16 = vadd.f32 %v2945_v17, %v2905_v10  ;;  %v2909_v20 = vpop.f32.mrb[55].mxu0 }
 0xd8b   :  { %v2948_v61 = vadd.f32 %v2947_v15, %v2907_v21 }
 0xd8c   :  { %v5053_v13 = vadd.f32 %v2983_v14, %v2946_v16 }
 0xd8d   :  { %v5055_v35 = vadd.f32 %v2987_v22, %v2948_v61 }
 0xd8e   :  { %v2998_v25 = vmax.f32 %v5053_v13, 0.0 }
 0xd8f   :  { %v2999_v26 = vmax.f32 %v5055_v35, 0.0 }
 0xd90   :  { %4223 = dma.done.wait [#allocation4 + $0x3], 12416 }
 0xd91   :  { %4224 = vsyncadd [#allocation4 + $0x3], 4294954880  ;;  %3168 = vmatprep.mubr.f32.mxu1 %v2995_v48  ;;  %3238 = vmatprep.mubr.f32.mxu0 %v2997_v60  ;;  %v3019_v33 = vld [vmem:[#allocation3 + $0x80] sm:$0xff]  ;;  %v3020_v18 = vld [vmem:[#allocation3 + $0x88] sm:$0xff]  ;;  %s4258_s6 = smov [#allocation13]  }
 0xd92   :  { %v3003_v23 = vld [vmem:[#allocation3] sm:$0xff]  ;;  %v3867_v29 = vpack.c.bf16 %v3020_v18, %v3019_v33  ;;  %v3004_v30 = vld [vmem:[#allocation3 + $0x8] sm:$0xff]  ;;  %v3021_v40 = vld [vmem:[#allocation3 + $0x90] sm:$0xff]  ;;  %s3321_s2 = sshll.u32 %s4258_s6, 4  ;;  %s3322_s2 = int_to_ptr.vmem [resolvable:$true] %s3321_s2 }
 0xd93   :  { %v3051_v31 = vld [vmem:[#allocation3 + $0x180] sm:$0xff]  ;;  %v3052_v19 = vld [vmem:[#allocation3 + $0x188] sm:$0xff]  ;;  %v3869_v34 = vpack.c.bf16 %v3004_v30, %v3003_v23  ;;  %v3022_v43 = vld [vmem:[#allocation3 + $0x98] sm:$0xff]  ;;  %s4189_s25 = scalar_lea.vmem %s3322_s2, 32  ;;  %p4194_p13 = scmp.lt.s32.totalorder %s3322_s2, %s3322_s2 }
 0xd94   :  { %v3899_v36 = vpack.c.bf16 %v3052_v19, %v3051_v31  ;;  %v3035_v37 = vld [vmem:[#allocation3 + $0x100] sm:$0xff]  ;;  %v3036_v38 = vld [vmem:[#allocation3 + $0x108] sm:$0xff]  ;;  %3868 = vmatprep.subr.bf16.mxu1 %v3867_v29  ;;  %v3005_v44 = vld [vmem:[#allocation3 + $0x10] sm:$0xff]  ;;  %v3871_v47 = vpack.c.bf16 %v3022_v43, %v3021_v40  ;;  %p4190_p12 = scmp.ne.s32.totalorder %s3322_s2, %s4189_s25  ;;  %p4195_p0 = scmp.lt.s32.totalorder %s4189_s25, %s4189_s25 }
 0xd95   :  { %v3901_v42 = vpack.c.bf16 %v3036_v38, %v3035_v37  ;;  %v3006_v45 = vld [vmem:[#allocation3 + $0x18] sm:$0xff]  ;;  %3870 = vmatpush3.bf16.msra.mxu1 %v3869_v34  ;;  %v3053_v49 = vld [vmem:[#allocation3 + $0x190] sm:$0xff]  ;;  %v3023_v57 = vld [vmem:[#allocation3 + $0xa0] sm:$0xff] }
 0xd96   :  { %3900 = vmatprep.subr.bf16.mxu0 %v3899_v36  ;;  %v3873_v48 = vpack.c.bf16 %v3006_v45, %v3005_v44  ;;  %v3054_v51 = vld [vmem:[#allocation3 + $0x198] sm:$0xff]  ;;  %v3037_v54 = vld [vmem:[#allocation3 + $0x110] sm:$0xff]  ;;  %v3024_v58 = vld [vmem:[#allocation3 + $0xa8] sm:$0xff]  ;;  %3872 = vmatprep.subr.bf16.mxu1 %v3871_v47  ;;  %p4196_p1 = por %p4195_p0, %p4194_p13 }
 0xd97   :  { %3902 = vmatpush3.bf16.msra.mxu0 %v3901_v42  ;;  %v3903_v55 = vpack.c.bf16 %v3054_v51, %v3053_v49  ;;  %v3038_v56 = vld [vmem:[#allocation3 + $0x118] sm:$0xff]  ;;  %v3875_v0 = vpack.c.bf16 %v3024_v58, %v3023_v57  ;;  %v3007_v1 = vld [vmem:[#allocation3 + $0x20] sm:$0xff]  ;;  %v3008_v32 = vld [vmem:[#allocation3 + $0x28] sm:$0xff] }
 0xd98   :  { %v3905_v62 = vpack.c.bf16 %v3038_v56, %v3037_v54  ;;  %v3055_v50 = vld [vmem:[#allocation3 + $0x1a0] sm:$0xff]  ;;  %v3056_v39 = vld [vmem:[#allocation3 + $0x1a8] sm:$0xff]  ;;  %v3877_v24 = vpack.c.bf16 %v3008_v32, %v3007_v1  ;;  %v3025_v63 = vld [vmem:[#allocation3 + $0xb0] sm:$0xff]  ;;  %p4197_p2 = pnand %p4196_p1, %p4190_p12 }
 0xd99   :  { %3904 = vmatprep.subr.bf16.mxu0 %v3903_v55  ;;  %v3039_v11 = vld [vmem:[#allocation3 + $0x120] sm:$0xff]  ;;  %v3040_v7 = vld [vmem:[#allocation3 + $0x128] sm:$0xff]  ;;  %3874 = vmatpush3.bf16.msra.mxu1 %v3873_v48  ;;  %v3907_v53 = vpack.c.bf16 %v3056_v39, %v3055_v50  ;;  %v3026_v41 = vld [vmem:[#allocation3 + $0xb8] sm:$0xff] }
 0xd9a   :  { %v3009_v60 = vld [vmem:[#allocation3 + $0x30] sm:$0xff]  ;;  %3876 = vmatprep.subr.bf16.mxu1 %v3875_v0  ;;  %v3909_v6 = vpack.c.bf16 %v3040_v7, %v3039_v11  ;;  %v3879_v52 = vpack.c.bf16 %v3026_v41, %v3025_v63  ;;  %v3010_v4 = vld [vmem:[#allocation3 + $0x38] sm:$0xff]  ;;  %v3027_v12 = vld [vmem:[#allocation3 + $0xc0] sm:$0xff] }
 0xd9b   :  { %3906 = vmatpush3.bf16.msra.mxu0 %v3905_v62  ;;  %v3057_v5 = vld [vmem:[#allocation3 + $0x1b0] sm:$0xff]  ;;  %v3058_v9 = vld [vmem:[#allocation3 + $0x1b8] sm:$0xff]  ;;  %v3028_v15 = vld [vmem:[#allocation3 + $0xc8] sm:$0xff]  ;;  %v3881_v21 = vpack.c.bf16 %v3010_v4, %v3009_v60 }
 0xd9c   :  { %3908 = vmatprep.subr.bf16.mxu0 %v3907_v53  ;;  %v3911_v17 = vpack.c.bf16 %v3058_v9, %v3057_v5  ;;  %v3041_v10 = vld [vmem:[#allocation3 + $0x130] sm:$0xff]  ;;  %v3042_v14 = vld [vmem:[#allocation3 + $0x138] sm:$0xff]  ;;  %v3059_v22 = vld [vmem:[#allocation3 + $0x1c0] sm:$0xff]  ;;  %v3883_v16 = vpack.c.bf16 %v3028_v15, %v3027_v12 }
 0xd9d   :  { %3878 = vmatpush3.bf16.msra.mxu1 %v3877_v24  ;;  %v3060_v28 = vld [vmem:[#allocation3 + $0x1c8] sm:$0xff]  ;;  %v3913_v8 = vpack.c.bf16 %v3042_v14, %v3041_v10  ;;  %v3011_v20 = vld [vmem:[#allocation3 + $0x40] sm:$0xff]  ;;  %v3029_v23 = vld [vmem:[#allocation3 + $0xd0] sm:$0xff] }
 0xd9e   :  { %3880 = vmatprep.subr.bf16.mxu1 %v3879_v52  ;;  %v3012_v27 = vld [vmem:[#allocation3 + $0x48] sm:$0xff]  ;;  %v3043_v61 = vld [vmem:[#allocation3 + $0x140] sm:$0xff]  ;;  %v3915_v33 = vpack.c.bf16 %v3060_v28, %v3059_v22  ;;  %v3030_v29 = vld [vmem:[#allocation3 + $0xd8] sm:$0xff] }
 0xd9f   :  { %3910 = vmatpush3.bf16.msra.mxu0 %v3909_v6  ;;  %v3044_v18 = vld [vmem:[#allocation3 + $0x148] sm:$0xff]  ;;  %v3061_v30 = vld [vmem:[#allocation3 + $0x1d0] sm:$0xff]  ;;  %v3062_v31 = vld [vmem:[#allocation3 + $0x1d8] sm:$0xff]  ;;  %v3885_v19 = vpack.c.bf16 %v3012_v27, %v3011_v20  ;;  %v3887_v36 = vpack.c.bf16 %v3030_v29, %v3029_v23 }
 0xda0   :  { %3912 = vmatprep.subr.bf16.mxu0 %v3911_v17  ;;  %v3917_v34 = vpack.c.bf16 %v3044_v18, %v3043_v61  ;;  %v3013_v37 = vld [vmem:[#allocation3 + $0x50] sm:$0xff]  ;;  %v3014_v38 = vld [vmem:[#allocation3 + $0x58] sm:$0xff]  ;;  %v3919_v42 = vpack.c.bf16 %v3062_v31, %v3061_v30  ;;  %v3031_v44 = vld [vmem:[#allocation3 + $0xe0] sm:$0xff] }
 0xda1   :  { %3882 = vmatpush3.bf16.msra.mxu1 %v3881_v21  ;;  %v3045_v40 = vld [vmem:[#allocation3 + $0x150] sm:$0xff]  ;;  %v3046_v43 = vld [vmem:[#allocation3 + $0x158] sm:$0xff]  ;;  %v3032_v45 = vld [vmem:[#allocation3 + $0xe8] sm:$0xff]  ;;  %v3889_v49 = vpack.c.bf16 %v3014_v38, %v3013_v37 }
 0xda2   :  { %3884 = vmatprep.subr.bf16.mxu1 %v3883_v16  ;;  %v3063_v47 = vld [vmem:[#allocation3 + $0x1e0] sm:$0xff]  ;;  %v3064_v48 = vld [vmem:[#allocation3 + $0x1e8] sm:$0xff]  ;;  %v3921_v51 = vpack.c.bf16 %v3046_v43, %v3045_v40  ;;  %v3891_v54 = vpack.c.bf16 %v3032_v45, %v3031_v44  ;;  %v3033_v0 = vld [vmem:[#allocation3 + $0xf0] sm:$0xff] }
 0xda3   :  { %3914 = vmatpush3.bf16.msra.mxu0 %v3913_v8  ;;  %v3015_v55 = vld [vmem:[#allocation3 + $0x60] sm:$0xff]  ;;  %v3016_v56 = vld [vmem:[#allocation3 + $0x68] sm:$0xff]  ;;  %v3923_v58 = vpack.c.bf16 %v3064_v48, %v3063_v47  ;;  %v3034_v1 = vld [vmem:[#allocation3 + $0xf8] sm:$0xff] }
 0xda4   :  { %3916 = vmatprep.subr.bf16.mxu0 %v3915_v33  ;;  %v3047_v57 = vld [vmem:[#allocation3 + $0x160] sm:$0xff]  ;;  %v3048_v62 = vld [vmem:[#allocation3 + $0x168] sm:$0xff]  ;;  %v3065_v32 = vld [vmem:[#allocation3 + $0x1f0] sm:$0xff]  ;;  %v3893_v39 = vpack.c.bf16 %v3016_v56, %v3015_v55  ;;  %v3895_v7 = vpack.c.bf16 %v3034_v1, %v3033_v0 }
 0xda5   :  { %3886 = vmatpush3.bf16.msra.mxu1 %v3885_v19  ;;  %v3066_v50 = vld [vmem:[#allocation3 + $0x1f8] sm:$0xff]  ;;  %v3925_v11 = vpack.c.bf16 %v3048_v62, %v3047_v57  ;;  %v3017_v24 = vld [vmem:[#allocation3 + $0x70] sm:$0xff]  ;;  %v3083_v6 = vld [vmem:[#allocation3 + $0x280] sm:$0xff] }
 0xda6   :  { %3888 = vmatprep.subr.bf16.mxu1 %v3887_v36  ;;  %v3018_v53 = vld [vmem:[#allocation3 + $0x78] sm:$0xff]  ;;  %v3049_v63 = vld [vmem:[#allocation3 + $0x170] sm:$0xff]  ;;  %v3927_v41 = vpack.c.bf16 %v3066_v50, %v3065_v32  ;;  %v3084_v52 = vld [vmem:[#allocation3 + $0x288] sm:$0xff] }
 0xda7   :  { %3918 = vmatpush3.bf16.msra.mxu0 %v3917_v34  ;;  %v3050_v60 = vld [vmem:[#allocation3 + $0x178] sm:$0xff]  ;;  %v3897_v4 = vpack.c.bf16 %v3018_v53, %v3017_v24  ;;  %v3931_v9 = vpack.c.bf16 %v3084_v52, %v3083_v6  ;;  %v3067_v17 = vld [vmem:[#allocation3 + $0x200] sm:$0xff]  ;;  %v3068_v10 = vld [vmem:[#allocation3 + $0x208] sm:$0xff] }
 0xda8   :  { %3920 = vmatprep.subr.bf16.mxu0 %v3919_v42  ;;  %v3929_v5 = vpack.c.bf16 %v3050_v60, %v3049_v63  ;;  %v3085_v14 = vld [vmem:[#allocation3 + $0x290] sm:$0xff]  ;;  %v3086_v12 = vld [vmem:[#allocation3 + $0x298] sm:$0xff]  ;;  %v3933_v15 = vpack.c.bf16 %v3068_v10, %v3067_v17  ;;  %v3087_v8 = vld [vmem:[#allocation3 + $0x2a0] sm:$0xff] }
 0xda9   :  { %3890 = vmatpush3.bf16.msra.mxu1 %v3889_v49  ;;  %v3935_v21 = vpack.c.bf16 %v3086_v12, %v3085_v14  ;;  %v3069_v22 = vld [vmem:[#allocation3 + $0x210] sm:$0xff]  ;;  %v3070_v28 = vld [vmem:[#allocation3 + $0x218] sm:$0xff]  ;;  %v3088_v16 = vld [vmem:[#allocation3 + $0x2a8] sm:$0xff] }
 0xdaa   :  { %3892 = vmatprep.subr.bf16.mxu1 %v3891_v54  ;;  %v3937_v20 = vpack.c.bf16 %v3070_v28, %v3069_v22  ;;  %v3939_v27 = vpack.c.bf16 %v3088_v16, %v3087_v8  ;;  %v3071_v61 = vld [vmem:[#allocation3 + $0x220] sm:$0xff]  ;;  %v3072_v33 = vld [vmem:[#allocation3 + $0x228] sm:$0xff]  ;;  %v3089_v18 = vld [vmem:[#allocation3 + $0x2b0] sm:$0xff] }
 0xdab   :  { %3922 = vmatpush3.bf16.msra.mxu0 %v3921_v51  ;;  %v3090_v23 = vld [vmem:[#allocation3 + $0x2b8] sm:$0xff]  ;;  %v3941_v29 = vpack.c.bf16 %v3072_v33, %v3071_v61  ;;  %v3073_v46 = vld [vmem:[#allocation3 + $0x230] sm:$0xff]  ;;  %v3091_v31 = vld [vmem:[#allocation3 + $0x2c0] sm:$0xff] }
 0xdac   :  { %3924 = vmatprep.subr.bf16.mxu0 %v3923_v58  ;;  %v3943_v30 = vpack.c.bf16 %v3090_v23, %v3089_v18  ;;  %v3092_v19 = vld [vmem:[#allocation3 + $0x2c8] sm:$0xff]  ;;  %v3075_v34 = vld [vmem:[#allocation3 + $0x240] sm:$0xff]  ;;  %v3093_v37 = vld [vmem:[#allocation3 + $0x2d0] sm:$0xff] }
 0xdad   :  { %3894 = vmatpush3.bf16.msra.mxu1 %v3893_v39  ;;  %v3076_v36 = vld [vmem:[#allocation3 + $0x248] sm:$0xff]  ;;  %v3094_v38 = vld [vmem:[#allocation3 + $0x2d8] sm:$0xff]  ;;  %v3077_v40 = vld [vmem:[#allocation3 + $0x250] sm:$0xff] }
 0xdae   :  { %3896 = vmatprep.subr.bf16.mxu1 %v3895_v7  ;;  %v3949_v35 = vpack.c.bf16 %v3076_v36, %v3075_v34  ;;  %v3078_v42 = vld [vmem:[#allocation3 + $0x258] sm:$0xff]  ;;  %v3095_v43 = vld [vmem:[#allocation3 + $0x2e0] sm:$0xff]  ;;  %v3096_v44 = vld [vmem:[#allocation3 + $0x2e8] sm:$0xff] }
 0xdaf   :  { %3926 = vmatpush3.bf16.msra.mxu0 %v3925_v11  ;;  %v3953_v45 = vpack.c.bf16 %v3078_v42, %v3077_v40  ;;  %v3955_v47 = vpack.c.bf16 %v3096_v44, %v3095_v43  ;;  %v3079_v48 = vld [vmem:[#allocation3 + $0x260] sm:$0xff]  ;;  %v3080_v49 = vld [vmem:[#allocation3 + $0x268] sm:$0xff]  ;;  %v3097_v51 = vld [vmem:[#allocation3 + $0x2f0] sm:$0xff] }
 0xdb0   :  { %3928 = vmatprep.subr.bf16.mxu0 %v3927_v41  ;;  %v3098_v54 = vld [vmem:[#allocation3 + $0x2f8] sm:$0xff]  ;;  %v3957_v55 = vpack.c.bf16 %v3080_v49, %v3079_v48  ;;  %v3081_v57 = vld [vmem:[#allocation3 + $0x270] sm:$0xff]  ;;  %v3425_v1 = vld [vmem:[#allocation3 + $0x300] ss:$0 sm:$0xff] }
 0xdb1   :  { %3898 = vmatpush3.bf16.msra.mxu1 %v3897_v4  ;;  %v3959_v56 = vpack.c.bf16 %v3098_v54, %v3097_v51  ;;  %v3082_v58 = vld [vmem:[#allocation3 + $0x278] sm:$0xff] }
 0xdb2   :  { %3932 = vmatprep.subr.bf16.mxu1 %v3931_v9  ;;  %v3961_v62 = vpack.c.bf16 %v3082_v58, %v3081_v57 }
 0xdb3   :  { %3930 = vmatpush3.bf16.msra.mxu0 %v3929_v5 }
 0xdb4   :  { %3169 = vmatmul.mubr.f32.vlgmr.msra.gmra.mrb[40].mxu1 %v2994_v59  ;;  %v3074_v59 = vld [vmem:[#allocation3 + $0x238] sm:$0xff] }
 0xdb5   :  { %3934 = vmatpush3.bf16.msra.mxu1 %v3933_v15  ;;  %3308 = vmatprep.mubr.f32.mxu1 %v2999_v26  ;;  %v3945_v3 = vpack.c.bf16 %v3074_v59, %v3073_v46  ;;  %v3951_v26 = vpack.c.bf16 %v3094_v38, %v3093_v37 }
 0xdb6   :  { %3239 = vmatmul.mubr.f32.vlgmr.msra.gmra.mrb[14].mxu0 %v2996_v2  ;;  %3936 = vmatprep.subr.bf16.mxu1 %v3935_v21  ;;  %v3947_v2 = vpack.c.bf16 %v3092_v19, %v3091_v31 }
 0xdb9   :  { %3938 = vmatpush3.bf16.msra.mxu1 %v3937_v20 }
 0xdba   :  { %3940 = vmatprep.subr.bf16.mxu1 %v3939_v27 }
 0xdbd   :  { %3942 = vmatpush3.bf16.msra.mxu1 %v3941_v29 }
 0xdbe   :  { %3944 = vmatprep.subr.bf16.mxu1 %v3943_v30 }
 0xdc1   :  { %3946 = vmatpush3.bf16.msra.mxu1 %v3945_v3 }
 0xdc2   :  { %3948 = vmatprep.subr.bf16.mxu1 %v3947_v2 }
 0xdc5   :  { %3950 = vmatpush3.bf16.msra.mxu1 %v3949_v35 }
 0xdc6   :  { %3952 = vmatprep.subr.bf16.mxu1 %v3951_v26 }
 0xdc9   :  { %3954 = vmatpush3.bf16.msra.mxu1 %v3953_v45 }
 0xdca   :  { %3956 = vmatprep.subr.bf16.mxu1 %v3955_v47 }
 0xdcd   :  { %3958 = vmatpush3.bf16.msra.mxu1 %v3957_v55 }
 0xdce   :  { %3960 = vmatprep.subr.bf16.mxu1 %v3959_v56 }
 0xdd1   :  { %3962 = vmatpush3.bf16.msra.mxu1 %v3961_v62 }
 0xdd4   :  { %3309 = vmatmul.mubr.f32.vlgmr.msra.gmra.mrb[42].mxu1 %v2998_v25 }
 0xe87   :  { %v3540_v0 = vpop.f32.mrb[40].mxu1 }
 0xe88   :  { %v3541_v32 = vpop.f32.mrb[41].mxu1 }
 0xe89   :  { %v3575_v50 = vpop.f32.mrb[14].mxu0  ;;  %v3542_v39 = vadd.f32 %v3541_v32, %v3540_v0 }
 0xe8a   :  { %v3576_v11 = vpop.f32.mrb[15].mxu0 }
 0xe8b   :  { %v3577_v7 = vadd.f32 %v3576_v11, %v3575_v50  ;;  %v3171_v24 = vadd.f32 %v3542_v39, %v3425_v1 }
 0xe8d   :  { %v3241_v53 = vadd.f32 %v3577_v7, %v3171_v24 }
 0xea7   :  { %v3610_v63 = vpop.f32.mrb[42].mxu1 }
 0xea8   :  { %v3611_v41 = vpop.f32.mrb[43].mxu1 }
 0xea9   :  { %v3612_v60 = vadd.f32 %v3611_v41, %v3610_v63 }
 0xeab   :  { %v3311_v6 = vadd.f32 %v3612_v60, %v3241_v53 }
 0xead   :  { %3314 = vst [vmem:[#allocation13] sm:$0x3] %v3311_v6 }
 0xeae   :  { %4200 = shalt.err (!%p4197_p2)
}
 0xeaf   :  { %s4201_s30 = scalar_lea.hbm %s5086_s7, 32 }
 0xeb0   :  { %p4202_p3 = scmp.ne.s32.totalorder %s5086_s7, %s4201_s30  ;;  %p4205_p4 = scmp.lt.u32.totalorder %s4201_s30, %s5086_s7 }
 0xeb2   :  { %p4207_p5 = pnand %p4205_p4, %p4202_p3 }
 0xeb4   :  { %4210 = shalt.err (!%p4207_p5)
}
 0xeb5   :  { %3324 = dma.vmem_to_hbm [thread:$0]  %s3322_s2, 32, %s5086_s7, [#allocation7]  }
 0xeb6   :  { %4225 = dma.done.wait [#allocation7], 32  }
 0xeb7   :  { %4226 = vsyncadd [#allocation7], 4294967264 }
 0xeb8   :  { %3328 = vsyncpa [#allocation6], 1 }
 0xeb9   :  { %3329 = vsyncpa [#allocation9], 1 }
 0xeba   :  { %3330 = vsyncpa [#allocation12], 1 }
 0xebb   :  { %3331 = vsyncpa [#allocation7], 1 }
 0xebc   :  { %3332 = vsyncmov [#allocation4] }
 0xebf   :  { %s3333_s4 = vpop.sfrf %3332 }
 0xec0   :  { %p3426_p6 = scmp.ne.s32.totalorder %s3333_s4, 0 }
 0xec2   :  { %3337 = shalt.err (%p3426_p6)  }
 0xec3   :  { %3339 = vsyncmov [#allocation4 + $0x1] }
 0xec6   :  { %s3340_s12 = vpop.sfrf %3339 }
 0xec7   :  { %p3427_p7 = scmp.ne.s32.totalorder %s3340_s12, 0 }
 0xec9   :  { %3344 = shalt.err (%p3427_p7)  }
 0xeca   :  { %3346 = vsyncmov [#allocation4 + $0x2] }
 0xecd   :  { %s3347_s15 = vpop.sfrf %3346 }
 0xece   :  { %p3428_p8 = scmp.ne.s32.totalorder %s3347_s15, 0 }
 0xed0   :  { %3351 = shalt.err (%p3428_p8)  }
 0xed1   :  { %3353 = vsyncmov [#allocation4 + $0x3] }
 0xed4   :  { %s3354_s7 = vpop.sfrf %3353 }
 0xed5   :  { %p3429_p9 = scmp.ne.s32.totalorder %s3354_s7, 0 }
 0xed7   :  { %3358 = shalt.err (%p3429_p9)  }

</bundles_post_ra>
